<compile_context>
chip_gen: v7x
topology: tpu7x:2x2x1
jax: 0.10.0
libtpu: 0.0.40
codegen_flags: <defaults>
</compile_context>

<pallas_src>
import jax
import jax.numpy as jnp
from jax.experimental import pallas as pl
from jax.experimental.pallas import tpu as pltpu

# ---- "args" for the module (chosen small, embed_shape % nhead(=3) == 0) ----
EMBED = 48           # args.embed_shape
NHEAD = 3            # hard-coded nhead=3 in the module
HEAD_DIM = EMBED // NHEAD
FFN_DIM = 64         # args.transformer_feedforward_dim
NUM_LAYERS = 2       # args.num_transformer_layers
MAX_BUNDLE = 8       # args.max_bundle_size
NUM_USERS = 5
NUM_ITEMS = 10
NUM_BUNDLES = 4
INITRANGE = 0.1      # args.weights_initrange
LN_EPS = 1e-5        # torch.nn.LayerNorm default eps


# --------------------------- Pallas kernels ---------------------------------
def fused_bundle_kernel(x_ref, u_ref, bd_ref,
                        wq_ref, wk_ref, wv_ref, bq_ref, bk_ref, bv_ref,
                        wo_ref, bo_ref, w1_ref, b1_ref, w2_ref, b2_ref,
                        g1_ref, bt1_ref, g2_ref, bt2_ref,
                        wpx_ref, wpu_ref, wpb_ref, bp_ref, o_ref):
    """All transformer layers + bundle-mean + Linear(3E->1) + relu, fused."""
    x = x_ref[...].astype(jnp.float32)              # (BB, S, E)
    BB, S, E = x.shape
    d = HEAD_DIM
    scale = 1.0 / (float(d) ** 0.5)

    def layer_norm(y, g, b):
        mu = jnp.mean(y, axis=-1, keepdims=True)
        yc = y - mu
        var = jnp.mean(yc * yc, axis=-1, keepdims=True)
        return yc * jax.lax.rsqrt(var + LN_EPS) * g + b

    xf = x.reshape(BB * S, E)                       # row-flatten for proj/FFN

    for l in range(NUM_LAYERS):                     # static unroll over layers
        acc = None
        for h in range(NHEAD):                      # static unroll over heads
            # per-head projections: leading-axis weight slices are free
            qh = jnp.dot(xf, wq_ref[l, h],
                         preferred_element_type=jnp.float32) + bq_ref[l, h]
            kh = jnp.dot(xf, wk_ref[l, h],
                         preferred_element_type=jnp.float32) + bk_ref[l, h]
            vh = jnp.dot(xf, wv_ref[l, h],
                         preferred_element_type=jnp.float32) + bv_ref[l, h]
            qb = qh.reshape(BB, S, d) * scale       # (BB, S, d)
            kb = kh.reshape(BB, S, d)
            vb = vh.reshape(BB, S, d)
            # batched scores / softmax / PV over the batch block
            s = jnp.einsum('bqd,bkd->bqk', qb, kb,
                           preferred_element_type=jnp.float32)        # (BB,S,S)
            s = s - jnp.max(s, axis=-1, keepdims=True)
            p = jnp.exp(s)
            p = p * pl.reciprocal(jnp.sum(p, axis=-1, keepdims=True),
                                  approx=True)
            pv = jnp.einsum('bqk,bkd->bqd', p, vb,
                            preferred_element_type=jnp.float32)       # (BB,S,d)
            # concat_h(oh) @ Wo == sum_h oh @ Wo[h*d:(h+1)*d, :]
            oh = jnp.dot(pv.reshape(BB * S, d), wo_ref[l, h],
                         preferred_element_type=jnp.float32)          # (BB*S,E)
            acc = oh if acc is None else acc + oh
        attn = acc + bo_ref[l]

        # post-norm residual blocks (norm_first=False, activation=relu)
        x1 = layer_norm(xf + attn, g1_ref[l], bt1_ref[l])
        h1 = jnp.maximum(
            jnp.dot(x1, w1_ref[l], preferred_element_type=jnp.float32)
            + b1_ref[l], 0.0)
        ff = jnp.dot(h1, w2_ref[l], preferred_element_type=jnp.float32) + b2_ref[l]
        xf = layer_norm(x1 + ff, g2_ref[l], bt2_ref[l])

    # bundle head: mean over items + concat(user, bundle emb) + Linear(3E->1) + relu
    mean_x = jnp.mean(xf.reshape(BB, S, E), axis=1)                   # (BB, E)
    u = u_ref[...].astype(jnp.float32)
    bd = bd_ref[...].astype(jnp.float32)
    logits = (jnp.dot(mean_x, wpx_ref[...], preferred_element_type=jnp.float32)
              + jnp.dot(u, wpu_ref[...], preferred_element_type=jnp.float32)
              + jnp.dot(bd, wpb_ref[...], preferred_element_type=jnp.float32)
              + bp_ref[...])
    o_ref[...] = jnp.maximum(logits, 0.0)


def item_pred_kernel(x0_ref, u_ref, wpx_ref, wpu_ref, bp_ref, o_ref):
    """concat(first item emb, user emb) + Linear(2E->1) + relu, whole batch."""
    x0 = x0_ref[...].astype(jnp.float32)            # (B, E)
    u = u_ref[...].astype(jnp.float32)              # (B, E)
    logits = (jnp.dot(x0, wpx_ref[...], preferred_element_type=jnp.float32)
              + jnp.dot(u, wpu_ref[...], preferred_element_type=jnp.float32)
              + bp_ref[...])
    o_ref[...] = jnp.maximum(logits, 0.0)


# --------------------------- wrappers ----------------------------------------
_ZMAP = {2: (lambda i: (0, 0)),
         3: (lambda i: (0, 0, 0)),
         4: (lambda i: (0, 0, 0, 0))}


def _full(shape):
    """BlockSpec covering the whole array, replicated across the grid."""
    return pl.BlockSpec(shape, _ZMAP[len(shape)])


def pick_batch_block(B):
    """Batch block size: fold B on single-TC chips, split across v7x's 2 TCs."""
    try:
        kind = jax.devices()[0].device_kind.lower()
    except Exception:
        kind = ""
    if ("v7" in kind or "7x" in kind) and B % 2 == 0 and B >= 2:
        return B // 2        # parallel grid across the two TensorCores
    return B                 # v5e/v6e: one grid step for the whole batch


def run_fused_bundle(x, user_emb, bundle_emb, fp):
    B, S, E = x.shape
    L, H, d, F = NUM_LAYERS, NHEAD, HEAD_DIM, FFN_DIM
    BB = pick_batch_block(B)

    in_specs = [
        pl.BlockSpec((BB, S, E), lambda i: (i, 0, 0)),
        pl.BlockSpec((BB, E), lambda i: (i, 0)),
        pl.BlockSpec((BB, E), lambda i: (i, 0)),
        _full((L, H, E, d)), _full((L, H, E, d)), _full((L, H, E, d)),
        _full((L, H, 1, d)), _full((L, H, 1, d)), _full((L, H, 1, d)),
        _full((L, H, d, E)), _full((L, 1, E)),
        _full((L, E, F)), _full((L, 1, F)),
        _full((L, F, E)), _full((L, 1, E)),
        _full((L, 1, E)), _full((L, 1, E)), _full((L, 1, E)), _full((L, 1, E)),
        _full((E, 1)), _full((E, 1)), _full((E, 1)), _full((1, 1)),
    ]

    return pl.pallas_call(
        fused_bundle_kernel,
        out_shape=jax.ShapeDtypeStruct((B, 1), jnp.float32),
        grid=(B // BB,),
        in_specs=in_specs,
        out_specs=pl.BlockSpec((BB, 1), lambda i: (i, 0)),
        compiler_params=pltpu.CompilerParams(dimension_semantics=("parallel",)),
    )(x, user_emb, bundle_emb,
      fp["wq"], fp["wk"], fp["wv"], fp["bq"], fp["bk"], fp["bv"],
      fp["wo"], fp["bo"], fp["w1"], fp["b1"], fp["w2"], fp["b2"],
      fp["g1"], fp["bt1"], fp["g2"], fp["bt2"],
      fp["wpx"], fp["wpu"], fp["wpb"], fp["bp"])


def run_item_pred(x0, user_emb, wpx, wpu, bp):
    B, E = x0.shape
    return pl.pallas_call(
        item_pred_kernel,
        out_shape=jax.ShapeDtypeStruct((B, 1), jnp.float32),
        grid=(1,),
        in_specs=[_full((B, E)), _full((B, E)),
                  _full((E, 1)), _full((E, 1)), _full((1, 1))],
        out_specs=_full((B, 1)),
    )(x0, user_emb, wpx, wpu, bp)


def prepare_fused_params(params):
    """One-time wrapper-side layout plumbing: stack layers, pre-split heads."""
    E, d, H = EMBED, HEAD_DIM, NHEAD
    stacks = {k: [] for k in ("wq", "wk", "wv", "bq", "bk", "bv", "wo", "bo",
                              "w1", "b1", "w2", "b2", "g1", "bt1", "g2", "bt2")}

    def per_head(w):                 # (E, E) (in, out) -> (H, E, d)
        return w.reshape(E, H, d).transpose(1, 0, 2)

    for lp in params["layers"]:
        wqkv = lp["wqkv"]            # (E, 3E), already (in, out)
        bqkv = lp["bqkv"][0]         # (3E,)
        stacks["wq"].append(per_head(wqkv[:, 0 * E:1 * E]))
        stacks["wk"].append(per_head(wqkv[:, 1 * E:2 * E]))
        stacks["wv"].append(per_head(wqkv[:, 2 * E:3 * E]))
        stacks["bq"].append(bqkv[0 * E:1 * E].reshape(H, 1, d))
        stacks["bk"].append(bqkv[1 * E:2 * E].reshape(H, 1, d))
        stacks["bv"].append(bqkv[2 * E:3 * E].reshape(H, 1, d))
        stacks["wo"].append(lp["wo"].reshape(H, d, E))   # rows h*d:(h+1)*d -> head h
        stacks["bo"].append(lp["bo"])
        stacks["w1"].append(lp["w1"]); stacks["b1"].append(lp["b1"])
        stacks["w2"].append(lp["w2"]); stacks["b2"].append(lp["b2"])
        stacks["g1"].append(lp["g1"]); stacks["bt1"].append(lp["beta1"])
        stacks["g2"].append(lp["g2"]); stacks["bt2"].append(lp["beta2"])

    fused = {k: jnp.stack(v, axis=0) for k, v in stacks.items()}

    # prediction heads: split concat-weight rows into per-input slabs
    wb = params["bundle_pred_w"]               # (3E, 1)
    fused["wpx"], fused["wpu"], fused["wpb"] = wb[:E, :], wb[E:2 * E, :], wb[2 * E:, :]
    fused["bp"] = params["bundle_pred_b"]
    wi = params["item_pred_w"]                 # (2E, 1)
    fused["ipx"], fused["ipu"] = wi[:E, :], wi[E:, :]
    fused["ipb"] = params["item_pred_b"]
    return fused


def model_forward(params, fused, x_idx, user_ids, bundle_ids=None, bundle=False,
                  attention_masks=None):
    """Eval-mode forward.  x_idx: (B, max_bundle_size) int32 item ids."""
    # embedding lookups (glue, outside the hot-path kernel)
    item_emb = jnp.take(params["item_table"], x_idx, axis=0)            # (B, S, E)
    user_emb = jnp.take(params["user_table"], user_ids[:, 0], axis=0)   # (B, E)

    if bundle:
        assert bundle_ids is not None
        bundle_emb = jnp.take(params["bundle_table"], bundle_ids[:, 0], axis=0)
        h = item_emb
        if attention_masks is not None:
            # TODO(synk): masks are applied multiplicatively to the input
            # embeddings (as in the original implementation), not as a
            # key-padding mask on the attention logits / bundle mean.
            h = h * attention_masks
        # Dropout (eval) = identity; Transpose pairs handled by batch-first layout
        return run_fused_bundle(h, user_emb, bundle_emb, fused)
    else:
        x0 = item_emb[:, 0, :]                                           # (B, E)
        return run_item_pred(x0, user_emb, fused["ipx"], fused["ipu"], fused["ipb"])


# --------------------------- parameter init ----------------------------------
def uniform(key, shape, scale):
    return jax.random.uniform(key, shape, jnp.float32, -scale, scale)


def init_params(key):
    n_keys = 8 + NUM_LAYERS * 8
    ks = iter(jax.random.split(key, n_keys))
    E, F = EMBED, FFN_DIM
    params = {
        "item_table": uniform(next(ks), (NUM_ITEMS + 1, E), INITRANGE),
        "user_table": uniform(next(ks), (NUM_USERS + 1, E), INITRANGE),
        "bundle_table": uniform(next(ks), (NUM_BUNDLES + 1, E), INITRANGE),
        # nn.Linear(3E, 1) and nn.Linear(2E, 1), stored transposed (in, out)
        "bundle_pred_w": uniform(next(ks), (3 * E, 1), INITRANGE),
        "bundle_pred_b": jnp.zeros((1, 1), jnp.float32),
        "item_pred_w": uniform(next(ks), (2 * E, 1), INITRANGE),
        "item_pred_b": jnp.zeros((1, 1), jnp.float32),
        "layers": [],
    }
    for _ in range(NUM_LAYERS):
        s_e = 1.0 / (E ** 0.5)
        s_f = 1.0 / (F ** 0.5)
        layer = {
            "wqkv": uniform(next(ks), (E, 3 * E), s_e),   # in_proj (transposed)
            "bqkv": uniform(next(ks), (1, 3 * E), s_e),
            "wo": uniform(next(ks), (E, E), s_e),         # out_proj (transposed)
            "bo": uniform(next(ks), (1, E), s_e),
            "w1": uniform(next(ks), (E, F), s_e),         # linear1 (transposed)
            "b1": uniform(next(ks), (1, F), s_e),
            "w2": uniform(next(ks), (F, E), s_f),         # linear2 (transposed)
            "b2": uniform(next(ks), (1, E), s_f),
            "g1": jnp.ones((1, E), jnp.float32),
            "beta1": jnp.zeros((1, E), jnp.float32),
            "g2": jnp.ones((1, E), jnp.float32),
            "beta2": jnp.zeros((1, E), jnp.float32),
        }
        params["layers"].append(layer)
    return params


# ------------------------------ main ------------------------------------------
if __name__ == "__main__":
    key = jax.random.PRNGKey(0)
    k_param, k_x, k_u, k_b = jax.random.split(key, 4)

    params = init_params(k_param)
    fused = prepare_fused_params(params)      # one-time layout plumbing

    B = 2
    x_idx = jax.random.randint(k_x, (B, MAX_BUNDLE), 0, NUM_ITEMS + 1, jnp.int32)
    user_ids = jax.random.randint(k_u, (B, 1), 0, NUM_USERS + 1, jnp.int32)
    bundle_ids = jax.random.randint(k_b, (B, 1), 0, NUM_BUNDLES + 1, jnp.int32)

    fwd_bundle = jax.jit(lambda p, fp, xi, ui, bi: model_forward(
        p, fp, xi, ui, bundle_ids=bi, bundle=True))
    fwd_item = jax.jit(lambda p, fp, xi, ui: model_forward(
        p, fp, xi, ui, bundle=False))

    # bundle=True path ('avg' op after transformer)
    out_bundle = fwd_bundle(params, fused, x_idx, user_ids, bundle_ids)
    # bundle=False path (item prediction)
    out_item = fwd_item(params, fused, x_idx, user_ids)

    jax.block_until_ready((out_bundle, out_item))
    assert out_bundle.shape == (B, 1) and out_item.shape == (B, 1)
    print("KERNEL_OK")
</pallas_src>

<mosaic_0001>
module attributes {stable_mosaic.version = 11 : i64} {
  func.func @fused_bundle_kernel(%arg0: i32, %arg1: memref<2x8x48xf32, #tpu.memory_space<vmem>>, %arg2: memref<2x48xf32, #tpu.memory_space<vmem>>, %arg3: memref<2x48xf32, #tpu.memory_space<vmem>>, %arg4: memref<2x3x48x16xf32, #tpu.memory_space<vmem>>, %arg5: memref<2x3x48x16xf32, #tpu.memory_space<vmem>>, %arg6: memref<2x3x48x16xf32, #tpu.memory_space<vmem>>, %arg7: memref<2x3x1x16xf32, #tpu.memory_space<vmem>>, %arg8: memref<2x3x1x16xf32, #tpu.memory_space<vmem>>, %arg9: memref<2x3x1x16xf32, #tpu.memory_space<vmem>>, %arg10: memref<2x3x16x48xf32, #tpu.memory_space<vmem>>, %arg11: memref<2x1x48xf32, #tpu.memory_space<vmem>>, %arg12: memref<2x48x64xf32, #tpu.memory_space<vmem>>, %arg13: memref<2x1x64xf32, #tpu.memory_space<vmem>>, %arg14: memref<2x64x48xf32, #tpu.memory_space<vmem>>, %arg15: memref<2x1x48xf32, #tpu.memory_space<vmem>>, %arg16: memref<2x1x48xf32, #tpu.memory_space<vmem>>, %arg17: memref<2x1x48xf32, #tpu.memory_space<vmem>>, %arg18: memref<2x1x48xf32, #tpu.memory_space<vmem>>, %arg19: memref<2x1x48xf32, #tpu.memory_space<vmem>>, %arg20: memref<48x1xf32, #tpu.memory_space<vmem>>, %arg21: memref<48x1xf32, #tpu.memory_space<vmem>>, %arg22: memref<48x1xf32, #tpu.memory_space<vmem>>, %arg23: memref<1x1xf32, #tpu.memory_space<vmem>>, %arg24: memref<2x1xf32, #tpu.memory_space<vmem>>) attributes {dimension_semantics = [#tpu.dimension_semantics<parallel>], iteration_bounds = array<i64: 1>, scalar_prefetch = 0 : i64, scratch_operands = 0 : i64, tpu.core_type = #tpu.core_type<tc>, window_params = [{transform_indices = @transform_0, window_bounds = array<i64: 2, 8, 48>}, {transform_indices = @transform_1, window_bounds = array<i64: 2, 48>}, {transform_indices = @transform_2, window_bounds = array<i64: 2, 48>}, {pipeline_mode = #tpu.pipeline_mode<synchronous>, transform_indices = @transform_3, window_bounds = array<i64: 2, 3, 48, 16>}, {pipeline_mode = #tpu.pipeline_mode<synchronous>, transform_indices = @transform_4, window_bounds = array<i64: 2, 3, 48, 16>}, {pipeline_mode = #tpu.pipeline_mode<synchronous>, transform_indices = @transform_5, window_bounds = array<i64: 2, 3, 48, 16>}, {pipeline_mode = #tpu.pipeline_mode<synchronous>, transform_indices = @transform_6, window_bounds = array<i64: 2, 3, 1, 16>}, {pipeline_mode = #tpu.pipeline_mode<synchronous>, transform_indices = @transform_7, window_bounds = array<i64: 2, 3, 1, 16>}, {pipeline_mode = #tpu.pipeline_mode<synchronous>, transform_indices = @transform_8, window_bounds = array<i64: 2, 3, 1, 16>}, {pipeline_mode = #tpu.pipeline_mode<synchronous>, transform_indices = @transform_9, window_bounds = array<i64: 2, 3, 16, 48>}, {pipeline_mode = #tpu.pipeline_mode<synchronous>, transform_indices = @transform_10, window_bounds = array<i64: 2, 1, 48>}, {pipeline_mode = #tpu.pipeline_mode<synchronous>, transform_indices = @transform_11, window_bounds = array<i64: 2, 48, 64>}, {pipeline_mode = #tpu.pipeline_mode<synchronous>, transform_indices = @transform_12, window_bounds = array<i64: 2, 1, 64>}, {pipeline_mode = #tpu.pipeline_mode<synchronous>, transform_indices = @transform_13, window_bounds = array<i64: 2, 64, 48>}, {pipeline_mode = #tpu.pipeline_mode<synchronous>, transform_indices = @transform_14, window_bounds = array<i64: 2, 1, 48>}, {pipeline_mode = #tpu.pipeline_mode<synchronous>, transform_indices = @transform_15, window_bounds = array<i64: 2, 1, 48>}, {pipeline_mode = #tpu.pipeline_mode<synchronous>, transform_indices = @transform_16, window_bounds = array<i64: 2, 1, 48>}, {pipeline_mode = #tpu.pipeline_mode<synchronous>, transform_indices = @transform_17, window_bounds = array<i64: 2, 1, 48>}, {pipeline_mode = #tpu.pipeline_mode<synchronous>, transform_indices = @transform_18, window_bounds = array<i64: 2, 1, 48>}, {pipeline_mode = #tpu.pipeline_mode<synchronous>, transform_indices = @transform_19, window_bounds = array<i64: 48, 1>}, {pipeline_mode = #tpu.pipeline_mode<synchronous>, transform_indices = @transform_20, window_bounds = array<i64: 48, 1>}, {pipeline_mode = #tpu.pipeline_mode<synchronous>, transform_indices = @transform_21, window_bounds = array<i64: 48, 1>}, {pipeline_mode = #tpu.pipeline_mode<synchronous>, transform_indices = @transform_22, window_bounds = array<i64: 1, 1>}, {transform_indices = @transform_23, window_bounds = array<i64: 2, 1>}]} {
    %c0 = arith.constant 0 : index
    %c0_0 = arith.constant 0 : index
    %c0_1 = arith.constant 0 : index
    %0 = vector.load %arg1[%c0, %c0_0, %c0_1] : memref<2x8x48xf32, #tpu.memory_space<vmem>>, vector<2x8x48xf32>
    %1 = vector.shape_cast %0 : vector<2x8x48xf32> to vector<16x48xf32>
    %c0_2 = arith.constant 0 : index
    %c0_3 = arith.constant 0 : index
    %c0_4 = arith.constant 0 : index
    %c0_5 = arith.constant 0 : index
    %2 = vector.load %arg4[%c0_2, %c0_3, %c0_4, %c0_5] : memref<2x3x48x16xf32, #tpu.memory_space<vmem>>, vector<1x1x48x16xf32>
    %3 = vector.shape_cast %2 : vector<1x1x48x16xf32> to vector<48x16xf32>
    %cst = arith.constant dense<0.000000e+00> : vector<16x16xf32>
    %4 = tpu.matmul %1, %3, %cst {dimension_numbers = #tpu.dot_dimension_numbers<[1], [0], [0], [1], [0, 0, 1, 1], [], []>} : vector<16x48xf32>, vector<48x16xf32>, vector<16x16xf32> -> vector<16x16xf32>
    %c0_6 = arith.constant 0 : index
    %c0_7 = arith.constant 0 : index
    %c0_8 = arith.constant 0 : index
    %c0_9 = arith.constant 0 : index
    %5 = vector.load %arg7[%c0_6, %c0_7, %c0_8, %c0_9] : memref<2x3x1x16xf32, #tpu.memory_space<vmem>>, vector<1x1x1x16xf32>
    %6 = vector.shape_cast %5 : vector<1x1x1x16xf32> to vector<1x16xf32>
    %7 = vector.broadcast %6 : vector<1x16xf32> to vector<16x16xf32>
    %8 = arith.addf %4, %7 : vector<16x16xf32>
    %c0_10 = arith.constant 0 : index
    %c0_11 = arith.constant 0 : index
    %c0_12 = arith.constant 0 : index
    %c0_13 = arith.constant 0 : index
    %9 = vector.load %arg5[%c0_10, %c0_11, %c0_12, %c0_13] : memref<2x3x48x16xf32, #tpu.memory_space<vmem>>, vector<1x1x48x16xf32>
    %10 = vector.shape_cast %9 : vector<1x1x48x16xf32> to vector<48x16xf32>
    %cst_14 = arith.constant dense<0.000000e+00> : vector<16x16xf32>
    %11 = tpu.matmul %1, %10, %cst_14 {dimension_numbers = #tpu.dot_dimension_numbers<[1], [0], [0], [1], [0, 0, 1, 1], [], []>} : vector<16x48xf32>, vector<48x16xf32>, vector<16x16xf32> -> vector<16x16xf32>
    %c0_15 = arith.constant 0 : index
    %c0_16 = arith.constant 0 : index
    %c0_17 = arith.constant 0 : index
    %c0_18 = arith.constant 0 : index
    %12 = vector.load %arg8[%c0_15, %c0_16, %c0_17, %c0_18] : memref<2x3x1x16xf32, #tpu.memory_space<vmem>>, vector<1x1x1x16xf32>
    %13 = vector.shape_cast %12 : vector<1x1x1x16xf32> to vector<1x16xf32>
    %14 = vector.broadcast %13 : vector<1x16xf32> to vector<16x16xf32>
    %15 = arith.addf %11, %14 : vector<16x16xf32>
    %c0_19 = arith.constant 0 : index
    %c0_20 = arith.constant 0 : index
    %c0_21 = arith.constant 0 : index
    %c0_22 = arith.constant 0 : index
    %16 = vector.load %arg6[%c0_19, %c0_20, %c0_21, %c0_22] : memref<2x3x48x16xf32, #tpu.memory_space<vmem>>, vector<1x1x48x16xf32>
    %17 = vector.shape_cast %16 : vector<1x1x48x16xf32> to vector<48x16xf32>
    %cst_23 = arith.constant dense<0.000000e+00> : vector<16x16xf32>
    %18 = tpu.matmul %1, %17, %cst_23 {dimension_numbers = #tpu.dot_dimension_numbers<[1], [0], [0], [1], [0, 0, 1, 1], [], []>} : vector<16x48xf32>, vector<48x16xf32>, vector<16x16xf32> -> vector<16x16xf32>
    %c0_24 = arith.constant 0 : index
    %c0_25 = arith.constant 0 : index
    %c0_26 = arith.constant 0 : index
    %c0_27 = arith.constant 0 : index
    %19 = vector.load %arg9[%c0_24, %c0_25, %c0_26, %c0_27] : memref<2x3x1x16xf32, #tpu.memory_space<vmem>>, vector<1x1x1x16xf32>
    %20 = vector.shape_cast %19 : vector<1x1x1x16xf32> to vector<1x16xf32>
    %21 = vector.broadcast %20 : vector<1x16xf32> to vector<16x16xf32>
    %22 = arith.addf %18, %21 : vector<16x16xf32>
    %23 = vector.shape_cast %8 : vector<16x16xf32> to vector<2x8x16xf32>
    %cst_28 = arith.constant 2.500000e-01 : f32
    %24 = vector.broadcast %cst_28 : f32 to vector<2x8x16xf32>
    %25 = arith.mulf %23, %24 : vector<2x8x16xf32>
    %26 = vector.shape_cast %15 : vector<16x16xf32> to vector<2x8x16xf32>
    %27 = vector.shape_cast %22 : vector<16x16xf32> to vector<2x8x16xf32>
    "tpu.trace_start"() <{level = 10 : i32, message = "bqd,bkd->bqk"}> : () -> ()
    %cst_29 = arith.constant dense<0.000000e+00> : vector<2x8x8xf32>
    %28 = tpu.matmul %25, %26, %cst_29 {dimension_numbers = #tpu.dot_dimension_numbers<[2], [2], [1], [1], [0, 0, 0, 1, 1, 1], [0], [0]>} : vector<2x8x16xf32>, vector<2x8x16xf32>, vector<2x8x8xf32> -> vector<2x8x8xf32>
    "tpu.trace_stop"() : () -> ()
    %cst_30 = arith.constant dense<0xFF800000> : vector<2x8xf32>
    %29 = vector.multi_reduction <maximumf>, %28, %cst_30 [2] : vector<2x8x8xf32> to vector<2x8xf32>
    %30 = vector.shape_cast %29 : vector<2x8xf32> to vector<2x8x1xf32>
    %31 = vector.broadcast %30 : vector<2x8x1xf32> to vector<2x8x8xf32>
    %32 = arith.subf %28, %31 : vector<2x8x8xf32>
    %33 = math.exp %32 : vector<2x8x8xf32>
    %cst_31 = arith.constant dense<0.000000e+00> : vector<2x8xf32>
    %34 = vector.multi_reduction <add>, %33, %cst_31 [2] : vector<2x8x8xf32> to vector<2x8xf32>
    %35 = vector.shape_cast %34 : vector<2x8xf32> to vector<2x8x1xf32>
    %36 = tpu.reciprocal %35 {approx = true} : vector<2x8x1xf32> -> vector<2x8x1xf32>
    %37 = vector.broadcast %36 : vector<2x8x1xf32> to vector<2x8x8xf32>
    %38 = arith.mulf %33, %37 : vector<2x8x8xf32>
    "tpu.trace_start"() <{level = 10 : i32, message = "bqk,bkd->bqd"}> : () -> ()
    %cst_32 = arith.constant dense<0.000000e+00> : vector<2x8x16xf32>
    %39 = tpu.matmul %38, %27, %cst_32 {dimension_numbers = #tpu.dot_dimension_numbers<[2], [1], [1], [2], [0, 0, 0, 1, 1, 2], [0], [0]>} : vector<2x8x8xf32>, vector<2x8x16xf32>, vector<2x8x16xf32> -> vector<2x8x16xf32>
    "tpu.trace_stop"() : () -> ()
    %40 = vector.shape_cast %39 : vector<2x8x16xf32> to vector<16x16xf32>
    %c0_33 = arith.constant 0 : index
    %c0_34 = arith.constant 0 : index
    %c0_35 = arith.constant 0 : index
    %c0_36 = arith.constant 0 : index
    %41 = vector.load %arg10[%c0_33, %c0_34, %c0_35, %c0_36] : memref<2x3x16x48xf32, #tpu.memory_space<vmem>>, vector<1x1x16x48xf32>
    %42 = vector.shape_cast %41 : vector<1x1x16x48xf32> to vector<16x48xf32>
    %cst_37 = arith.constant dense<0.000000e+00> : vector<16x48xf32>
    %43 = tpu.matmul %40, %42, %cst_37 {dimension_numbers = #tpu.dot_dimension_numbers<[1], [0], [0], [1], [0, 0, 1, 1], [], []>} : vector<16x16xf32>, vector<16x48xf32>, vector<16x48xf32> -> vector<16x48xf32>
    %c0_38 = arith.constant 0 : index
    %c1 = arith.constant 1 : index
    %c0_39 = arith.constant 0 : index
    %c0_40 = arith.constant 0 : index
    %44 = vector.load %arg4[%c0_38, %c1, %c0_39, %c0_40] : memref<2x3x48x16xf32, #tpu.memory_space<vmem>>, vector<1x1x48x16xf32>
    %45 = vector.shape_cast %44 : vector<1x1x48x16xf32> to vector<48x16xf32>
    %cst_41 = arith.constant dense<0.000000e+00> : vector<16x16xf32>
    %46 = tpu.matmul %1, %45, %cst_41 {dimension_numbers = #tpu.dot_dimension_numbers<[1], [0], [0], [1], [0, 0, 1, 1], [], []>} : vector<16x48xf32>, vector<48x16xf32>, vector<16x16xf32> -> vector<16x16xf32>
    %c0_42 = arith.constant 0 : index
    %c1_43 = arith.constant 1 : index
    %c0_44 = arith.constant 0 : index
    %c0_45 = arith.constant 0 : index
    %47 = vector.load %arg7[%c0_42, %c1_43, %c0_44, %c0_45] : memref<2x3x1x16xf32, #tpu.memory_space<vmem>>, vector<1x1x1x16xf32>
    %48 = vector.shape_cast %47 : vector<1x1x1x16xf32> to vector<1x16xf32>
    %49 = vector.broadcast %48 : vector<1x16xf32> to vector<16x16xf32>
    %50 = arith.addf %46, %49 : vector<16x16xf32>
    %c0_46 = arith.constant 0 : index
    %c1_47 = arith.constant 1 : index
    %c0_48 = arith.constant 0 : index
    %c0_49 = arith.constant 0 : index
    %51 = vector.load %arg5[%c0_46, %c1_47, %c0_48, %c0_49] : memref<2x3x48x16xf32, #tpu.memory_space<vmem>>, vector<1x1x48x16xf32>
    %52 = vector.shape_cast %51 : vector<1x1x48x16xf32> to vector<48x16xf32>
    %cst_50 = arith.constant dense<0.000000e+00> : vector<16x16xf32>
    %53 = tpu.matmul %1, %52, %cst_50 {dimension_numbers = #tpu.dot_dimension_numbers<[1], [0], [0], [1], [0, 0, 1, 1], [], []>} : vector<16x48xf32>, vector<48x16xf32>, vector<16x16xf32> -> vector<16x16xf32>
    %c0_51 = arith.constant 0 : index
    %c1_52 = arith.constant 1 : index
    %c0_53 = arith.constant 0 : index
    %c0_54 = arith.constant 0 : index
    %54 = vector.load %arg8[%c0_51, %c1_52, %c0_53, %c0_54] : memref<2x3x1x16xf32, #tpu.memory_space<vmem>>, vector<1x1x1x16xf32>
    %55 = vector.shape_cast %54 : vector<1x1x1x16xf32> to vector<1x16xf32>
    %56 = vector.broadcast %55 : vector<1x16xf32> to vector<16x16xf32>
    %57 = arith.addf %53, %56 : vector<16x16xf32>
    %c0_55 = arith.constant 0 : index
    %c1_56 = arith.constant 1 : index
    %c0_57 = arith.constant 0 : index
    %c0_58 = arith.constant 0 : index
    %58 = vector.load %arg6[%c0_55, %c1_56, %c0_57, %c0_58] : memref<2x3x48x16xf32, #tpu.memory_space<vmem>>, vector<1x1x48x16xf32>
    %59 = vector.shape_cast %58 : vector<1x1x48x16xf32> to vector<48x16xf32>
    %cst_59 = arith.constant dense<0.000000e+00> : vector<16x16xf32>
    %60 = tpu.matmul %1, %59, %cst_59 {dimension_numbers = #tpu.dot_dimension_numbers<[1], [0], [0], [1], [0, 0, 1, 1], [], []>} : vector<16x48xf32>, vector<48x16xf32>, vector<16x16xf32> -> vector<16x16xf32>
    %c0_60 = arith.constant 0 : index
    %c1_61 = arith.constant 1 : index
    %c0_62 = arith.constant 0 : index
    %c0_63 = arith.constant 0 : index
    %61 = vector.load %arg9[%c0_60, %c1_61, %c0_62, %c0_63] : memref<2x3x1x16xf32, #tpu.memory_space<vmem>>, vector<1x1x1x16xf32>
    %62 = vector.shape_cast %61 : vector<1x1x1x16xf32> to vector<1x16xf32>
    %63 = vector.broadcast %62 : vector<1x16xf32> to vector<16x16xf32>
    %64 = arith.addf %60, %63 : vector<16x16xf32>
    %65 = vector.shape_cast %50 : vector<16x16xf32> to vector<2x8x16xf32>
    %cst_64 = arith.constant 2.500000e-01 : f32
    %66 = vector.broadcast %cst_64 : f32 to vector<2x8x16xf32>
    %67 = arith.mulf %65, %66 : vector<2x8x16xf32>
    %68 = vector.shape_cast %57 : vector<16x16xf32> to vector<2x8x16xf32>
    %69 = vector.shape_cast %64 : vector<16x16xf32> to vector<2x8x16xf32>
    "tpu.trace_start"() <{level = 10 : i32, message = "bqd,bkd->bqk"}> : () -> ()
    %cst_65 = arith.constant dense<0.000000e+00> : vector<2x8x8xf32>
    %70 = tpu.matmul %67, %68, %cst_65 {dimension_numbers = #tpu.dot_dimension_numbers<[2], [2], [1], [1], [0, 0, 0, 1, 1, 1], [0], [0]>} : vector<2x8x16xf32>, vector<2x8x16xf32>, vector<2x8x8xf32> -> vector<2x8x8xf32>
    "tpu.trace_stop"() : () -> ()
    %cst_66 = arith.constant dense<0xFF800000> : vector<2x8xf32>
    %71 = vector.multi_reduction <maximumf>, %70, %cst_66 [2] : vector<2x8x8xf32> to vector<2x8xf32>
    %72 = vector.shape_cast %71 : vector<2x8xf32> to vector<2x8x1xf32>
    %73 = vector.broadcast %72 : vector<2x8x1xf32> to vector<2x8x8xf32>
    %74 = arith.subf %70, %73 : vector<2x8x8xf32>
    %75 = math.exp %74 : vector<2x8x8xf32>
    %cst_67 = arith.constant dense<0.000000e+00> : vector<2x8xf32>
    %76 = vector.multi_reduction <add>, %75, %cst_67 [2] : vector<2x8x8xf32> to vector<2x8xf32>
    %77 = vector.shape_cast %76 : vector<2x8xf32> to vector<2x8x1xf32>
    %78 = tpu.reciprocal %77 {approx = true} : vector<2x8x1xf32> -> vector<2x8x1xf32>
    %79 = vector.broadcast %78 : vector<2x8x1xf32> to vector<2x8x8xf32>
    %80 = arith.mulf %75, %79 : vector<2x8x8xf32>
    "tpu.trace_start"() <{level = 10 : i32, message = "bqk,bkd->bqd"}> : () -> ()
    %cst_68 = arith.constant dense<0.000000e+00> : vector<2x8x16xf32>
    %81 = tpu.matmul %80, %69, %cst_68 {dimension_numbers = #tpu.dot_dimension_numbers<[2], [1], [1], [2], [0, 0, 0, 1, 1, 2], [0], [0]>} : vector<2x8x8xf32>, vector<2x8x16xf32>, vector<2x8x16xf32> -> vector<2x8x16xf32>
    "tpu.trace_stop"() : () -> ()
    %82 = vector.shape_cast %81 : vector<2x8x16xf32> to vector<16x16xf32>
    %c0_69 = arith.constant 0 : index
    %c1_70 = arith.constant 1 : index
    %c0_71 = arith.constant 0 : index
    %c0_72 = arith.constant 0 : index
    %83 = vector.load %arg10[%c0_69, %c1_70, %c0_71, %c0_72] : memref<2x3x16x48xf32, #tpu.memory_space<vmem>>, vector<1x1x16x48xf32>
    %84 = vector.shape_cast %83 : vector<1x1x16x48xf32> to vector<16x48xf32>
    %cst_73 = arith.constant dense<0.000000e+00> : vector<16x48xf32>
    %85 = tpu.matmul %82, %84, %cst_73 {dimension_numbers = #tpu.dot_dimension_numbers<[1], [0], [0], [1], [0, 0, 1, 1], [], []>} : vector<16x16xf32>, vector<16x48xf32>, vector<16x48xf32> -> vector<16x48xf32>
    %86 = arith.addf %43, %85 : vector<16x48xf32>
    %c0_74 = arith.constant 0 : index
    %c2 = arith.constant 2 : index
    %c0_75 = arith.constant 0 : index
    %c0_76 = arith.constant 0 : index
    %87 = vector.load %arg4[%c0_74, %c2, %c0_75, %c0_76] : memref<2x3x48x16xf32, #tpu.memory_space<vmem>>, vector<1x1x48x16xf32>
    %88 = vector.shape_cast %87 : vector<1x1x48x16xf32> to vector<48x16xf32>
    %cst_77 = arith.constant dense<0.000000e+00> : vector<16x16xf32>
    %89 = tpu.matmul %1, %88, %cst_77 {dimension_numbers = #tpu.dot_dimension_numbers<[1], [0], [0], [1], [0, 0, 1, 1], [], []>} : vector<16x48xf32>, vector<48x16xf32>, vector<16x16xf32> -> vector<16x16xf32>
    %c0_78 = arith.constant 0 : index
    %c2_79 = arith.constant 2 : index
    %c0_80 = arith.constant 0 : index
    %c0_81 = arith.constant 0 : index
    %90 = vector.load %arg7[%c0_78, %c2_79, %c0_80, %c0_81] : memref<2x3x1x16xf32, #tpu.memory_space<vmem>>, vector<1x1x1x16xf32>
    %91 = vector.shape_cast %90 : vector<1x1x1x16xf32> to vector<1x16xf32>
    %92 = vector.broadcast %91 : vector<1x16xf32> to vector<16x16xf32>
    %93 = arith.addf %89, %92 : vector<16x16xf32>
    %c0_82 = arith.constant 0 : index
    %c2_83 = arith.constant 2 : index
    %c0_84 = arith.constant 0 : index
    %c0_85 = arith.constant 0 : index
    %94 = vector.load %arg5[%c0_82, %c2_83, %c0_84, %c0_85] : memref<2x3x48x16xf32, #tpu.memory_space<vmem>>, vector<1x1x48x16xf32>
    %95 = vector.shape_cast %94 : vector<1x1x48x16xf32> to vector<48x16xf32>
    %cst_86 = arith.constant dense<0.000000e+00> : vector<16x16xf32>
    %96 = tpu.matmul %1, %95, %cst_86 {dimension_numbers = #tpu.dot_dimension_numbers<[1], [0], [0], [1], [0, 0, 1, 1], [], []>} : vector<16x48xf32>, vector<48x16xf32>, vector<16x16xf32> -> vector<16x16xf32>
    %c0_87 = arith.constant 0 : index
    %c2_88 = arith.constant 2 : index
    %c0_89 = arith.constant 0 : index
    %c0_90 = arith.constant 0 : index
    %97 = vector.load %arg8[%c0_87, %c2_88, %c0_89, %c0_90] : memref<2x3x1x16xf32, #tpu.memory_space<vmem>>, vector<1x1x1x16xf32>
    %98 = vector.shape_cast %97 : vector<1x1x1x16xf32> to vector<1x16xf32>
    %99 = vector.broadcast %98 : vector<1x16xf32> to vector<16x16xf32>
    %100 = arith.addf %96, %99 : vector<16x16xf32>
    %c0_91 = arith.constant 0 : index
    %c2_92 = arith.constant 2 : index
    %c0_93 = arith.constant 0 : index
    %c0_94 = arith.constant 0 : index
    %101 = vector.load %arg6[%c0_91, %c2_92, %c0_93, %c0_94] : memref<2x3x48x16xf32, #tpu.memory_space<vmem>>, vector<1x1x48x16xf32>
    %102 = vector.shape_cast %101 : vector<1x1x48x16xf32> to vector<48x16xf32>
    %cst_95 = arith.constant dense<0.000000e+00> : vector<16x16xf32>
    %103 = tpu.matmul %1, %102, %cst_95 {dimension_numbers = #tpu.dot_dimension_numbers<[1], [0], [0], [1], [0, 0, 1, 1], [], []>} : vector<16x48xf32>, vector<48x16xf32>, vector<16x16xf32> -> vector<16x16xf32>
    %c0_96 = arith.constant 0 : index
    %c2_97 = arith.constant 2 : index
    %c0_98 = arith.constant 0 : index
    %c0_99 = arith.constant 0 : index
    %104 = vector.load %arg9[%c0_96, %c2_97, %c0_98, %c0_99] : memref<2x3x1x16xf32, #tpu.memory_space<vmem>>, vector<1x1x1x16xf32>
    %105 = vector.shape_cast %104 : vector<1x1x1x16xf32> to vector<1x16xf32>
    %106 = vector.broadcast %105 : vector<1x16xf32> to vector<16x16xf32>
    %107 = arith.addf %103, %106 : vector<16x16xf32>
    %108 = vector.shape_cast %93 : vector<16x16xf32> to vector<2x8x16xf32>
    %cst_100 = arith.constant 2.500000e-01 : f32
    %109 = vector.broadcast %cst_100 : f32 to vector<2x8x16xf32>
    %110 = arith.mulf %108, %109 : vector<2x8x16xf32>
    %111 = vector.shape_cast %100 : vector<16x16xf32> to vector<2x8x16xf32>
    %112 = vector.shape_cast %107 : vector<16x16xf32> to vector<2x8x16xf32>
    "tpu.trace_start"() <{level = 10 : i32, message = "bqd,bkd->bqk"}> : () -> ()
    %cst_101 = arith.constant dense<0.000000e+00> : vector<2x8x8xf32>
    %113 = tpu.matmul %110, %111, %cst_101 {dimension_numbers = #tpu.dot_dimension_numbers<[2], [2], [1], [1], [0, 0, 0, 1, 1, 1], [0], [0]>} : vector<2x8x16xf32>, vector<2x8x16xf32>, vector<2x8x8xf32> -> vector<2x8x8xf32>
    "tpu.trace_stop"() : () -> ()
    %cst_102 = arith.constant dense<0xFF800000> : vector<2x8xf32>
    %114 = vector.multi_reduction <maximumf>, %113, %cst_102 [2] : vector<2x8x8xf32> to vector<2x8xf32>
    %115 = vector.shape_cast %114 : vector<2x8xf32> to vector<2x8x1xf32>
    %116 = vector.broadcast %115 : vector<2x8x1xf32> to vector<2x8x8xf32>
    %117 = arith.subf %113, %116 : vector<2x8x8xf32>
    %118 = math.exp %117 : vector<2x8x8xf32>
    %cst_103 = arith.constant dense<0.000000e+00> : vector<2x8xf32>
    %119 = vector.multi_reduction <add>, %118, %cst_103 [2] : vector<2x8x8xf32> to vector<2x8xf32>
    %120 = vector.shape_cast %119 : vector<2x8xf32> to vector<2x8x1xf32>
    %121 = tpu.reciprocal %120 {approx = true} : vector<2x8x1xf32> -> vector<2x8x1xf32>
    %122 = vector.broadcast %121 : vector<2x8x1xf32> to vector<2x8x8xf32>
    %123 = arith.mulf %118, %122 : vector<2x8x8xf32>
    "tpu.trace_start"() <{level = 10 : i32, message = "bqk,bkd->bqd"}> : () -> ()
    %cst_104 = arith.constant dense<0.000000e+00> : vector<2x8x16xf32>
    %124 = tpu.matmul %123, %112, %cst_104 {dimension_numbers = #tpu.dot_dimension_numbers<[2], [1], [1], [2], [0, 0, 0, 1, 1, 2], [0], [0]>} : vector<2x8x8xf32>, vector<2x8x16xf32>, vector<2x8x16xf32> -> vector<2x8x16xf32>
    "tpu.trace_stop"() : () -> ()
    %125 = vector.shape_cast %124 : vector<2x8x16xf32> to vector<16x16xf32>
    %c0_105 = arith.constant 0 : index
    %c2_106 = arith.constant 2 : index
    %c0_107 = arith.constant 0 : index
    %c0_108 = arith.constant 0 : index
    %126 = vector.load %arg10[%c0_105, %c2_106, %c0_107, %c0_108] : memref<2x3x16x48xf32, #tpu.memory_space<vmem>>, vector<1x1x16x48xf32>
    %127 = vector.shape_cast %126 : vector<1x1x16x48xf32> to vector<16x48xf32>
    %cst_109 = arith.constant dense<0.000000e+00> : vector<16x48xf32>
    %128 = tpu.matmul %125, %127, %cst_109 {dimension_numbers = #tpu.dot_dimension_numbers<[1], [0], [0], [1], [0, 0, 1, 1], [], []>} : vector<16x16xf32>, vector<16x48xf32>, vector<16x48xf32> -> vector<16x48xf32>
    %129 = arith.addf %86, %128 : vector<16x48xf32>
    %c0_110 = arith.constant 0 : index
    %c0_111 = arith.constant 0 : index
    %c0_112 = arith.constant 0 : index
    %130 = vector.load %arg11[%c0_110, %c0_111, %c0_112] : memref<2x1x48xf32, #tpu.memory_space<vmem>>, vector<1x1x48xf32>
    %131 = vector.shape_cast %130 : vector<1x1x48xf32> to vector<1x48xf32>
    %132 = vector.broadcast %131 : vector<1x48xf32> to vector<16x48xf32>
    %133 = arith.addf %129, %132 : vector<16x48xf32>
    %134 = arith.addf %1, %133 : vector<16x48xf32>
    %c0_113 = arith.constant 0 : index
    %c0_114 = arith.constant 0 : index
    %c0_115 = arith.constant 0 : index
    %135 = vector.load %arg16[%c0_113, %c0_114, %c0_115] : memref<2x1x48xf32, #tpu.memory_space<vmem>>, vector<1x1x48xf32>
    %136 = vector.shape_cast %135 : vector<1x1x48xf32> to vector<1x48xf32>
    %c0_116 = arith.constant 0 : index
    %c0_117 = arith.constant 0 : index
    %c0_118 = arith.constant 0 : index
    %137 = vector.load %arg17[%c0_116, %c0_117, %c0_118] : memref<2x1x48xf32, #tpu.memory_space<vmem>>, vector<1x1x48xf32>
    %138 = vector.shape_cast %137 : vector<1x1x48xf32> to vector<1x48xf32>
    %cst_119 = arith.constant dense<0.000000e+00> : vector<16xf32>
    %139 = vector.multi_reduction <add>, %134, %cst_119 [1] : vector<16x48xf32> to vector<16xf32>
    %140 = vector.shape_cast %139 : vector<16xf32> to vector<16x1xf32>
    %cst_120 = arith.constant 4.800000e+01 : f32
    %141 = vector.broadcast %cst_120 : f32 to vector<16x1xf32>
    %142 = arith.divf %140, %141 : vector<16x1xf32>
    %143 = vector.broadcast %142 : vector<16x1xf32> to vector<16x48xf32>
    %144 = arith.subf %134, %143 : vector<16x48xf32>
    %145 = arith.mulf %144, %144 : vector<16x48xf32>
    %cst_121 = arith.constant dense<0.000000e+00> : vector<16xf32>
    %146 = vector.multi_reduction <add>, %145, %cst_121 [1] : vector<16x48xf32> to vector<16xf32>
    %147 = vector.shape_cast %146 : vector<16xf32> to vector<16x1xf32>
    %cst_122 = arith.constant 4.800000e+01 : f32
    %148 = vector.broadcast %cst_122 : f32 to vector<16x1xf32>
    %149 = arith.divf %147, %148 : vector<16x1xf32>
    %cst_123 = arith.constant 9.99999974E-6 : f32
    %150 = vector.broadcast %cst_123 : f32 to vector<16x1xf32>
    %151 = arith.addf %149, %150 : vector<16x1xf32>
    %152 = math.rsqrt %151 : vector<16x1xf32>
    %153 = vector.broadcast %152 : vector<16x1xf32> to vector<16x48xf32>
    %154 = arith.mulf %144, %153 : vector<16x48xf32>
    %155 = vector.broadcast %136 : vector<1x48xf32> to vector<16x48xf32>
    %156 = arith.mulf %154, %155 : vector<16x48xf32>
    %157 = vector.broadcast %138 : vector<1x48xf32> to vector<16x48xf32>
    %158 = arith.addf %156, %157 : vector<16x48xf32>
    %c0_124 = arith.constant 0 : index
    %c0_125 = arith.constant 0 : index
    %c0_126 = arith.constant 0 : index
    %159 = vector.load %arg12[%c0_124, %c0_125, %c0_126] : memref<2x48x64xf32, #tpu.memory_space<vmem>>, vector<1x48x64xf32>
    %160 = vector.shape_cast %159 : vector<1x48x64xf32> to vector<48x64xf32>
    %cst_127 = arith.constant dense<0.000000e+00> : vector<16x64xf32>
    %161 = tpu.matmul %158, %160, %cst_127 {dimension_numbers = #tpu.dot_dimension_numbers<[1], [0], [0], [1], [0, 0, 1, 1], [], []>} : vector<16x48xf32>, vector<48x64xf32>, vector<16x64xf32> -> vector<16x64xf32>
    %c0_128 = arith.constant 0 : index
    %c0_129 = arith.constant 0 : index
    %c0_130 = arith.constant 0 : index
    %162 = vector.load %arg13[%c0_128, %c0_129, %c0_130] : memref<2x1x64xf32, #tpu.memory_space<vmem>>, vector<1x1x64xf32>
    %163 = vector.shape_cast %162 : vector<1x1x64xf32> to vector<1x64xf32>
    %164 = vector.broadcast %163 : vector<1x64xf32> to vector<16x64xf32>
    %165 = arith.addf %161, %164 : vector<16x64xf32>
    %cst_131 = arith.constant 0.000000e+00 : f32
    %166 = vector.broadcast %cst_131 : f32 to vector<16x64xf32>
    %167 = arith.maximumf %165, %166 : vector<16x64xf32>
    %c0_132 = arith.constant 0 : index
    %c0_133 = arith.constant 0 : index
    %c0_134 = arith.constant 0 : index
    %168 = vector.load %arg14[%c0_132, %c0_133, %c0_134] : memref<2x64x48xf32, #tpu.memory_space<vmem>>, vector<1x64x48xf32>
    %169 = vector.shape_cast %168 : vector<1x64x48xf32> to vector<64x48xf32>
    %cst_135 = arith.constant dense<0.000000e+00> : vector<16x48xf32>
    %170 = tpu.matmul %167, %169, %cst_135 {dimension_numbers = #tpu.dot_dimension_numbers<[1], [0], [0], [1], [0, 0, 1, 1], [], []>} : vector<16x64xf32>, vector<64x48xf32>, vector<16x48xf32> -> vector<16x48xf32>
    %c0_136 = arith.constant 0 : index
    %c0_137 = arith.constant 0 : index
    %c0_138 = arith.constant 0 : index
    %171 = vector.load %arg15[%c0_136, %c0_137, %c0_138] : memref<2x1x48xf32, #tpu.memory_space<vmem>>, vector<1x1x48xf32>
    %172 = vector.shape_cast %171 : vector<1x1x48xf32> to vector<1x48xf32>
    %173 = vector.broadcast %172 : vector<1x48xf32> to vector<16x48xf32>
    %174 = arith.addf %170, %173 : vector<16x48xf32>
    %175 = arith.addf %158, %174 : vector<16x48xf32>
    %c0_139 = arith.constant 0 : index
    %c0_140 = arith.constant 0 : index
    %c0_141 = arith.constant 0 : index
    %176 = vector.load %arg18[%c0_139, %c0_140, %c0_141] : memref<2x1x48xf32, #tpu.memory_space<vmem>>, vector<1x1x48xf32>
    %177 = vector.shape_cast %176 : vector<1x1x48xf32> to vector<1x48xf32>
    %c0_142 = arith.constant 0 : index
    %c0_143 = arith.constant 0 : index
    %c0_144 = arith.constant 0 : index
    %178 = vector.load %arg19[%c0_142, %c0_143, %c0_144] : memref<2x1x48xf32, #tpu.memory_space<vmem>>, vector<1x1x48xf32>
    %179 = vector.shape_cast %178 : vector<1x1x48xf32> to vector<1x48xf32>
    %cst_145 = arith.constant dense<0.000000e+00> : vector<16xf32>
    %180 = vector.multi_reduction <add>, %175, %cst_145 [1] : vector<16x48xf32> to vector<16xf32>
    %181 = vector.shape_cast %180 : vector<16xf32> to vector<16x1xf32>
    %cst_146 = arith.constant 4.800000e+01 : f32
    %182 = vector.broadcast %cst_146 : f32 to vector<16x1xf32>
    %183 = arith.divf %181, %182 : vector<16x1xf32>
    %184 = vector.broadcast %183 : vector<16x1xf32> to vector<16x48xf32>
    %185 = arith.subf %175, %184 : vector<16x48xf32>
    %186 = arith.mulf %185, %185 : vector<16x48xf32>
    %cst_147 = arith.constant dense<0.000000e+00> : vector<16xf32>
    %187 = vector.multi_reduction <add>, %186, %cst_147 [1] : vector<16x48xf32> to vector<16xf32>
    %188 = vector.shape_cast %187 : vector<16xf32> to vector<16x1xf32>
    %cst_148 = arith.constant 4.800000e+01 : f32
    %189 = vector.broadcast %cst_148 : f32 to vector<16x1xf32>
    %190 = arith.divf %188, %189 : vector<16x1xf32>
    %cst_149 = arith.constant 9.99999974E-6 : f32
    %191 = vector.broadcast %cst_149 : f32 to vector<16x1xf32>
    %192 = arith.addf %190, %191 : vector<16x1xf32>
    %193 = math.rsqrt %192 : vector<16x1xf32>
    %194 = vector.broadcast %193 : vector<16x1xf32> to vector<16x48xf32>
    %195 = arith.mulf %185, %194 : vector<16x48xf32>
    %196 = vector.broadcast %177 : vector<1x48xf32> to vector<16x48xf32>
    %197 = arith.mulf %195, %196 : vector<16x48xf32>
    %198 = vector.broadcast %179 : vector<1x48xf32> to vector<16x48xf32>
    %199 = arith.addf %197, %198 : vector<16x48xf32>
    %c1_150 = arith.constant 1 : index
    %c0_151 = arith.constant 0 : index
    %c0_152 = arith.constant 0 : index
    %c0_153 = arith.constant 0 : index
    %200 = vector.load %arg4[%c1_150, %c0_151, %c0_152, %c0_153] : memref<2x3x48x16xf32, #tpu.memory_space<vmem>>, vector<1x1x48x16xf32>
    %201 = vector.shape_cast %200 : vector<1x1x48x16xf32> to vector<48x16xf32>
    %cst_154 = arith.constant dense<0.000000e+00> : vector<16x16xf32>
    %202 = tpu.matmul %199, %201, %cst_154 {dimension_numbers = #tpu.dot_dimension_numbers<[1], [0], [0], [1], [0, 0, 1, 1], [], []>} : vector<16x48xf32>, vector<48x16xf32>, vector<16x16xf32> -> vector<16x16xf32>
    %c1_155 = arith.constant 1 : index
    %c0_156 = arith.constant 0 : index
    %c0_157 = arith.constant 0 : index
    %c0_158 = arith.constant 0 : index
    %203 = vector.load %arg7[%c1_155, %c0_156, %c0_157, %c0_158] : memref<2x3x1x16xf32, #tpu.memory_space<vmem>>, vector<1x1x1x16xf32>
    %204 = vector.shape_cast %203 : vector<1x1x1x16xf32> to vector<1x16xf32>
    %205 = vector.broadcast %204 : vector<1x16xf32> to vector<16x16xf32>
    %206 = arith.addf %202, %205 : vector<16x16xf32>
    %c1_159 = arith.constant 1 : index
    %c0_160 = arith.constant 0 : index
    %c0_161 = arith.constant 0 : index
    %c0_162 = arith.constant 0 : index
    %207 = vector.load %arg5[%c1_159, %c0_160, %c0_161, %c0_162] : memref<2x3x48x16xf32, #tpu.memory_space<vmem>>, vector<1x1x48x16xf32>
    %208 = vector.shape_cast %207 : vector<1x1x48x16xf32> to vector<48x16xf32>
    %cst_163 = arith.constant dense<0.000000e+00> : vector<16x16xf32>
    %209 = tpu.matmul %199, %208, %cst_163 {dimension_numbers = #tpu.dot_dimension_numbers<[1], [0], [0], [1], [0, 0, 1, 1], [], []>} : vector<16x48xf32>, vector<48x16xf32>, vector<16x16xf32> -> vector<16x16xf32>
    %c1_164 = arith.constant 1 : index
    %c0_165 = arith.constant 0 : index
    %c0_166 = arith.constant 0 : index
    %c0_167 = arith.constant 0 : index
    %210 = vector.load %arg8[%c1_164, %c0_165, %c0_166, %c0_167] : memref<2x3x1x16xf32, #tpu.memory_space<vmem>>, vector<1x1x1x16xf32>
    %211 = vector.shape_cast %210 : vector<1x1x1x16xf32> to vector<1x16xf32>
    %212 = vector.broadcast %211 : vector<1x16xf32> to vector<16x16xf32>
    %213 = arith.addf %209, %212 : vector<16x16xf32>
    %c1_168 = arith.constant 1 : index
    %c0_169 = arith.constant 0 : index
    %c0_170 = arith.constant 0 : index
    %c0_171 = arith.constant 0 : index
    %214 = vector.load %arg6[%c1_168, %c0_169, %c0_170, %c0_171] : memref<2x3x48x16xf32, #tpu.memory_space<vmem>>, vector<1x1x48x16xf32>
    %215 = vector.shape_cast %214 : vector<1x1x48x16xf32> to vector<48x16xf32>
    %cst_172 = arith.constant dense<0.000000e+00> : vector<16x16xf32>
    %216 = tpu.matmul %199, %215, %cst_172 {dimension_numbers = #tpu.dot_dimension_numbers<[1], [0], [0], [1], [0, 0, 1, 1], [], []>} : vector<16x48xf32>, vector<48x16xf32>, vector<16x16xf32> -> vector<16x16xf32>
    %c1_173 = arith.constant 1 : index
    %c0_174 = arith.constant 0 : index
    %c0_175 = arith.constant 0 : index
    %c0_176 = arith.constant 0 : index
    %217 = vector.load %arg9[%c1_173, %c0_174, %c0_175, %c0_176] : memref<2x3x1x16xf32, #tpu.memory_space<vmem>>, vector<1x1x1x16xf32>
    %218 = vector.shape_cast %217 : vector<1x1x1x16xf32> to vector<1x16xf32>
    %219 = vector.broadcast %218 : vector<1x16xf32> to vector<16x16xf32>
    %220 = arith.addf %216, %219 : vector<16x16xf32>
    %221 = vector.shape_cast %206 : vector<16x16xf32> to vector<2x8x16xf32>
    %cst_177 = arith.constant 2.500000e-01 : f32
    %222 = vector.broadcast %cst_177 : f32 to vector<2x8x16xf32>
    %223 = arith.mulf %221, %222 : vector<2x8x16xf32>
    %224 = vector.shape_cast %213 : vector<16x16xf32> to vector<2x8x16xf32>
    %225 = vector.shape_cast %220 : vector<16x16xf32> to vector<2x8x16xf32>
    "tpu.trace_start"() <{level = 10 : i32, message = "bqd,bkd->bqk"}> : () -> ()
    %cst_178 = arith.constant dense<0.000000e+00> : vector<2x8x8xf32>
    %226 = tpu.matmul %223, %224, %cst_178 {dimension_numbers = #tpu.dot_dimension_numbers<[2], [2], [1], [1], [0, 0, 0, 1, 1, 1], [0], [0]>} : vector<2x8x16xf32>, vector<2x8x16xf32>, vector<2x8x8xf32> -> vector<2x8x8xf32>
    "tpu.trace_stop"() : () -> ()
    %cst_179 = arith.constant dense<0xFF800000> : vector<2x8xf32>
    %227 = vector.multi_reduction <maximumf>, %226, %cst_179 [2] : vector<2x8x8xf32> to vector<2x8xf32>
    %228 = vector.shape_cast %227 : vector<2x8xf32> to vector<2x8x1xf32>
    %229 = vector.broadcast %228 : vector<2x8x1xf32> to vector<2x8x8xf32>
    %230 = arith.subf %226, %229 : vector<2x8x8xf32>
    %231 = math.exp %230 : vector<2x8x8xf32>
    %cst_180 = arith.constant dense<0.000000e+00> : vector<2x8xf32>
    %232 = vector.multi_reduction <add>, %231, %cst_180 [2] : vector<2x8x8xf32> to vector<2x8xf32>
    %233 = vector.shape_cast %232 : vector<2x8xf32> to vector<2x8x1xf32>
    %234 = tpu.reciprocal %233 {approx = true} : vector<2x8x1xf32> -> vector<2x8x1xf32>
    %235 = vector.broadcast %234 : vector<2x8x1xf32> to vector<2x8x8xf32>
    %236 = arith.mulf %231, %235 : vector<2x8x8xf32>
    "tpu.trace_start"() <{level = 10 : i32, message = "bqk,bkd->bqd"}> : () -> ()
    %cst_181 = arith.constant dense<0.000000e+00> : vector<2x8x16xf32>
    %237 = tpu.matmul %236, %225, %cst_181 {dimension_numbers = #tpu.dot_dimension_numbers<[2], [1], [1], [2], [0, 0, 0, 1, 1, 2], [0], [0]>} : vector<2x8x8xf32>, vector<2x8x16xf32>, vector<2x8x16xf32> -> vector<2x8x16xf32>
    "tpu.trace_stop"() : () -> ()
    %238 = vector.shape_cast %237 : vector<2x8x16xf32> to vector<16x16xf32>
    %c1_182 = arith.constant 1 : index
    %c0_183 = arith.constant 0 : index
    %c0_184 = arith.constant 0 : index
    %c0_185 = arith.constant 0 : index
    %239 = vector.load %arg10[%c1_182, %c0_183, %c0_184, %c0_185] : memref<2x3x16x48xf32, #tpu.memory_space<vmem>>, vector<1x1x16x48xf32>
    %240 = vector.shape_cast %239 : vector<1x1x16x48xf32> to vector<16x48xf32>
    %cst_186 = arith.constant dense<0.000000e+00> : vector<16x48xf32>
    %241 = tpu.matmul %238, %240, %cst_186 {dimension_numbers = #tpu.dot_dimension_numbers<[1], [0], [0], [1], [0, 0, 1, 1], [], []>} : vector<16x16xf32>, vector<16x48xf32>, vector<16x48xf32> -> vector<16x48xf32>
    %c1_187 = arith.constant 1 : index
    %c1_188 = arith.constant 1 : index
    %c0_189 = arith.constant 0 : index
    %c0_190 = arith.constant 0 : index
    %242 = vector.load %arg4[%c1_187, %c1_188, %c0_189, %c0_190] : memref<2x3x48x16xf32, #tpu.memory_space<vmem>>, vector<1x1x48x16xf32>
    %243 = vector.shape_cast %242 : vector<1x1x48x16xf32> to vector<48x16xf32>
    %cst_191 = arith.constant dense<0.000000e+00> : vector<16x16xf32>
    %244 = tpu.matmul %199, %243, %cst_191 {dimension_numbers = #tpu.dot_dimension_numbers<[1], [0], [0], [1], [0, 0, 1, 1], [], []>} : vector<16x48xf32>, vector<48x16xf32>, vector<16x16xf32> -> vector<16x16xf32>
    %c1_192 = arith.constant 1 : index
    %c1_193 = arith.constant 1 : index
    %c0_194 = arith.constant 0 : index
    %c0_195 = arith.constant 0 : index
    %245 = vector.load %arg7[%c1_192, %c1_193, %c0_194, %c0_195] : memref<2x3x1x16xf32, #tpu.memory_space<vmem>>, vector<1x1x1x16xf32>
    %246 = vector.shape_cast %245 : vector<1x1x1x16xf32> to vector<1x16xf32>
    %247 = vector.broadcast %246 : vector<1x16xf32> to vector<16x16xf32>
    %248 = arith.addf %244, %247 : vector<16x16xf32>
    %c1_196 = arith.constant 1 : index
    %c1_197 = arith.constant 1 : index
    %c0_198 = arith.constant 0 : index
    %c0_199 = arith.constant 0 : index
    %249 = vector.load %arg5[%c1_196, %c1_197, %c0_198, %c0_199] : memref<2x3x48x16xf32, #tpu.memory_space<vmem>>, vector<1x1x48x16xf32>
    %250 = vector.shape_cast %249 : vector<1x1x48x16xf32> to vector<48x16xf32>
    %cst_200 = arith.constant dense<0.000000e+00> : vector<16x16xf32>
    %251 = tpu.matmul %199, %250, %cst_200 {dimension_numbers = #tpu.dot_dimension_numbers<[1], [0], [0], [1], [0, 0, 1, 1], [], []>} : vector<16x48xf32>, vector<48x16xf32>, vector<16x16xf32> -> vector<16x16xf32>
    %c1_201 = arith.constant 1 : index
    %c1_202 = arith.constant 1 : index
    %c0_203 = arith.constant 0 : index
    %c0_204 = arith.constant 0 : index
    %252 = vector.load %arg8[%c1_201, %c1_202, %c0_203, %c0_204] : memref<2x3x1x16xf32, #tpu.memory_space<vmem>>, vector<1x1x1x16xf32>
    %253 = vector.shape_cast %252 : vector<1x1x1x16xf32> to vector<1x16xf32>
    %254 = vector.broadcast %253 : vector<1x16xf32> to vector<16x16xf32>
    %255 = arith.addf %251, %254 : vector<16x16xf32>
    %c1_205 = arith.constant 1 : index
    %c1_206 = arith.constant 1 : index
    %c0_207 = arith.constant 0 : index
    %c0_208 = arith.constant 0 : index
    %256 = vector.load %arg6[%c1_205, %c1_206, %c0_207, %c0_208] : memref<2x3x48x16xf32, #tpu.memory_space<vmem>>, vector<1x1x48x16xf32>
    %257 = vector.shape_cast %256 : vector<1x1x48x16xf32> to vector<48x16xf32>
    %cst_209 = arith.constant dense<0.000000e+00> : vector<16x16xf32>
    %258 = tpu.matmul %199, %257, %cst_209 {dimension_numbers = #tpu.dot_dimension_numbers<[1], [0], [0], [1], [0, 0, 1, 1], [], []>} : vector<16x48xf32>, vector<48x16xf32>, vector<16x16xf32> -> vector<16x16xf32>
    %c1_210 = arith.constant 1 : index
    %c1_211 = arith.constant 1 : index
    %c0_212 = arith.constant 0 : index
    %c0_213 = arith.constant 0 : index
    %259 = vector.load %arg9[%c1_210, %c1_211, %c0_212, %c0_213] : memref<2x3x1x16xf32, #tpu.memory_space<vmem>>, vector<1x1x1x16xf32>
    %260 = vector.shape_cast %259 : vector<1x1x1x16xf32> to vector<1x16xf32>
    %261 = vector.broadcast %260 : vector<1x16xf32> to vector<16x16xf32>
    %262 = arith.addf %258, %261 : vector<16x16xf32>
    %263 = vector.shape_cast %248 : vector<16x16xf32> to vector<2x8x16xf32>
    %cst_214 = arith.constant 2.500000e-01 : f32
    %264 = vector.broadcast %cst_214 : f32 to vector<2x8x16xf32>
    %265 = arith.mulf %263, %264 : vector<2x8x16xf32>
    %266 = vector.shape_cast %255 : vector<16x16xf32> to vector<2x8x16xf32>
    %267 = vector.shape_cast %262 : vector<16x16xf32> to vector<2x8x16xf32>
    "tpu.trace_start"() <{level = 10 : i32, message = "bqd,bkd->bqk"}> : () -> ()
    %cst_215 = arith.constant dense<0.000000e+00> : vector<2x8x8xf32>
    %268 = tpu.matmul %265, %266, %cst_215 {dimension_numbers = #tpu.dot_dimension_numbers<[2], [2], [1], [1], [0, 0, 0, 1, 1, 1], [0], [0]>} : vector<2x8x16xf32>, vector<2x8x16xf32>, vector<2x8x8xf32> -> vector<2x8x8xf32>
    "tpu.trace_stop"() : () -> ()
    %cst_216 = arith.constant dense<0xFF800000> : vector<2x8xf32>
    %269 = vector.multi_reduction <maximumf>, %268, %cst_216 [2] : vector<2x8x8xf32> to vector<2x8xf32>
    %270 = vector.shape_cast %269 : vector<2x8xf32> to vector<2x8x1xf32>
    %271 = vector.broadcast %270 : vector<2x8x1xf32> to vector<2x8x8xf32>
    %272 = arith.subf %268, %271 : vector<2x8x8xf32>
    %273 = math.exp %272 : vector<2x8x8xf32>
    %cst_217 = arith.constant dense<0.000000e+00> : vector<2x8xf32>
    %274 = vector.multi_reduction <add>, %273, %cst_217 [2] : vector<2x8x8xf32> to vector<2x8xf32>
    %275 = vector.shape_cast %274 : vector<2x8xf32> to vector<2x8x1xf32>
    %276 = tpu.reciprocal %275 {approx = true} : vector<2x8x1xf32> -> vector<2x8x1xf32>
    %277 = vector.broadcast %276 : vector<2x8x1xf32> to vector<2x8x8xf32>
    %278 = arith.mulf %273, %277 : vector<2x8x8xf32>
    "tpu.trace_start"() <{level = 10 : i32, message = "bqk,bkd->bqd"}> : () -> ()
    %cst_218 = arith.constant dense<0.000000e+00> : vector<2x8x16xf32>
    %279 = tpu.matmul %278, %267, %cst_218 {dimension_numbers = #tpu.dot_dimension_numbers<[2], [1], [1], [2], [0, 0, 0, 1, 1, 2], [0], [0]>} : vector<2x8x8xf32>, vector<2x8x16xf32>, vector<2x8x16xf32> -> vector<2x8x16xf32>
    "tpu.trace_stop"() : () -> ()
    %280 = vector.shape_cast %279 : vector<2x8x16xf32> to vector<16x16xf32>
    %c1_219 = arith.constant 1 : index
    %c1_220 = arith.constant 1 : index
    %c0_221 = arith.constant 0 : index
    %c0_222 = arith.constant 0 : index
    %281 = vector.load %arg10[%c1_219, %c1_220, %c0_221, %c0_222] : memref<2x3x16x48xf32, #tpu.memory_space<vmem>>, vector<1x1x16x48xf32>
    %282 = vector.shape_cast %281 : vector<1x1x16x48xf32> to vector<16x48xf32>
    %cst_223 = arith.constant dense<0.000000e+00> : vector<16x48xf32>
    %283 = tpu.matmul %280, %282, %cst_223 {dimension_numbers = #tpu.dot_dimension_numbers<[1], [0], [0], [1], [0, 0, 1, 1], [], []>} : vector<16x16xf32>, vector<16x48xf32>, vector<16x48xf32> -> vector<16x48xf32>
    %284 = arith.addf %241, %283 : vector<16x48xf32>
    %c1_224 = arith.constant 1 : index
    %c2_225 = arith.constant 2 : index
    %c0_226 = arith.constant 0 : index
    %c0_227 = arith.constant 0 : index
    %285 = vector.load %arg4[%c1_224, %c2_225, %c0_226, %c0_227] : memref<2x3x48x16xf32, #tpu.memory_space<vmem>>, vector<1x1x48x16xf32>
    %286 = vector.shape_cast %285 : vector<1x1x48x16xf32> to vector<48x16xf32>
    %cst_228 = arith.constant dense<0.000000e+00> : vector<16x16xf32>
    %287 = tpu.matmul %199, %286, %cst_228 {dimension_numbers = #tpu.dot_dimension_numbers<[1], [0], [0], [1], [0, 0, 1, 1], [], []>} : vector<16x48xf32>, vector<48x16xf32>, vector<16x16xf32> -> vector<16x16xf32>
    %c1_229 = arith.constant 1 : index
    %c2_230 = arith.constant 2 : index
    %c0_231 = arith.constant 0 : index
    %c0_232 = arith.constant 0 : index
    %288 = vector.load %arg7[%c1_229, %c2_230, %c0_231, %c0_232] : memref<2x3x1x16xf32, #tpu.memory_space<vmem>>, vector<1x1x1x16xf32>
    %289 = vector.shape_cast %288 : vector<1x1x1x16xf32> to vector<1x16xf32>
    %290 = vector.broadcast %289 : vector<1x16xf32> to vector<16x16xf32>
    %291 = arith.addf %287, %290 : vector<16x16xf32>
    %c1_233 = arith.constant 1 : index
    %c2_234 = arith.constant 2 : index
    %c0_235 = arith.constant 0 : index
    %c0_236 = arith.constant 0 : index
    %292 = vector.load %arg5[%c1_233, %c2_234, %c0_235, %c0_236] : memref<2x3x48x16xf32, #tpu.memory_space<vmem>>, vector<1x1x48x16xf32>
    %293 = vector.shape_cast %292 : vector<1x1x48x16xf32> to vector<48x16xf32>
    %cst_237 = arith.constant dense<0.000000e+00> : vector<16x16xf32>
    %294 = tpu.matmul %199, %293, %cst_237 {dimension_numbers = #tpu.dot_dimension_numbers<[1], [0], [0], [1], [0, 0, 1, 1], [], []>} : vector<16x48xf32>, vector<48x16xf32>, vector<16x16xf32> -> vector<16x16xf32>
    %c1_238 = arith.constant 1 : index
    %c2_239 = arith.constant 2 : index
    %c0_240 = arith.constant 0 : index
    %c0_241 = arith.constant 0 : index
    %295 = vector.load %arg8[%c1_238, %c2_239, %c0_240, %c0_241] : memref<2x3x1x16xf32, #tpu.memory_space<vmem>>, vector<1x1x1x16xf32>
    %296 = vector.shape_cast %295 : vector<1x1x1x16xf32> to vector<1x16xf32>
    %297 = vector.broadcast %296 : vector<1x16xf32> to vector<16x16xf32>
    %298 = arith.addf %294, %297 : vector<16x16xf32>
    %c1_242 = arith.constant 1 : index
    %c2_243 = arith.constant 2 : index
    %c0_244 = arith.constant 0 : index
    %c0_245 = arith.constant 0 : index
    %299 = vector.load %arg6[%c1_242, %c2_243, %c0_244, %c0_245] : memref<2x3x48x16xf32, #tpu.memory_space<vmem>>, vector<1x1x48x16xf32>
    %300 = vector.shape_cast %299 : vector<1x1x48x16xf32> to vector<48x16xf32>
    %cst_246 = arith.constant dense<0.000000e+00> : vector<16x16xf32>
    %301 = tpu.matmul %199, %300, %cst_246 {dimension_numbers = #tpu.dot_dimension_numbers<[1], [0], [0], [1], [0, 0, 1, 1], [], []>} : vector<16x48xf32>, vector<48x16xf32>, vector<16x16xf32> -> vector<16x16xf32>
    %c1_247 = arith.constant 1 : index
    %c2_248 = arith.constant 2 : index
    %c0_249 = arith.constant 0 : index
    %c0_250 = arith.constant 0 : index
    %302 = vector.load %arg9[%c1_247, %c2_248, %c0_249, %c0_250] : memref<2x3x1x16xf32, #tpu.memory_space<vmem>>, vector<1x1x1x16xf32>
    %303 = vector.shape_cast %302 : vector<1x1x1x16xf32> to vector<1x16xf32>
    %304 = vector.broadcast %303 : vector<1x16xf32> to vector<16x16xf32>
    %305 = arith.addf %301, %304 : vector<16x16xf32>
    %306 = vector.shape_cast %291 : vector<16x16xf32> to vector<2x8x16xf32>
    %cst_251 = arith.constant 2.500000e-01 : f32
    %307 = vector.broadcast %cst_251 : f32 to vector<2x8x16xf32>
    %308 = arith.mulf %306, %307 : vector<2x8x16xf32>
    %309 = vector.shape_cast %298 : vector<16x16xf32> to vector<2x8x16xf32>
    %310 = vector.shape_cast %305 : vector<16x16xf32> to vector<2x8x16xf32>
    "tpu.trace_start"() <{level = 10 : i32, message = "bqd,bkd->bqk"}> : () -> ()
    %cst_252 = arith.constant dense<0.000000e+00> : vector<2x8x8xf32>
    %311 = tpu.matmul %308, %309, %cst_252 {dimension_numbers = #tpu.dot_dimension_numbers<[2], [2], [1], [1], [0, 0, 0, 1, 1, 1], [0], [0]>} : vector<2x8x16xf32>, vector<2x8x16xf32>, vector<2x8x8xf32> -> vector<2x8x8xf32>
    "tpu.trace_stop"() : () -> ()
    %cst_253 = arith.constant dense<0xFF800000> : vector<2x8xf32>
    %312 = vector.multi_reduction <maximumf>, %311, %cst_253 [2] : vector<2x8x8xf32> to vector<2x8xf32>
    %313 = vector.shape_cast %312 : vector<2x8xf32> to vector<2x8x1xf32>
    %314 = vector.broadcast %313 : vector<2x8x1xf32> to vector<2x8x8xf32>
    %315 = arith.subf %311, %314 : vector<2x8x8xf32>
    %316 = math.exp %315 : vector<2x8x8xf32>
    %cst_254 = arith.constant dense<0.000000e+00> : vector<2x8xf32>
    %317 = vector.multi_reduction <add>, %316, %cst_254 [2] : vector<2x8x8xf32> to vector<2x8xf32>
    %318 = vector.shape_cast %317 : vector<2x8xf32> to vector<2x8x1xf32>
    %319 = tpu.reciprocal %318 {approx = true} : vector<2x8x1xf32> -> vector<2x8x1xf32>
    %320 = vector.broadcast %319 : vector<2x8x1xf32> to vector<2x8x8xf32>
    %321 = arith.mulf %316, %320 : vector<2x8x8xf32>
    "tpu.trace_start"() <{level = 10 : i32, message = "bqk,bkd->bqd"}> : () -> ()
    %cst_255 = arith.constant dense<0.000000e+00> : vector<2x8x16xf32>
    %322 = tpu.matmul %321, %310, %cst_255 {dimension_numbers = #tpu.dot_dimension_numbers<[2], [1], [1], [2], [0, 0, 0, 1, 1, 2], [0], [0]>} : vector<2x8x8xf32>, vector<2x8x16xf32>, vector<2x8x16xf32> -> vector<2x8x16xf32>
    "tpu.trace_stop"() : () -> ()
    %323 = vector.shape_cast %322 : vector<2x8x16xf32> to vector<16x16xf32>
    %c1_256 = arith.constant 1 : index
    %c2_257 = arith.constant 2 : index
    %c0_258 = arith.constant 0 : index
    %c0_259 = arith.constant 0 : index
    %324 = vector.load %arg10[%c1_256, %c2_257, %c0_258, %c0_259] : memref<2x3x16x48xf32, #tpu.memory_space<vmem>>, vector<1x1x16x48xf32>
    %325 = vector.shape_cast %324 : vector<1x1x16x48xf32> to vector<16x48xf32>
    %cst_260 = arith.constant dense<0.000000e+00> : vector<16x48xf32>
    %326 = tpu.matmul %323, %325, %cst_260 {dimension_numbers = #tpu.dot_dimension_numbers<[1], [0], [0], [1], [0, 0, 1, 1], [], []>} : vector<16x16xf32>, vector<16x48xf32>, vector<16x48xf32> -> vector<16x48xf32>
    %327 = arith.addf %284, %326 : vector<16x48xf32>
    %c1_261 = arith.constant 1 : index
    %c0_262 = arith.constant 0 : index
    %c0_263 = arith.constant 0 : index
    %328 = vector.load %arg11[%c1_261, %c0_262, %c0_263] : memref<2x1x48xf32, #tpu.memory_space<vmem>>, vector<1x1x48xf32>
    %329 = vector.shape_cast %328 : vector<1x1x48xf32> to vector<1x48xf32>
    %330 = vector.broadcast %329 : vector<1x48xf32> to vector<16x48xf32>
    %331 = arith.addf %327, %330 : vector<16x48xf32>
    %332 = arith.addf %199, %331 : vector<16x48xf32>
    %c1_264 = arith.constant 1 : index
    %c0_265 = arith.constant 0 : index
    %c0_266 = arith.constant 0 : index
    %333 = vector.load %arg16[%c1_264, %c0_265, %c0_266] : memref<2x1x48xf32, #tpu.memory_space<vmem>>, vector<1x1x48xf32>
    %334 = vector.shape_cast %333 : vector<1x1x48xf32> to vector<1x48xf32>
    %c1_267 = arith.constant 1 : index
    %c0_268 = arith.constant 0 : index
    %c0_269 = arith.constant 0 : index
    %335 = vector.load %arg17[%c1_267, %c0_268, %c0_269] : memref<2x1x48xf32, #tpu.memory_space<vmem>>, vector<1x1x48xf32>
    %336 = vector.shape_cast %335 : vector<1x1x48xf32> to vector<1x48xf32>
    %cst_270 = arith.constant dense<0.000000e+00> : vector<16xf32>
    %337 = vector.multi_reduction <add>, %332, %cst_270 [1] : vector<16x48xf32> to vector<16xf32>
    %338 = vector.shape_cast %337 : vector<16xf32> to vector<16x1xf32>
    %cst_271 = arith.constant 4.800000e+01 : f32
    %339 = vector.broadcast %cst_271 : f32 to vector<16x1xf32>
    %340 = arith.divf %338, %339 : vector<16x1xf32>
    %341 = vector.broadcast %340 : vector<16x1xf32> to vector<16x48xf32>
    %342 = arith.subf %332, %341 : vector<16x48xf32>
    %343 = arith.mulf %342, %342 : vector<16x48xf32>
    %cst_272 = arith.constant dense<0.000000e+00> : vector<16xf32>
    %344 = vector.multi_reduction <add>, %343, %cst_272 [1] : vector<16x48xf32> to vector<16xf32>
    %345 = vector.shape_cast %344 : vector<16xf32> to vector<16x1xf32>
    %cst_273 = arith.constant 4.800000e+01 : f32
    %346 = vector.broadcast %cst_273 : f32 to vector<16x1xf32>
    %347 = arith.divf %345, %346 : vector<16x1xf32>
    %cst_274 = arith.constant 9.99999974E-6 : f32
    %348 = vector.broadcast %cst_274 : f32 to vector<16x1xf32>
    %349 = arith.addf %347, %348 : vector<16x1xf32>
    %350 = math.rsqrt %349 : vector<16x1xf32>
    %351 = vector.broadcast %350 : vector<16x1xf32> to vector<16x48xf32>
    %352 = arith.mulf %342, %351 : vector<16x48xf32>
    %353 = vector.broadcast %334 : vector<1x48xf32> to vector<16x48xf32>
    %354 = arith.mulf %352, %353 : vector<16x48xf32>
    %355 = vector.broadcast %336 : vector<1x48xf32> to vector<16x48xf32>
    %356 = arith.addf %354, %355 : vector<16x48xf32>
    %c1_275 = arith.constant 1 : index
    %c0_276 = arith.constant 0 : index
    %c0_277 = arith.constant 0 : index
    %357 = vector.load %arg12[%c1_275, %c0_276, %c0_277] : memref<2x48x64xf32, #tpu.memory_space<vmem>>, vector<1x48x64xf32>
    %358 = vector.shape_cast %357 : vector<1x48x64xf32> to vector<48x64xf32>
    %cst_278 = arith.constant dense<0.000000e+00> : vector<16x64xf32>
    %359 = tpu.matmul %356, %358, %cst_278 {dimension_numbers = #tpu.dot_dimension_numbers<[1], [0], [0], [1], [0, 0, 1, 1], [], []>} : vector<16x48xf32>, vector<48x64xf32>, vector<16x64xf32> -> vector<16x64xf32>
    %c1_279 = arith.constant 1 : index
    %c0_280 = arith.constant 0 : index
    %c0_281 = arith.constant 0 : index
    %360 = vector.load %arg13[%c1_279, %c0_280, %c0_281] : memref<2x1x64xf32, #tpu.memory_space<vmem>>, vector<1x1x64xf32>
    %361 = vector.shape_cast %360 : vector<1x1x64xf32> to vector<1x64xf32>
    %362 = vector.broadcast %361 : vector<1x64xf32> to vector<16x64xf32>
    %363 = arith.addf %359, %362 : vector<16x64xf32>
    %cst_282 = arith.constant 0.000000e+00 : f32
    %364 = vector.broadcast %cst_282 : f32 to vector<16x64xf32>
    %365 = arith.maximumf %363, %364 : vector<16x64xf32>
    %c1_283 = arith.constant 1 : index
    %c0_284 = arith.constant 0 : index
    %c0_285 = arith.constant 0 : index
    %366 = vector.load %arg14[%c1_283, %c0_284, %c0_285] : memref<2x64x48xf32, #tpu.memory_space<vmem>>, vector<1x64x48xf32>
    %367 = vector.shape_cast %366 : vector<1x64x48xf32> to vector<64x48xf32>
    %cst_286 = arith.constant dense<0.000000e+00> : vector<16x48xf32>
    %368 = tpu.matmul %365, %367, %cst_286 {dimension_numbers = #tpu.dot_dimension_numbers<[1], [0], [0], [1], [0, 0, 1, 1], [], []>} : vector<16x64xf32>, vector<64x48xf32>, vector<16x48xf32> -> vector<16x48xf32>
    %c1_287 = arith.constant 1 : index
    %c0_288 = arith.constant 0 : index
    %c0_289 = arith.constant 0 : index
    %369 = vector.load %arg15[%c1_287, %c0_288, %c0_289] : memref<2x1x48xf32, #tpu.memory_space<vmem>>, vector<1x1x48xf32>
    %370 = vector.shape_cast %369 : vector<1x1x48xf32> to vector<1x48xf32>
    %371 = vector.broadcast %370 : vector<1x48xf32> to vector<16x48xf32>
    %372 = arith.addf %368, %371 : vector<16x48xf32>
    %373 = arith.addf %356, %372 : vector<16x48xf32>
    %c1_290 = arith.constant 1 : index
    %c0_291 = arith.constant 0 : index
    %c0_292 = arith.constant 0 : index
    %374 = vector.load %arg18[%c1_290, %c0_291, %c0_292] : memref<2x1x48xf32, #tpu.memory_space<vmem>>, vector<1x1x48xf32>
    %375 = vector.shape_cast %374 : vector<1x1x48xf32> to vector<1x48xf32>
    %c1_293 = arith.constant 1 : index
    %c0_294 = arith.constant 0 : index
    %c0_295 = arith.constant 0 : index
    %376 = vector.load %arg19[%c1_293, %c0_294, %c0_295] : memref<2x1x48xf32, #tpu.memory_space<vmem>>, vector<1x1x48xf32>
    %377 = vector.shape_cast %376 : vector<1x1x48xf32> to vector<1x48xf32>
    %cst_296 = arith.constant dense<0.000000e+00> : vector<16xf32>
    %378 = vector.multi_reduction <add>, %373, %cst_296 [1] : vector<16x48xf32> to vector<16xf32>
    %379 = vector.shape_cast %378 : vector<16xf32> to vector<16x1xf32>
    %cst_297 = arith.constant 4.800000e+01 : f32
    %380 = vector.broadcast %cst_297 : f32 to vector<16x1xf32>
    %381 = arith.divf %379, %380 : vector<16x1xf32>
    %382 = vector.broadcast %381 : vector<16x1xf32> to vector<16x48xf32>
    %383 = arith.subf %373, %382 : vector<16x48xf32>
    %384 = arith.mulf %383, %383 : vector<16x48xf32>
    %cst_298 = arith.constant dense<0.000000e+00> : vector<16xf32>
    %385 = vector.multi_reduction <add>, %384, %cst_298 [1] : vector<16x48xf32> to vector<16xf32>
    %386 = vector.shape_cast %385 : vector<16xf32> to vector<16x1xf32>
    %cst_299 = arith.constant 4.800000e+01 : f32
    %387 = vector.broadcast %cst_299 : f32 to vector<16x1xf32>
    %388 = arith.divf %386, %387 : vector<16x1xf32>
    %cst_300 = arith.constant 9.99999974E-6 : f32
    %389 = vector.broadcast %cst_300 : f32 to vector<16x1xf32>
    %390 = arith.addf %388, %389 : vector<16x1xf32>
    %391 = math.rsqrt %390 : vector<16x1xf32>
    %392 = vector.broadcast %391 : vector<16x1xf32> to vector<16x48xf32>
    %393 = arith.mulf %383, %392 : vector<16x48xf32>
    %394 = vector.broadcast %375 : vector<1x48xf32> to vector<16x48xf32>
    %395 = arith.mulf %393, %394 : vector<16x48xf32>
    %396 = vector.broadcast %377 : vector<1x48xf32> to vector<16x48xf32>
    %397 = arith.addf %395, %396 : vector<16x48xf32>
    %398 = vector.shape_cast %397 : vector<16x48xf32> to vector<2x8x48xf32>
    %cst_301 = arith.constant dense<0.000000e+00> : vector<2x48xf32>
    %399 = vector.multi_reduction <add>, %398, %cst_301 [1] : vector<2x8x48xf32> to vector<2x48xf32>
    %cst_302 = arith.constant 8.000000e+00 : f32
    %400 = vector.broadcast %cst_302 : f32 to vector<2x48xf32>
    %401 = arith.divf %399, %400 : vector<2x48xf32>
    %c0_303 = arith.constant 0 : index
    %c0_304 = arith.constant 0 : index
    %402 = vector.load %arg2[%c0_303, %c0_304] : memref<2x48xf32, #tpu.memory_space<vmem>>, vector<2x48xf32>
    %c0_305 = arith.constant 0 : index
    %c0_306 = arith.constant 0 : index
    %403 = vector.load %arg3[%c0_305, %c0_306] : memref<2x48xf32, #tpu.memory_space<vmem>>, vector<2x48xf32>
    %c0_307 = arith.constant 0 : index
    %c0_308 = arith.constant 0 : index
    %404 = vector.load %arg20[%c0_307, %c0_308] : memref<48x1xf32, #tpu.memory_space<vmem>>, vector<48x1xf32>
    %cst_309 = arith.constant dense<0.000000e+00> : vector<2x1xf32>
    %405 = tpu.matmul %401, %404, %cst_309 {dimension_numbers = #tpu.dot_dimension_numbers<[1], [0], [0], [1], [0, 0, 1, 1], [], []>} : vector<2x48xf32>, vector<48x1xf32>, vector<2x1xf32> -> vector<2x1xf32>
    %c0_310 = arith.constant 0 : index
    %c0_311 = arith.constant 0 : index
    %406 = vector.load %arg21[%c0_310, %c0_311] : memref<48x1xf32, #tpu.memory_space<vmem>>, vector<48x1xf32>
    %cst_312 = arith.constant dense<0.000000e+00> : vector<2x1xf32>
    %407 = tpu.matmul %402, %406, %cst_312 {dimension_numbers = #tpu.dot_dimension_numbers<[1], [0], [0], [1], [0, 0, 1, 1], [], []>} : vector<2x48xf32>, vector<48x1xf32>, vector<2x1xf32> -> vector<2x1xf32>
    %408 = arith.addf %405, %407 : vector<2x1xf32>
    %c0_313 = arith.constant 0 : index
    %c0_314 = arith.constant 0 : index
    %409 = vector.load %arg22[%c0_313, %c0_314] : memref<48x1xf32, #tpu.memory_space<vmem>>, vector<48x1xf32>
    %cst_315 = arith.constant dense<0.000000e+00> : vector<2x1xf32>
    %410 = tpu.matmul %403, %409, %cst_315 {dimension_numbers = #tpu.dot_dimension_numbers<[1], [0], [0], [1], [0, 0, 1, 1], [], []>} : vector<2x48xf32>, vector<48x1xf32>, vector<2x1xf32> -> vector<2x1xf32>
    %411 = arith.addf %408, %410 : vector<2x1xf32>
    %c0_316 = arith.constant 0 : index
    %c0_317 = arith.constant 0 : index
    %412 = vector.load %arg23[%c0_316, %c0_317] : memref<1x1xf32, #tpu.memory_space<vmem>>, vector<1x1xf32>
    %413 = vector.broadcast %412 : vector<1x1xf32> to vector<2x1xf32>
    %414 = arith.addf %411, %413 : vector<2x1xf32>
    %cst_318 = arith.constant 0.000000e+00 : f32
    %415 = vector.broadcast %cst_318 : f32 to vector<2x1xf32>
    %416 = arith.maximumf %414, %415 : vector<2x1xf32>
    %c0_319 = arith.constant 0 : index
    %c0_320 = arith.constant 0 : index
    %417 = vector.load %arg24[%c0_319, %c0_320] : memref<2x1xf32, #tpu.memory_space<vmem>>, vector<2x1xf32>
    tpu.vector_store %arg24[%c0_319, %c0_320], %416 {strides = array<i32>} : memref<2x1xf32, #tpu.memory_space<vmem>>, vector<2x1xf32>,
    return
  }
  func.func @transform_0(%arg0: i32) -> (i32, i32, i32) {
    %c0_i32 = arith.constant 0 : i32
    %c0_i32_0 = arith.constant 0 : i32
    %c0_i32_1 = arith.constant 0 : i32
    return %arg0, %c0_i32, %c0_i32_0 : i32, i32, i32
  }
  func.func @transform_1(%arg0: i32) -> (i32, i32) {
    %c0_i32 = arith.constant 0 : i32
    %c0_i32_0 = arith.constant 0 : i32
    return %arg0, %c0_i32 : i32, i32
  }
  func.func @transform_2(%arg0: i32) -> (i32, i32) {
    %c0_i32 = arith.constant 0 : i32
    %c0_i32_0 = arith.constant 0 : i32
    return %arg0, %c0_i32 : i32, i32
  }
  func.func @transform_3(%arg0: i32) -> (i32, i32, i32, i32) {
    %c0_i32 = arith.constant 0 : i32
    %c0_i32_0 = arith.constant 0 : i32
    %c0_i32_1 = arith.constant 0 : i32
    %c0_i32_2 = arith.constant 0 : i32
    %c0_i32_3 = arith.constant 0 : i32
    return %c0_i32, %c0_i32_0, %c0_i32_1, %c0_i32_2 : i32, i32, i32, i32
  }
  func.func @transform_4(%arg0: i32) -> (i32, i32, i32, i32) {
    %c0_i32 = arith.constant 0 : i32
    %c0_i32_0 = arith.constant 0 : i32
    %c0_i32_1 = arith.constant 0 : i32
    %c0_i32_2 = arith.constant 0 : i32
    %c0_i32_3 = arith.constant 0 : i32
    return %c0_i32, %c0_i32_0, %c0_i32_1, %c0_i32_2 : i32, i32, i32, i32
  }
  func.func @transform_5(%arg0: i32) -> (i32, i32, i32, i32) {
    %c0_i32 = arith.constant 0 : i32
    %c0_i32_0 = arith.constant 0 : i32
    %c0_i32_1 = arith.constant 0 : i32
    %c0_i32_2 = arith.constant 0 : i32
    %c0_i32_3 = arith.constant 0 : i32
    return %c0_i32, %c0_i32_0, %c0_i32_1, %c0_i32_2 : i32, i32, i32, i32
  }
  func.func @transform_6(%arg0: i32) -> (i32, i32, i32, i32) {
    %c0_i32 = arith.constant 0 : i32
    %c0_i32_0 = arith.constant 0 : i32
    %c0_i32_1 = arith.constant 0 : i32
    %c0_i32_2 = arith.constant 0 : i32
    %c0_i32_3 = arith.constant 0 : i32
    return %c0_i32, %c0_i32_0, %c0_i32_1, %c0_i32_2 : i32, i32, i32, i32
  }
  func.func @transform_7(%arg0: i32) -> (i32, i32, i32, i32) {
    %c0_i32 = arith.constant 0 : i32
    %c0_i32_0 = arith.constant 0 : i32
    %c0_i32_1 = arith.constant 0 : i32
    %c0_i32_2 = arith.constant 0 : i32
    %c0_i32_3 = arith.constant 0 : i32
    return %c0_i32, %c0_i32_0, %c0_i32_1, %c0_i32_2 : i32, i32, i32, i32
  }
  func.func @transform_8(%arg0: i32) -> (i32, i32, i32, i32) {
    %c0_i32 = arith.constant 0 : i32
    %c0_i32_0 = arith.constant 0 : i32
    %c0_i32_1 = arith.constant 0 : i32
    %c0_i32_2 = arith.constant 0 : i32
    %c0_i32_3 = arith.constant 0 : i32
    return %c0_i32, %c0_i32_0, %c0_i32_1, %c0_i32_2 : i32, i32, i32, i32
  }
  func.func @transform_9(%arg0: i32) -> (i32, i32, i32, i32) {
    %c0_i32 = arith.constant 0 : i32
    %c0_i32_0 = arith.constant 0 : i32
    %c0_i32_1 = arith.constant 0 : i32
    %c0_i32_2 = arith.constant 0 : i32
    %c0_i32_3 = arith.constant 0 : i32
    return %c0_i32, %c0_i32_0, %c0_i32_1, %c0_i32_2 : i32, i32, i32, i32
  }
  func.func @transform_10(%arg0: i32) -> (i32, i32, i32) {
    %c0_i32 = arith.constant 0 : i32
    %c0_i32_0 = arith.constant 0 : i32
    %c0_i32_1 = arith.constant 0 : i32
    %c0_i32_2 = arith.constant 0 : i32
    return %c0_i32, %c0_i32_0, %c0_i32_1 : i32, i32, i32
  }
  func.func @transform_11(%arg0: i32) -> (i32, i32, i32) {
    %c0_i32 = arith.constant 0 : i32
    %c0_i32_0 = arith.constant 0 : i32
    %c0_i32_1 = arith.constant 0 : i32
    %c0_i32_2 = arith.constant 0 : i32
    return %c0_i32, %c0_i32_0, %c0_i32_1 : i32, i32, i32
  }
  func.func @transform_12(%arg0: i32) -> (i32, i32, i32) {
    %c0_i32 = arith.constant 0 : i32
    %c0_i32_0 = arith.constant 0 : i32
    %c0_i32_1 = arith.constant 0 : i32
    %c0_i32_2 = arith.constant 0 : i32
    return %c0_i32, %c0_i32_0, %c0_i32_1 : i32, i32, i32
  }
  func.func @transform_13(%arg0: i32) -> (i32, i32, i32) {
    %c0_i32 = arith.constant 0 : i32
    %c0_i32_0 = arith.constant 0 : i32
    %c0_i32_1 = arith.constant 0 : i32
    %c0_i32_2 = arith.constant 0 : i32
    return %c0_i32, %c0_i32_0, %c0_i32_1 : i32, i32, i32
  }
  func.func @transform_14(%arg0: i32) -> (i32, i32, i32) {
    %c0_i32 = arith.constant 0 : i32
    %c0_i32_0 = arith.constant 0 : i32
    %c0_i32_1 = arith.constant 0 : i32
    %c0_i32_2 = arith.constant 0 : i32
    return %c0_i32, %c0_i32_0, %c0_i32_1 : i32, i32, i32
  }
  func.func @transform_15(%arg0: i32) -> (i32, i32, i32) {
    %c0_i32 = arith.constant 0 : i32
    %c0_i32_0 = arith.constant 0 : i32
    %c0_i32_1 = arith.constant 0 : i32
    %c0_i32_2 = arith.constant 0 : i32
    return %c0_i32, %c0_i32_0, %c0_i32_1 : i32, i32, i32
  }
  func.func @transform_16(%arg0: i32) -> (i32, i32, i32) {
    %c0_i32 = arith.constant 0 : i32
    %c0_i32_0 = arith.constant 0 : i32
    %c0_i32_1 = arith.constant 0 : i32
    %c0_i32_2 = arith.constant 0 : i32
    return %c0_i32, %c0_i32_0, %c0_i32_1 : i32, i32, i32
  }
  func.func @transform_17(%arg0: i32) -> (i32, i32, i32) {
    %c0_i32 = arith.constant 0 : i32
    %c0_i32_0 = arith.constant 0 : i32
    %c0_i32_1 = arith.constant 0 : i32
    %c0_i32_2 = arith.constant 0 : i32
    return %c0_i32, %c0_i32_0, %c0_i32_1 : i32, i32, i32
  }
  func.func @transform_18(%arg0: i32) -> (i32, i32, i32) {
    %c0_i32 = arith.constant 0 : i32
    %c0_i32_0 = arith.constant 0 : i32
    %c0_i32_1 = arith.constant 0 : i32
    %c0_i32_2 = arith.constant 0 : i32
    return %c0_i32, %c0_i32_0, %c0_i32_1 : i32, i32, i32
  }
  func.func @transform_19(%arg0: i32) -> (i32, i32) {
    %c0_i32 = arith.constant 0 : i32
    %c0_i32_0 = arith.constant 0 : i32
    %c0_i32_1 = arith.constant 0 : i32
    return %c0_i32, %c0_i32_0 : i32, i32
  }
  func.func @transform_20(%arg0: i32) -> (i32, i32) {
    %c0_i32 = arith.constant 0 : i32
    %c0_i32_0 = arith.constant 0 : i32
    %c0_i32_1 = arith.constant 0 : i32
    return %c0_i32, %c0_i32_0 : i32, i32
  }
  func.func @transform_21(%arg0: i32) -> (i32, i32) {
    %c0_i32 = arith.constant 0 : i32
    %c0_i32_0 = arith.constant 0 : i32
    %c0_i32_1 = arith.constant 0 : i32
    return %c0_i32, %c0_i32_0 : i32, i32
  }
  func.func @transform_22(%arg0: i32) -> (i32, i32) {
    %c0_i32 = arith.constant 0 : i32
    %c0_i32_0 = arith.constant 0 : i32
    %c0_i32_1 = arith.constant 0 : i32
    return %c0_i32, %c0_i32_0 : i32, i32
  }
  func.func @transform_23(%arg0: i32) -> (i32, i32) {
    %c0_i32 = arith.constant 0 : i32
    %c0_i32_0 = arith.constant 0 : i32
    return %arg0, %c0_i32 : i32, i32
  }
}

</mosaic_0001>

<bundles_post_ra>
// kernel: _lambda_.1
= control target key start
LH: loop header
LB: loop body
LE: loop exit
PB: predicated region body
PF: predicated region fallthrough
CT: control target
= control target key end

     0   :  { %vm91_vm0 = vcmask 392192   ;;  %v6498_v20 = vmov 0.0   ;;  %vm6499_vm1 = vmmov 0   ;;  %vm351_vm2 = vcmask 130048   ;;  %s7518_s3 = inlined_call_operand.vmem [shape: f32[2,3,48,16], index: 3, kind: input, shape index: {}]   ;;  %s7519_s4 = inlined_call_operand.vmem [shape: f32[2,3,48,16], index: 4, kind: input, shape index: {}]   ;;  %s7520_s0 = inlined_call_operand.vmem [shape: f32[2,8,48], index: 0, kind: input, shape index: {}]   ;;  %s7521_s6 = inlined_call_operand.vmem [shape: f32[2,3,1,16], index: 6, kind: input, shape index: {}]   ;;  %s7522_s7 = inlined_call_operand.vmem [shape: f32[2,3,1,16], index: 7, kind: input, shape index: {}]   ;;  %s7523_s5 = inlined_call_operand.vmem [shape: f32[2,3,48,16], index: 5, kind: input, shape index: {}]   ;;  %s7524_s8 = inlined_call_operand.vmem [shape: f32[2,3,1,16], index: 8, kind: input, shape index: {}]   ;;  %s7525_s9 = inlined_call_operand.vmem [shape: f32[2,3,16,48], index: 9, kind: input, shape index: {}]   ;;  %s7526_s10 = inlined_call_operand.vmem [shape: f32[2,1,48], index: 10, kind: input, shape index: {}]   ;;  %s7527_s11 = inlined_call_operand.vmem [shape: f32[2,48,64], index: 11, kind: input, shape index: {}]   ;;  %s7528_s13 = inlined_call_operand.vmem [shape: f32[2,64,48], index: 13, kind: input, shape index: {}]   ;;  %s7529_s15 = inlined_call_operand.vmem [shape: f32[2,1,48], index: 15, kind: input, shape index: {}]   ;;  %s7530_s16 = inlined_call_operand.vmem [shape: f32[2,1,48], index: 16, kind: input, shape index: {}]   ;;  %s7531_s12 = inlined_call_operand.vmem [shape: f32[2,1,64], index: 12, kind: input, shape index: {}]   ;;  %s7532_s14 = inlined_call_operand.vmem [shape: f32[2,1,48], index: 14, kind: input, shape index: {}]   ;;  %s7533_s17 = inlined_call_operand.vmem [shape: f32[2,1,48], index: 17, kind: input, shape index: {}]   ;;  %s7534_s18 = inlined_call_operand.vmem [shape: f32[2,1,48], index: 18, kind: input, shape index: {}]   ;;  %s7535_s20 = inlined_call_operand.vmem [shape: f32[48,1], index: 20, kind: input, shape index: {}]   ;;  %s7536_s19 = inlined_call_operand.vmem [shape: f32[48,1], index: 19, kind: input, shape index: {}]   ;;  %s7537_s21 = inlined_call_operand.vmem [shape: f32[48,1], index: 21, kind: input, shape index: {}]   ;;  %s7538_s1 = inlined_call_operand.vmem [shape: f32[2,48], index: 1, kind: input, shape index: {}]   ;;  %s7539_s2 = inlined_call_operand.vmem [shape: f32[2,48], index: 2, kind: input, shape index: {}]   ;;  %s7540_s22 = inlined_call_operand.<no memory space> [shape: f32[1,1], index: 22, kind: input, shape index: {}]   ;;  %s7541_s23 = inlined_call_operand.vmem [shape: f32[2,1], index: 23, kind: output, shape index: {}]  }
   0x1   :  { %7550 = sst [smem:[#allocation3_spill]] %s7518_s3  ;;  %vm504_vm3 = vcmask 64512   ;;  %vm2277_vm4 = vcmask 523264   ;;  %vm4849_vm5 = vcmask 1041409   ;;  %vm5012_vm6 = vcmask 1024  }
   0x2   :  { %7551 = sst [smem:[#allocation4_spill]] %s7519_s4  ;;  %s7560_s24 = sld [smem:[#allocation3_spill]] }
   0x3   :  { %7552 = sst [smem:[#allocation5_spill]] %s7520_s0  ;;  %s7561_s0 = sld [smem:[#allocation4_spill]] }
   0x4   :  { %7553 = sst [smem:[#allocation6_spill]] %s7521_s6 }
   0x5   :  { %7554 = sst [smem:[#allocation7_spill]] %s7522_s7  ;;  %s7562_s7 = sld [smem:[#allocation5_spill]] }
   0x6   :  { %7555 = sst [smem:[#allocation8_spill]] %s7523_s5  ;;  %s7563_s26 = sld [smem:[#allocation6_spill]] }
   0x7   :  { %7556 = sst [smem:[#allocation9_spill]] %s7524_s8  ;;  %s7565_s6 = sld [smem:[#allocation8_spill]] }
   0x8   :  { %7557 = sst [smem:[#allocation10_spill]] %s7525_s9  ;;  %v78_v0 = vld [vmem:[%s7560_s24] sm:$0xff]  ;;  %v79_v1 = vld [vmem:[%s7560_s24 + $0x8] sm:$0xff]  ;;  %v80_v5 = vld [vmem:[%s7560_s24 + $0x10] sm:$0xff]  ;;  %s7564_s9 = sld [smem:[#allocation7_spill]] }
   0x9   :  { %7558 = sst [smem:[#allocation11_spill]] %s7540_s22  ;;  %v173_v2 = vld [vmem:[%s7561_s0] sm:$0xff]  ;;  %v6100_v3 = vpack.c.bf16 %v79_v1, %v78_v0  ;;  %v174_v4 = vld [vmem:[%s7561_s0 + $0x8] sm:$0xff]  ;;  %v81_v6 = vld [vmem:[%s7560_s24 + $0x18] sm:$0xff]  ;;  %s7566_s30 = sld [smem:[#allocation9_spill]] }
   0xa   :  { %7559 = sst [smem:[#allocation12_spill]] %s7541_s23  ;;  %v6112_v7 = vpack.c.bf16 %v174_v4, %v173_v2  ;;  %v6104_v8 = vpack.c.bf16 %v81_v6, %v80_v5  ;;  %v175_v9 = vld [vmem:[%s7561_s0 + $0x10] sm:$0xff]  ;;  %v176_v10 = vld [vmem:[%s7561_s0 + $0x18] sm:$0xff]  ;;  %v82_v11 = vld [vmem:[%s7560_s24 + $0x20] sm:$0xff]  ;;  %s7567_s27 = sld [smem:[#allocation10_spill]] }
   0xb   :  { %6101 = vmatprep.subr.bf16.mxu0 %v6100_v3  ;;  %v6116_v12 = vpack.c.bf16 %v176_v10, %v175_v9  ;;  %v83_v13 = vld [vmem:[%s7560_s24 + $0x28] sm:$0xff]  ;;  %v177_v14 = vld [vmem:[%s7561_s0 + $0x20] sm:$0xff]  ;;  %v5043_v62 = vld [vmem:[%s7561_s0 + $0x30] sm:$0xff]  ;;  %s7568_s23 = sld [smem:[#allocation11_spill]]  ;;  %s7569_s28 = sld [smem:[#allocation12_spill]] }
   0xc   :  { %v178_v15 = vld [vmem:[%s7561_s0 + $0x28] sm:$0xff]  ;;  %6113 = vmatprep.subr.bf16.mxu1 %v6112_v7  ;;  %6103 = vmatpush3.bf16.msra.mxu0 %v6100_v3  ;;  %v6660_v16 = vld [vmem:[%s7562_s7] sm:$0xff]  ;;  %v6108_v17 = vpack.c.bf16 %v83_v13, %v82_v11  ;;  %v5044_v63 = vld [vmem:[%s7561_s0 + $0x38] sm:$0xff] }
   0xd   :  { %6115 = vmatpush3.bf16.msra.mxu1 %v6112_v7  ;;  %6105 = vmatprep.subr.bf16.mxu0 %v6104_v8  ;;  %v6120_v18 = vpack.c.bf16 %v178_v15, %v177_v14  ;;  %v6669_v19 = vld [vmem:[%s7562_s7 + $0x8] sm:$0xff]  ;;  %v5018_v21 = vld [vmem:[%s7563_s26] ss:$0 sm:$0xff]  ;;  %v263_v35 = vld [vmem:[%s7565_s6 + $0x10] sm:$0xff]  ;;  %v6148_v1 = vpack.c.bf16 %v5044_v63, %v5043_v62 }
   0xe   :  { %6117 = vmatprep.subr.bf16.mxu1 %v6116_v12  ;;  %5567 = vmatprep.mubr.msk.f32.mxu0 %vm91_vm0, %v6660_v16  ;;  %v5021_v23 = vld [vmem:[%s7564_s9] ss:$0 sm:$0xff]  ;;  %v262_v34 = vld [vmem:[%s7565_s6 + $0x8] sm:$0xff]  ;;  %v264_v37 = vld [vmem:[%s7565_s6 + $0x18] sm:$0xff] }
   0xf   :  { %5582 = vmatprep.mubr.msk.f32.mxu1 %vm91_vm0, %v6660_v16  ;;  %v261_v33 = vld [vmem:[%s7565_s6] sm:$0xff]  ;;  %v6128_v38 = vpack.c.bf16 %v264_v37, %v263_v35  ;;  %v266_v40 = vld [vmem:[%s7565_s6 + $0x28] sm:$0xff]  ;;  %v5033_v2 = vld [vmem:[%s7560_s24 + $0x30] sm:$0xff] }
  0x10   :  { %6107 = vmatpush3.bf16.msra.mxu0 %v6104_v8  ;;  %v6124_v36 = vpack.c.bf16 %v262_v34, %v261_v33  ;;  %v265_v39 = vld [vmem:[%s7565_s6 + $0x20] sm:$0xff]  ;;  %v5034_v3 = vld [vmem:[%s7560_s24 + $0x38] sm:$0xff]  ;;  %v5046_v8 = vld [vmem:[%s7561_s0 + $0x48] sm:$0xff] }
  0x11   :  { %6119 = vmatpush3.bf16.msra.mxu1 %v6116_v12  ;;  %6109 = vmatprep.subr.bf16.mxu0 %v6108_v17  ;;  %v6132_v41 = vpack.c.bf16 %v266_v40, %v265_v39  ;;  %v5024_v59 = vld [vmem:[%s7566_s30] ss:$0 sm:$0xff]  ;;  %v6136_v4 = vpack.c.bf16 %v5034_v3, %v5033_v2  ;;  %v5036_v13 = vld [vmem:[%s7560_s24 + $0x48] sm:$0xff]  ;;  %v5047_v14 = vld [vmem:[%s7561_s0 + $0x50] sm:$0xff] }
  0x12   :  { %6121 = vmatprep.subr.bf16.mxu1 %v6120_v18  ;;  %v5045_v7 = vld [vmem:[%s7561_s0 + $0x40] sm:$0xff]  ;;  %v5048_v15 = vld [vmem:[%s7561_s0 + $0x58] sm:$0xff] }
  0x13   :  { %v6152_v11 = vpack.c.bf16 %v5046_v8, %v5045_v7  ;;  %v5035_v12 = vld [vmem:[%s7560_s24 + $0x40] sm:$0xff] }
  0x14   :  { %6111 = vmatpush3.bf16.msra.mxu0 %v6108_v17  ;;  %v5040_v34 = vld [vmem:[%s7563_s26 + $0x1] ss:$0 sm:$0xff] }
  0x15   :  { %6123 = vmatpush3.bf16.msra.mxu1 %v6120_v18  ;;  %6125 = vmatprep.subr.bf16.mxu0 %v6124_v36 }
  0x16   :  { %5600 = vmatprep.subr.mxu1 %v6498_v20 }
  0x17   :  { %5568 = vmatmul.mubr.msk.f32.vlgmr.msra.gmra.mrb[0].mxu0 %vm91_vm0, %v6669_v19 }
  0x18   :  { %5583 = vmatmul.mubr.msk.f32.vlgmr.msra.gmra.mrb[0].mxu1 %vm91_vm0, %v6669_v19  ;;  %5597 = vmatprep.mubr.msk.f32.mxu0 %vm91_vm0, %v6660_v16 }
  0x19   :  { %5602 = vmatprep.mubr.msk.f32.mxu1 %vm6499_vm1, %v6498_v20  ;;  %6127 = vmatpush3.bf16.msra.mxu0 %v6124_v36 }
  0x1a   :  { %6129 = vmatprep.subr.bf16.mxu0 %v6128_v38 }
  0x1d   :  { %6131 = vmatpush3.bf16.msra.mxu0 %v6128_v38 }
  0x1e   :  { %6133 = vmatprep.subr.bf16.mxu0 %v6132_v41 }
  0x21   :  { %6135 = vmatpush3.bf16.msra.mxu0 %v6132_v41 }
  0x22   :  { %5615 = vmatprep.subr.mxu0 %v6498_v20 }
  0x24   :  { %5598 = vmatmul.mubr.msk.f32.vlgmr.msra.gmra.mrb[2].mxu0 %vm91_vm0, %v6669_v19 }
  0x25   :  { %5617 = vmatprep.mubr.msk.f32.mxu0 %vm6499_vm1, %v6498_v20 }
  0xea   :  { %v5569_v22 = vpop.f32.mrb[0].mxu0 }
  0xeb   :  { %v5584_v24 = vpop.f32.mrb[0].mxu1  ;;  %v164_v25 = vpop.f32.mrb[1].mxu0  ;;  %v170_v30 = vadd.f32 %v5569_v22, %v5018_v21  ;;  %v6156_v22 = vpack.c.bf16 %v5048_v15, %v5047_v14  ;;  %v5069_v14 = vld [vmem:[%s7567_s27 + $0x10] sm:$0xff]  ;;  %v5070_v15 = vld [vmem:[%s7567_s27 + $0x18] sm:$0xff] }
  0xec   :  { %v165_v26 = vadd.f32 %v5018_v21, %v164_v25  ;;  %v252_v27 = vpop.f32.mrb[1].mxu1  ;;  %v258_v31 = vadd.f32 %v5584_v24, %v5021_v23  ;;  %v6140_v21 = vpack.c.bf16 %v5036_v13, %v5035_v12  ;;  %v5038_v24 = vld [vmem:[%s7560_s24 + $0x58] sm:$0xff] }
  0xed   :  { %v253_v28 = vadd.f32 %v5021_v23, %v252_v27  ;;  %v350_v32 = vmul.f32 0.25, %v170_v30  ;;  %v5037_v23 = vld [vmem:[%s7560_s24 + $0x50] sm:$0xff]  ;;  %v5050_v30 = vld [vmem:[%s7564_s9 + $0x1] ss:$0 sm:$0xff] }
  0xee   :  { %v349_v29 = vmul.f32 0.25, %v165_v26  ;;  %v6144_v25 = vpack.c.bf16 %v5038_v24, %v5037_v23  ;;  %v5075_v23 = vld [vmem:[%s7560_s24 + $0x60] sm:$0xff]  ;;  %v5076_v24 = vld [vmem:[%s7560_s24 + $0x68] sm:$0xff] }
  0xef   :  { %5601 = vmatpush3.xpose.msk.msra.mxu1 %vm351_vm2, %v253_v28 }
  0xf0   :  { %5605 = vmatprep.subr.mxu1 %v6498_v20 }
  0xf2   :  { %5603 = vmatmul.mubr.msk.f32.vlgmr.msra.gmra.mrb[2].mxu1 %vm351_vm2, %v349_v29 }
  0xf3   :  { %5606 = vmatpush3.xpose.msk.msra.mxu1 %vm351_vm2, %v258_v31  ;;  %5607 = vmatprep.mubr.msk.f32.mxu1 %vm6499_vm1, %v6498_v20 }
  0xf4   :  { %5610 = vmatprep.subr.mxu1 %v6498_v20 }
  0xf6   :  { %5608 = vmatmul.mubr.msk.f32.vlgmr.msra.gmra.mrb[4].mxu1 %vm351_vm2, %v350_v32 }
  0xf7   :  { %5612 = vmatprep.mubr.msk.f32.mxu1 %vm6499_vm1, %v6498_v20  ;;  %v5599_v58 = vpop.f32.mrb[2].mxu0 }
  0xf8   :  { %v346_v60 = vadd.f32 %v5599_v58, %v5024_v59  ;;  %v340_v61 = vpop.f32.mrb[3].mxu0 }
  0xf9   :  { %v341_v0 = vadd.f32 %v5024_v59, %v340_v61 }
  0xfa   :  { %5616 = vmatpush3.msra.mxu0 %v346_v60 }
  0xfb   :  { %5611 = vmatpush3.msra.mxu1 %v341_v0  ;;  %6149 = vmatprep.subr.bf16.mxu0 %v6148_v1 }
  0xfc   :  { %6137 = vmatprep.subr.bf16.mxu1 %v6136_v4 }
 0x1c5   :  { %v424_v42 = vpop.f32.mrb[2].mxu1 }
 0x1c6   :  { %v5604_v43 = vpop.f32.mrb[3].mxu1  ;;  %v505_v47 = vsel %vm504_vm3, %v424_v42, -inf }
 0x1c7   :  { %v5054_v43 = vld [vmem:[%s7565_s6 + $0x38] sm:$0xff] }
 0x1c9   :  { %v500_v44 = vpop.f32.mrb[4].mxu1 }
 0x1ca   :  { %v5609_v45 = vpop.f32.mrb[5].mxu1  ;;  %v508_v46 = vsel %vm504_vm3, %v500_v44, -inf }
 0x1cb   :  { %509 = vmax.xlane.f32.xlu0 %v508_v46  ;;  %v5056_v46 = vld [vmem:[%s7565_s6 + $0x48] sm:$0xff] }
 0x1cf   :  { %506 = vmax.xlane.f32.xlu0 %v505_v47 }
 0x258   :  { %v510_v48 = vpop.xlane.xlu0 %509 }
 0x259   :  { %v512_v49 = vsub.f32 %v500_v44, %v510_v48  ;;  %v5055_v44 = vld [vmem:[%s7565_s6 + $0x40] sm:$0xff]  ;;  %v5057_v48 = vld [vmem:[%s7565_s6 + $0x50] sm:$0xff] }
 0x25a   :  { %v6164_v47 = vpack.c.bf16 %v5056_v46, %v5055_v44  ;;  %v5089_v44 = vld [vmem:[%s7561_s0 + $0x80] sm:$0xff] }
 0x25b   :  { %v515_v50 = vmul.f32 1.442695, %v512_v49  ;;  %v5058_v49 = vld [vmem:[%s7565_s6 + $0x58] sm:$0xff] }
 0x25c   :  { %v507_v51 = vpop.xlane.xlu0 %506 }
 0x25d   :  { %6434 = vpow2.f32 %v515_v50  ;;  %v511_v52 = vsub.f32 %v424_v42, %v507_v51  ;;  %v5053_v42 = vld [vmem:[%s7565_s6 + $0x30] sm:$0xff]  ;;  %v6168_v50 = vpack.c.bf16 %v5058_v49, %v5057_v48  ;;  %v5092_v48 = vld [vmem:[%s7564_s9 + $0x2] ss:$0 sm:$0xff] }
 0x25e   :  { %v6160_v45 = vpack.c.bf16 %v5054_v43, %v5053_v42  ;;  %v5088_v42 = vld [vmem:[%s7561_s0 + $0x78] sm:$0xff] }
 0x25f   :  { %v513_v53 = vmul.f32 1.442695, %v511_v52 }
 0x261   :  { %6436 = vpow2.f32 %v513_v53 }
 0x267   :  { %v6435_v54 = vpop.eup %6434 }
 0x268   :  { %v520_v55 = vsel %vm504_vm3, %v6435_v54, 0.0 }
 0x269   :  { %521 = vadd.xlane.f32.xlu1 %v520_v55 }
 0x26b   :  { %v6437_v56 = vpop.eup %6436 }
 0x26c   :  { %v517_v57 = vsel %vm504_vm3, %v6437_v56, 0.0 }
 0x26d   :  { %518 = vadd.xlane.f32.xlu1 %v517_v57 }
 0x2f6   :  { %v522_v5 = vpop.xlane.xlu1 %521 }
 0x2f7   :  { %6438 = vrcp.f32 %v522_v5 }
 0x2fa   :  { %v519_v6 = vpop.xlane.xlu1 %518 }
 0x2fb   :  { %6440 = vrcp.f32 %v519_v6 }
 0x301   :  { %v6439_v9 = vpop.eup %6438 }
 0x302   :  { %v526_v10 = vmul.f32 %v6439_v9, %v6435_v54 }
 0x304   :  { %5618 = vmatmul.mubr.msk.f32.vlgmr.msra.gmra.mrb[4].mxu0 %vm504_vm3, %v526_v10 }
 0x305   :  { %v6441_v17 = vpop.eup %6440  ;;  %6151 = vmatpush3.bf16.msra.mxu0 %v6148_v1  ;;  %5647 = vmatprep.mubr.msk.f32.mxu0 %vm91_vm0, %v6660_v16 }
 0x306   :  { %v525_v18 = vmul.f32 %v6441_v17, %v6437_v56  ;;  %6153 = vmatprep.subr.bf16.mxu0 %v6152_v11  ;;  %v6172_v17 = vpack.c.bf16 %v5070_v15, %v5069_v14 }
 0x308   :  { %5613 = vmatmul.mubr.msk.f32.vlgmr.msra.gmra.mrb[6].mxu1 %vm504_vm3, %v525_v18  ;;  %v673_v18 = vld [vmem:[%s7567_s27] sm:$0xff] }
 0x309   :  { %6139 = vmatpush3.bf16.msra.mxu1 %v6136_v4  ;;  %6155 = vmatpush3.bf16.msra.mxu0 %v6152_v11  ;;  %v5060_v4 = vld [vmem:[%s7566_s30 + $0x1] ss:$0 sm:$0xff] }
 0x30a   :  { %6141 = vmatprep.subr.bf16.mxu1 %v6140_v21  ;;  %6157 = vmatprep.subr.bf16.mxu0 %v6156_v22 }
 0x30b   :  { %5632 = vmatprep.mubr.msk.f32.mxu1 %vm91_vm0, %v6660_v16 }
 0x30d   :  { %6143 = vmatpush3.bf16.msra.mxu1 %v6140_v21  ;;  %6159 = vmatpush3.bf16.msra.mxu0 %v6156_v22  ;;  %v674_v21 = vld [vmem:[%s7567_s27 + $0x8] sm:$0xff] }
 0x30e   :  { %6145 = vmatprep.subr.bf16.mxu1 %v6144_v25  ;;  %5665 = vmatprep.subr.mxu0 %v6498_v20  ;;  %v6176_v22 = vpack.c.bf16 %v674_v21, %v673_v18 }
 0x310   :  { %5648 = vmatmul.mubr.msk.f32.vlgmr.msra.gmra.mrb[6].mxu0 %vm91_vm0, %v6669_v19 }
 0x311   :  { %6147 = vmatpush3.bf16.msra.mxu1 %v6144_v25  ;;  %5667 = vmatprep.mubr.msk.f32.mxu0 %vm6499_vm1, %v6498_v20  ;;  %v6180_v25 = vpack.c.bf16 %v5076_v24, %v5075_v23 }
 0x312   :  { %6161 = vmatprep.subr.bf16.mxu1 %v6160_v45 }
 0x314   :  { %5633 = vmatmul.mubr.msk.f32.vlgmr.msra.gmra.mrb[8].mxu1 %vm91_vm0, %v6669_v19 }
 0x315   :  { %5662 = vmatprep.mubr.msk.f32.mxu1 %vm91_vm0, %v6660_v16  ;;  %6163 = vmatpush3.bf16.msra.mxu1 %v6160_v45  ;;  %v5090_v45 = vld [vmem:[%s7561_s0 + $0x88] sm:$0xff] }
 0x316   :  { %6165 = vmatprep.subr.bf16.mxu1 %v6164_v47 }
 0x319   :  { %6167 = vmatpush3.bf16.msra.mxu1 %v6164_v47 }
 0x31a   :  { %6169 = vmatprep.subr.bf16.mxu1 %v6168_v50 }
 0x31d   :  { %6171 = vmatpush3.bf16.msra.mxu1 %v6168_v50 }
 0x31e   :  { %5680 = vmatprep.subr.mxu1 %v6498_v20 }
 0x320   :  { %5663 = vmatmul.mubr.msk.f32.vlgmr.msra.gmra.mrb[10].mxu1 %vm91_vm0, %v6669_v19 }
 0x321   :  { %5682 = vmatprep.mubr.msk.f32.mxu1 %vm6499_vm1, %v6498_v20 }
 0x3d7   :  { %v6777_v26 = vpop.f32.mrb[4].mxu0 }
 0x3d8   :  { %v5619_v27 = vpop.f32.mrb[5].mxu0 }
 0x3d9   :  { %v5077_v27 = vld [vmem:[%s7560_s24 + $0x70] sm:$0xff] }
 0x3db   :  { %v6779_v28 = vpop.f32.mrb[6].mxu1 }
 0x3dc   :  { %v5614_v29 = vpop.f32.mrb[7].mxu1 }
 0x3dd   :  { %v5078_v29 = vld [vmem:[%s7560_s24 + $0x78] sm:$0xff] }
 0x3e3   :  { %v5649_v31 = vpop.f32.mrb[6].mxu0 }
 0x3e4   :  { %v846_v32 = vpop.f32.mrb[7].mxu0  ;;  %v852_v40 = vadd.f32 %v5649_v31, %v5050_v30  ;;  %v5079_v31 = vld [vmem:[%s7560_s24 + $0x80] sm:$0xff] }
 0x3e5   :  { %v847_v33 = vadd.f32 %v5050_v30, %v846_v32  ;;  %v6184_v30 = vpack.c.bf16 %v5078_v29, %v5077_v27  ;;  %v5080_v32 = vld [vmem:[%s7560_s24 + $0x88] sm:$0xff] }
 0x3e7   :  { %v5634_v35 = vpop.f32.mrb[8].mxu1  ;;  %5666 = vmatpush3.xpose.msk.msra.mxu0 %vm351_vm2, %v847_v33  ;;  %v6188_v33 = vpack.c.bf16 %v5080_v32, %v5079_v31 }
 0x3e8   :  { %v756_v36 = vpop.f32.mrb[9].mxu1  ;;  %5670 = vmatprep.subr.mxu0 %v6498_v20  ;;  %v762_v38 = vadd.f32 %v5634_v35, %v5040_v34  ;;  %v5085_v35 = vld [vmem:[%s7561_s0 + $0x60] sm:$0xff] }
 0x3e9   :  { %v757_v37 = vadd.f32 %v5040_v34, %v756_v36  ;;  %v5086_v36 = vld [vmem:[%s7561_s0 + $0x68] sm:$0xff] }
 0x3ea   :  { %v946_v41 = vmul.f32 0.25, %v762_v38  ;;  %v6192_v38 = vpack.c.bf16 %v5086_v36, %v5085_v35  ;;  %v5112_v35 = vld [vmem:[%s7567_s27 + $0x28] sm:$0xff] }
 0x3eb   :  { %v945_v39 = vmul.f32 0.25, %v757_v37 }
 0x3ed   :  { %5668 = vmatmul.mubr.msk.f32.vlgmr.msra.gmra.mrb[8].mxu0 %vm351_vm2, %v945_v39 }
 0x3ee   :  { %5671 = vmatpush3.xpose.msk.msra.mxu0 %vm351_vm2, %v852_v40  ;;  %5672 = vmatprep.mubr.msk.f32.mxu0 %vm6499_vm1, %v6498_v20 }
 0x3ef   :  { %5675 = vmatprep.subr.mxu0 %v6498_v20 }
 0x3f1   :  { %5673 = vmatmul.mubr.msk.f32.vlgmr.msra.gmra.mrb[10].mxu0 %vm351_vm2, %v946_v41  ;;  %v5087_v41 = vld [vmem:[%s7561_s0 + $0x70] sm:$0xff] }
 0x3f2   :  { %5677 = vmatprep.mubr.msk.f32.mxu0 %vm6499_vm1, %v6498_v20  ;;  %v6196_v43 = vpack.c.bf16 %v5088_v42, %v5087_v41  ;;  %v5115_v41 = vld [vmem:[%s7526_s10] ss:$0 sm:$0xff] }
 0x3f3   :  { %v5664_v3 = vpop.f32.mrb[10].mxu1 }
 0x3f4   :  { %v936_v5 = vpop.f32.mrb[11].mxu1  ;;  %v942_v7 = vadd.f32 %v5664_v3, %v5060_v4 }
 0x3f5   :  { %v937_v6 = vadd.f32 %v5060_v4, %v936_v5 }
 0x3f6   :  { %5681 = vmatpush3.msra.mxu1 %v942_v7 }
 0x3f7   :  { %5676 = vmatpush3.msra.mxu0 %v937_v6  ;;  %6181 = vmatprep.subr.bf16.mxu1 %v6180_v25 }
 0x3f8   :  { %6173 = vmatprep.subr.bf16.mxu0 %v6172_v17 }
 0x4c0   :  { %v1019_v51 = vpop.f32.mrb[8].mxu0 }
 0x4c1   :  { %v5669_v52 = vpop.f32.mrb[9].mxu0  ;;  %v1099_v53 = vsel %vm504_vm3, %v1019_v51, -inf }
 0x4c2   :  { %1100 = vmax.xlane.f32.xlu0 %v1099_v53 }
 0x4c4   :  { %v1095_v54 = vpop.f32.mrb[10].mxu0 }
 0x4c5   :  { %v5674_v55 = vpop.f32.mrb[11].mxu0  ;;  %v1102_v56 = vsel %vm504_vm3, %v1095_v54, -inf }
 0x4c6   :  { %1103 = vmax.xlane.f32.xlu1 %v1102_v56 }
 0x54f   :  { %v1101_v57 = vpop.xlane.xlu0 %1100 }
 0x550   :  { %v1105_v58 = vsub.f32 %v1019_v51, %v1101_v57  ;;  %v5095_v57 = vld [vmem:[%s7565_s6 + $0x60] sm:$0xff] }
 0x552   :  { %v1107_v59 = vmul.f32 1.442695, %v1105_v58  ;;  %v5096_v58 = vld [vmem:[%s7565_s6 + $0x68] sm:$0xff] }
 0x553   :  { %v1104_v60 = vpop.xlane.xlu1 %1103 }
 0x554   :  { %6442 = vpow2.f32 %v1107_v59  ;;  %v1106_v61 = vsub.f32 %v1095_v54, %v1104_v60  ;;  %v5097_v59 = vld [vmem:[%s7565_s6 + $0x70] sm:$0xff]  ;;  %v6204_v60 = vpack.c.bf16 %v5096_v58, %v5095_v57  ;;  %v2167_v57 = vld [vmem:[%s7527_s11 + $0x8] sm:$0xff] }
 0x556   :  { %v1109_v62 = vmul.f32 1.442695, %v1106_v61  ;;  %v5098_v61 = vld [vmem:[%s7565_s6 + $0x78] sm:$0xff] }
 0x558   :  { %6444 = vpow2.f32 %v1109_v62  ;;  %v6208_v62 = vpack.c.bf16 %v5098_v61, %v5097_v59  ;;  %v2168_v59 = vld [vmem:[%s7527_s11 + $0x10] sm:$0xff] }
 0x55e   :  { %v6443_v63 = vpop.eup %6442 }
 0x55f   :  { %v1111_v0 = vsel %vm504_vm3, %v6443_v63, 0.0 }
 0x560   :  { %1112 = vadd.xlane.f32.xlu0 %v1111_v0  ;;  %v5100_v0 = vld [vmem:[%s7565_s6 + $0x88] sm:$0xff] }
 0x562   :  { %v6445_v1 = vpop.eup %6444 }
 0x563   :  { %v1114_v2 = vsel %vm504_vm3, %v6445_v1, 0.0 }
 0x564   :  { %1115 = vadd.xlane.f32.xlu1 %v1114_v2 }
 0x5ed   :  { %v1113_v8 = vpop.xlane.xlu0 %1112 }
 0x5ee   :  { %6446 = vrcp.f32 %v1113_v8 }
 0x5f1   :  { %v1116_v9 = vpop.xlane.xlu1 %1115 }
 0x5f2   :  { %6448 = vrcp.f32 %v1116_v9 }
 0x5f8   :  { %v6447_v10 = vpop.eup %6446 }
 0x5f9   :  { %v1119_v11 = vmul.f32 %v6447_v10, %v6443_v63  ;;  %v5099_v63 = vld [vmem:[%s7565_s6 + $0x80] sm:$0xff] }
 0x5fb   :  { %5678 = vmatmul.mubr.msk.f32.vlgmr.msra.gmra.mrb[12].mxu0 %vm504_vm3, %v1119_v11 }
 0x5fc   :  { %v6449_v12 = vpop.eup %6448  ;;  %6175 = vmatpush3.bf16.msra.mxu0 %v6172_v17 }
 0x5fd   :  { %v1120_v13 = vmul.f32 %v6449_v12, %v6445_v1  ;;  %6177 = vmatprep.subr.bf16.mxu0 %v6176_v22  ;;  %v6212_v1 = vpack.c.bf16 %v5100_v0, %v5099_v63  ;;  %v2171_v63 = vld [vmem:[%s7527_s11 + $0x28] sm:$0xff] }
 0x5ff   :  { %5683 = vmatmul.mubr.msk.f32.vlgmr.msra.gmra.mrb[12].mxu1 %vm504_vm3, %v1120_v13 }
 0x600   :  { %5711 = vmatprep.mubr.msk.f32.mxu1 %vm91_vm0, %v6660_v16  ;;  %6183 = vmatpush3.bf16.msra.mxu1 %v6180_v25 }
 0x601   :  { %6185 = vmatprep.subr.bf16.mxu1 %v6184_v30 }
 0x604   :  { %6187 = vmatpush3.bf16.msra.mxu1 %v6184_v30 }
 0x605   :  { %6189 = vmatprep.subr.bf16.mxu1 %v6188_v33 }
 0x608   :  { %6191 = vmatpush3.bf16.msra.mxu1 %v6188_v33 }
 0x609   :  { %6205 = vmatprep.subr.bf16.mxu1 %v6204_v60 }
 0x60b   :  { %5712 = vmatmul.mubr.msk.f32.vlgmr.msra.gmra.mrb[14].mxu1 %vm91_vm0, %v6669_v19 }
 0x60c   :  { %5741 = vmatprep.mubr.msk.f32.mxu1 %vm91_vm0, %v6660_v16  ;;  %6207 = vmatpush3.bf16.msra.mxu1 %v6204_v60  ;;  %v2169_v60 = vld [vmem:[%s7527_s11 + $0x18] sm:$0xff] }
 0x60d   :  { %6209 = vmatprep.subr.bf16.mxu1 %v6208_v62  ;;  %v6224_v61 = vpack.c.bf16 %v2169_v60, %v2168_v59  ;;  %v5136_v59 = vld [vmem:[%s7561_s0 + $0x90] sm:$0xff]  ;;  %v5137_v60 = vld [vmem:[%s7561_s0 + $0x98] sm:$0xff] }
 0x610   :  { %6211 = vmatpush3.bf16.msra.mxu1 %v6208_v62  ;;  %v2170_v62 = vld [vmem:[%s7527_s11 + $0x20] sm:$0xff] }
 0x611   :  { %6213 = vmatprep.subr.bf16.mxu1 %v6212_v1  ;;  %v6228_v0 = vpack.c.bf16 %v2171_v63, %v2170_v62  ;;  %v5128_v62 = vld [vmem:[%s7560_s24 + $0xa0] sm:$0xff]  ;;  %v5129_v63 = vld [vmem:[%s7560_s24 + $0xa8] sm:$0xff] }
 0x614   :  { %6215 = vmatpush3.bf16.msra.mxu1 %v6212_v1  ;;  %v2262_v1 = vld [vmem:[%s7528_s13] sm:$0xff] }
 0x615   :  { %5754 = vmatprep.subr.mxu1 %v6498_v20 }
 0x617   :  { %5742 = vmatmul.mubr.msk.f32.vlgmr.msra.gmra.mrb[16].mxu1 %vm91_vm0, %v6669_v19 }
 0x618   :  { %5756 = vmatprep.mubr.msk.f32.mxu1 %vm6499_vm1, %v6498_v20 }
 0x6ce   :  { %v1190_v34 = vpop.f32.mrb[12].mxu0 }
 0x6cf   :  { %v5679_v37 = vpop.f32.mrb[13].mxu0  ;;  %5689 = vmatprep.mubr.msk.f32.mxu0 %vm351_vm2, %v1190_v34  ;;  %v5111_v34 = vld [vmem:[%s7567_s27 + $0x20] sm:$0xff] }
 0x6d0   :  { %v6216_v36 = vpack.c.bf16 %v5112_v35, %v5111_v34  ;;  %v5118_v34 = vld [vmem:[%s7531_s12] ss:$0 sm:$0xff] }
 0x6d2   :  { %v1263_v39 = vpop.f32.mrb[12].mxu1 }
 0x6d3   :  { %v5684_v40 = vpop.f32.mrb[13].mxu1  ;;  %5690 = vmatmul.mubr.msk.f32.vlgmr.msra.gmra.mrb[14].mxu0 %vm351_vm2, %v1263_v39 }
 0x6d4   :  { %6179 = vmatpush3.bf16.msra.mxu0 %v6176_v22  ;;  %5696 = vmatprep.mubr.msk.f32.mxu0 %vm351_vm2, %v6779_v28  ;;  %v6200_v28 = vpack.c.bf16 %v5090_v45, %v5089_v44  ;;  %v5102_v22 = vld [vmem:[%s7566_s30 + $0x2] ss:$0 sm:$0xff] }
 0x6d5   :  { %6193 = vmatprep.subr.bf16.mxu0 %v6192_v38 }
 0x6db   :  { %5697 = vmatmul.mubr.msk.f32.vlgmr.msra.gmra.mrb[14].mxu0 %vm351_vm2, %v6777_v26  ;;  %v5082_v26 = vld [vmem:[%s7563_s26 + $0x2] ss:$0 sm:$0xff] }
 0x6dc   :  { %6195 = vmatpush3.bf16.msra.mxu0 %v6192_v38  ;;  %5726 = vmatprep.mubr.msk.f32.mxu0 %vm91_vm0, %v6660_v16 }
 0x6dd   :  { %6197 = vmatprep.subr.bf16.mxu0 %v6196_v43 }
 0x6de   :  { %v5713_v46 = vpop.f32.mrb[14].mxu1 }
 0x6df   :  { %v1513_v47 = vpop.f32.mrb[15].mxu1  ;;  %v1519_v54 = vadd.f32 %v5713_v46, %v5082_v26 }
 0x6e0   :  { %6199 = vmatpush3.bf16.msra.mxu0 %v6196_v43  ;;  %v1514_v49 = vadd.f32 %v5082_v26, %v1513_v47 }
 0x6e1   :  { %6201 = vmatprep.subr.bf16.mxu0 %v6200_v28  ;;  %v1703_v56 = vmul.f32 0.25, %v1519_v54 }
 0x6e2   :  { %v1702_v53 = vmul.f32 0.25, %v1514_v49 }
 0x6e4   :  { %6203 = vmatpush3.bf16.msra.mxu0 %v6200_v28 }
 0x6e5   :  { %5744 = vmatprep.subr.mxu0 %v6498_v20 }
 0x6e7   :  { %5727 = vmatmul.mubr.msk.f32.vlgmr.msra.gmra.mrb[16].mxu0 %vm91_vm0, %v6669_v19 }
 0x6e8   :  { %5746 = vmatprep.mubr.msk.f32.mxu0 %vm6499_vm1, %v6498_v20 }
 0x6ea   :  { %v5743_v21 = vpop.f32.mrb[16].mxu1 }
 0x6eb   :  { %v1693_v23 = vpop.f32.mrb[17].mxu1  ;;  %v1699_v25 = vadd.f32 %v5743_v21, %v5102_v22 }
 0x6ec   :  { %v1694_v24 = vadd.f32 %v5102_v22, %v1693_v23 }
 0x6ee   :  { %5755 = vmatpush3.msra.mxu1 %v1694_v24  ;;  %v5117_v24 = vld [vmem:[%s7530_s16] ss:$0 sm:$0xff] }
 0x7ba   :  { %v5728_v50 = vpop.f32.mrb[16].mxu0 }
 0x7bb   :  { %v1603_v51 = vpop.f32.mrb[17].mxu0  ;;  %v1609_v55 = vadd.f32 %v5728_v50, %v5092_v48 }
 0x7bc   :  { %v1604_v52 = vadd.f32 %v5092_v48, %v1603_v51 }
 0x7be   :  { %5745 = vmatpush3.xpose.msk.msra.mxu0 %vm351_vm2, %v1604_v52 }
 0x7bf   :  { %5749 = vmatprep.subr.mxu0 %v6498_v20 }
 0x7c1   :  { %5747 = vmatmul.mubr.msk.f32.vlgmr.msra.gmra.mrb[18].mxu0 %vm351_vm2, %v1702_v53 }
 0x7c2   :  { %5750 = vmatpush3.xpose.msk.msra.mxu0 %vm351_vm2, %v1609_v55  ;;  %5751 = vmatprep.mubr.msk.f32.mxu0 %vm6499_vm1, %v6498_v20 }
 0x7c3   :  { %5759 = vmatprep.subr.mxu0 %v6498_v20 }
 0x7c5   :  { %5752 = vmatmul.mubr.msk.f32.vlgmr.msra.gmra.mrb[20].mxu0 %vm351_vm2, %v1703_v56 }
 0x7c6   :  { %5761 = vmatprep.mubr.msk.f32.mxu0 %vm6499_vm1, %v6498_v20  ;;  %5760 = vmatpush3.msra.mxu0 %v1699_v25 }
 0x7c7   :  { %6217 = vmatprep.subr.bf16.mxu0 %v6216_v36 }
 0x894   :  { %v1776_v2 = vpop.f32.mrb[18].mxu0 }
 0x895   :  { %v5748_v3 = vpop.f32.mrb[19].mxu0  ;;  %v1856_v4 = vsel %vm504_vm3, %v1776_v2, -inf }
 0x896   :  { %1857 = vmax.xlane.f32.xlu0 %v1856_v4  ;;  %v2264_v3 = vld [vmem:[%s7528_s13 + $0x10] sm:$0xff] }
 0x898   :  { %v1852_v5 = vpop.f32.mrb[20].mxu0 }
 0x899   :  { %v5753_v6 = vpop.f32.mrb[21].mxu0  ;;  %v1859_v7 = vsel %vm504_vm3, %v1852_v5, -inf }
 0x89a   :  { %1860 = vmax.xlane.f32.xlu1 %v1859_v7  ;;  %v2266_v7 = vld [vmem:[%s7528_s13 + $0x20] sm:$0xff] }
 0x923   :  { %v1858_v8 = vpop.xlane.xlu0 %1857 }
 0x924   :  { %v1862_v9 = vsub.f32 %v1776_v2, %v1858_v8  ;;  %v2263_v2 = vld [vmem:[%s7528_s13 + $0x8] sm:$0xff] }
 0x925   :  { %v6232_v4 = vpack.c.bf16 %v2263_v2, %v2262_v1  ;;  %v2267_v8 = vld [vmem:[%s7528_s13 + $0x28] sm:$0xff]  ;;  %v5138_v1 = vld [vmem:[%s7561_s0 + $0xa0] sm:$0xff] }
 0x926   :  { %v1864_v10 = vmul.f32 1.442695, %v1862_v9  ;;  %v6240_v9 = vpack.c.bf16 %v2267_v8, %v2266_v7  ;;  %v5139_v2 = vld [vmem:[%s7561_s0 + $0xa8] sm:$0xff]  ;;  %v5140_v7 = vld [vmem:[%s7561_s0 + $0xb0] sm:$0xff]  ;;  %v5141_v8 = vld [vmem:[%s7561_s0 + $0xb8] sm:$0xff] }
 0x927   :  { %v1861_v11 = vpop.xlane.xlu1 %1860 }
 0x928   :  { %6450 = vpow2.f32 %v1864_v10  ;;  %v1863_v12 = vsub.f32 %v1852_v5, %v1861_v11  ;;  %v2265_v5 = vld [vmem:[%s7528_s13 + $0x18] sm:$0xff] }
 0x929   :  { %v6236_v6 = vpack.c.bf16 %v2265_v5, %v2264_v3  ;;  %v6264_v3 = vpack.c.bf16 %v5139_v2, %v5138_v1  ;;  %v5131_v5 = vld [vmem:[%s7560_s24 + $0xb8] sm:$0xff] }
 0x92a   :  { %v1866_v13 = vmul.f32 1.442695, %v1863_v12 }
 0x92c   :  { %6452 = vpow2.f32 %v1866_v13 }
 0x932   :  { %v6451_v14 = vpop.eup %6450 }
 0x933   :  { %v1868_v15 = vsel %vm504_vm3, %v6451_v14, 0.0 }
 0x934   :  { %1869 = vadd.xlane.f32.xlu0 %v1868_v15 }
 0x936   :  { %v6453_v17 = vpop.eup %6452 }
 0x937   :  { %v1871_v18 = vsel %vm504_vm3, %v6453_v17, 0.0 }
 0x938   :  { %1872 = vadd.xlane.f32.xlu1 %v1871_v18  ;;  %v5116_v18 = vld [vmem:[%s7529_s15] ss:$0 sm:$0xff] }
 0x9c1   :  { %v1870_v27 = vpop.xlane.xlu0 %1869 }
 0x9c2   :  { %6454 = vrcp.f32 %v1870_v27 }
 0x9c5   :  { %v1873_v29 = vpop.xlane.xlu1 %1872 }
 0x9c6   :  { %6456 = vrcp.f32 %v1873_v29 }
 0x9cc   :  { %v6455_v30 = vpop.eup %6454 }
 0x9cd   :  { %v1876_v31 = vmul.f32 %v6455_v30, %v6451_v14 }
 0x9cf   :  { %5757 = vmatmul.mubr.msk.f32.vlgmr.msra.gmra.mrb[18].mxu1 %vm504_vm3, %v1876_v31  ;;  %v2268_v31 = vld [vmem:[%s7528_s13 + $0x30] sm:$0xff] }
 0x9d0   :  { %v6457_v32 = vpop.eup %6456 }
 0x9d1   :  { %v1877_v33 = vmul.f32 %v6457_v32, %v6453_v17  ;;  %v2269_v32 = vld [vmem:[%s7528_s13 + $0x38] sm:$0xff] }
 0x9d3   :  { %5762 = vmatmul.mubr.msk.f32.vlgmr.msra.gmra.mrb[22].mxu0 %vm504_vm3, %v1877_v33  ;;  %v6244_v33 = vpack.c.bf16 %v2269_v32, %v2268_v31  ;;  %v5148_v32 = vld [vmem:[%s7565_s6 + $0xa0] sm:$0xff] }
 0x9d4   :  { %6219 = vmatpush3.bf16.msra.mxu0 %v6216_v36 }
 0x9d5   :  { %6233 = vmatprep.subr.bf16.mxu0 %v6232_v4 }
 0xaa2   :  { %v1947_v37 = vpop.f32.mrb[18].mxu1 }
 0xaa3   :  { %v5758_v38 = vpop.f32.mrb[19].mxu1  ;;  %5768 = vmatprep.mubr.msk.f32.mxu0 %vm351_vm2, %v1947_v37 }
 0xaa6   :  { %v2020_v39 = vpop.f32.mrb[22].mxu0 }
 0xaa7   :  { %v5763_v40 = vpop.f32.mrb[23].mxu0  ;;  %5769 = vmatmul.mubr.msk.f32.vlgmr.msra.gmra.mrb[14].mxu0 %vm351_vm2, %v2020_v39 }
 0xaa8   :  { %6235 = vmatpush3.bf16.msra.mxu0 %v6232_v4  ;;  %v5130_v4 = vld [vmem:[%s7560_s24 + $0xb0] sm:$0xff] }
 0xaa9   :  { %6237 = vmatprep.subr.bf16.mxu0 %v6236_v6 }
 0xaac   :  { %6239 = vmatpush3.bf16.msra.mxu0 %v6236_v6  ;;  %v6256_v6 = vpack.c.bf16 %v5131_v5, %v5130_v4  ;;  %v5174_v5 = vld [vmem:[%s7561_s0 + $0xc0] sm:$0xff] }
 0xaad   :  { %6241 = vmatprep.subr.bf16.mxu0 %v6240_v9 }
 0xab0   :  { %6243 = vmatpush3.bf16.msra.mxu0 %v6240_v9  ;;  %v6268_v9 = vpack.c.bf16 %v5141_v8, %v5140_v7  ;;  %v5164_v8 = vld [vmem:[%s7560_s24 + $0xc0] sm:$0xff] }
 0xab1   :  { %6245 = vmatprep.subr.bf16.mxu0 %v6244_v33 }
 0xab4   :  { %6247 = vmatpush3.bf16.msra.mxu0 %v6244_v33  ;;  %v5149_v33 = vld [vmem:[%s7565_s6 + $0xa8] sm:$0xff] }
 0xb7a   :  { %v5770_v42 = vpop.f32.mrb[14].mxu0 }
 0xb7b   :  { %v2118_v43 = vadd.f32 %v5770_v42, %v5115_v41  ;;  %v2099_v44 = vpop.f32.mrb[15].mxu0 }
 0xb7c   :  { %v2117_v45 = vadd.f32 %v5115_v41, %v2099_v44  ;;  %v5121_v41 = vld [vmem:[%s7532_s14] ss:$0 sm:$0xff] }
 0xb7d   :  { %v2120_v28 = vadd.f32 %v2118_v43, %v6669_v19 }
 0xb7e   :  { %v2119_v46 = vadd.f32 %v2117_v45, %v6660_v16  ;;  %v2166_v16 = vld [vmem:[%s7527_s11] sm:$0xff] }
 0xb7f   :  { %v2126_v47 = vsel %vm91_vm0, %v2120_v28, 0.0  ;;  %v6220_v58 = vpack.c.bf16 %v2167_v57, %v2166_v16  ;;  %v5126_v16 = vld [vmem:[%s7560_s24 + $0x90] sm:$0xff]  ;;  %v5127_v57 = vld [vmem:[%s7560_s24 + $0x98] sm:$0xff] }
 0xb80   :  { %2127 = vadd.xlane.f32.xlu1 %v2126_v47  ;;  %v2123_v26 = vsel %vm91_vm0, %v2119_v46, 0.0 }
 0xb81   :  { %2124 = vadd.xlane.f32.xlu0 %v2123_v26  ;;  %6221 = vmatprep.subr.bf16.mxu1 %v6220_v58 }
 0xb82   :  { %6223 = vmatpush3.bf16.msra.mxu1 %v6220_v58  ;;  %v6248_v58 = vpack.c.bf16 %v5127_v57, %v5126_v16 }
 0xb83   :  { %6225 = vmatprep.subr.bf16.mxu1 %v6224_v61 }
 0xb86   :  { %6227 = vmatpush3.bf16.msra.mxu1 %v6224_v61  ;;  %v6260_v61 = vpack.c.bf16 %v5137_v60, %v5136_v59 }
 0xb87   :  { %6229 = vmatprep.subr.bf16.mxu1 %v6228_v0 }
 0xb88   :  { %6261 = vmatprep.subr.bf16.mxu0 %v6260_v61 }
 0xb8a   :  { %6231 = vmatpush3.bf16.msra.mxu1 %v6228_v0  ;;  %v6252_v0 = vpack.c.bf16 %v5129_v63, %v5128_v62 }
 0xb8b   :  { %6249 = vmatprep.subr.bf16.mxu1 %v6248_v58 }
 0xc0d   :  { %v2128_v48 = vpop.xlane.xlu1 %2127 }
 0xc0e   :  { %v2131_v49 = vmul.f32 0.020833334, %v2128_v48  ;;  %v2125_v50 = vpop.xlane.xlu0 %2124 }
 0xc0f   :  { %v2130_v51 = vmul.f32 0.020833334, %v2125_v50 }
 0xc10   :  { %v2133_v52 = vsub.f32 %v2120_v28, %v2131_v49 }
 0xc11   :  { %v2132_v53 = vsub.f32 %v2119_v46, %v2130_v51 }
 0xc12   :  { %v2135_v54 = vmul.f32 %v2133_v52, %v2133_v52 }
 0xc13   :  { %v2134_v55 = vmul.f32 %v2132_v53, %v2132_v53 }
 0xc14   :  { %v2139_v56 = vsel %vm91_vm0, %v2135_v54, 0.0 }
 0xc15   :  { %2140 = vadd.xlane.f32.xlu1 %v2139_v56  ;;  %v2136_v19 = vsel %vm91_vm0, %v2134_v55, 0.0 }
 0xc16   :  { %2137 = vadd.xlane.f32.xlu0 %v2136_v19 }
 0xca2   :  { %v2141_v10 = vpop.xlane.xlu1 %2140 }
 0xca3   :  { %v2143_v11 = vmul.f32 0.020833334, %v2141_v10  ;;  %v2138_v12 = vpop.xlane.xlu0 %2137  ;;  %v5146_v10 = vld [vmem:[%s7565_s6 + $0x90] sm:$0xff] }
 0xca4   :  { %v2142_v13 = vmul.f32 0.020833334, %v2138_v12 }
 0xca5   :  { %v2145_v14 = vadd.f32 1e-05, %v2143_v11  ;;  %v5147_v11 = vld [vmem:[%s7565_s6 + $0x98] sm:$0xff] }
 0xca6   :  { %v2144_v15 = vadd.f32 1e-05, %v2142_v13  ;;  %v6272_v12 = vpack.c.bf16 %v5147_v11, %v5146_v10 }
 0xca7   :  { %6458 = vrsqrt.f32 %v2145_v14 }
 0xca8   :  { %6460 = vrsqrt.f32 %v2144_v15 }
 0xcb1   :  { %v6459_v17 = vpop.eup %6458 }
 0xcb2   :  { %v6461_v21 = vpop.eup %6460  ;;  %v2149_v22 = vmul.f32 %v6459_v17, %v2133_v52 }
 0xcb3   :  { %v2148_v23 = vmul.f32 %v6461_v21, %v2132_v53 }
 0xcb4   :  { %v2157_v25 = vmul.f32 %v5116_v18, %v2149_v22 }
 0xcb5   :  { %v2156_v27 = vmul.f32 %v5116_v18, %v2148_v23  ;;  %v5124_v23 = vld [vmem:[%s7533_s17] ss:$0 sm:$0xff] }
 0xcb6   :  { %v2165_v30 = vadd.f32 %v5117_v24, %v2157_v25 }
 0xcb7   :  { %v2164_v29 = vadd.f32 %v5117_v24, %v2156_v27 }
 0xcb9   :  { %5783 = vmatprep.mubr.msk.f32.mxu1 %vm91_vm0, %v2164_v29 }
 0xcba   :  { %5784 = vmatmul.mubr.msk.f32.vlgmr.msra.gmra.mrb[20].mxu1 %vm91_vm0, %v2165_v30 }
 0xcbb   :  { %6251 = vmatpush3.bf16.msra.mxu1 %v6248_v58 }
 0xcbc   :  { %6253 = vmatprep.subr.bf16.mxu1 %v6252_v0 }
 0xcbf   :  { %6255 = vmatpush3.bf16.msra.mxu1 %v6252_v0 }
 0xcc0   :  { %6257 = vmatprep.subr.bf16.mxu1 %v6256_v6 }
 0xcc3   :  { %6259 = vmatpush3.bf16.msra.mxu1 %v6256_v6  ;;  %v5175_v6 = vld [vmem:[%s7561_s0 + $0xc8] sm:$0xff] }
 0xcc4   :  { %6273 = vmatprep.subr.bf16.mxu1 %v6272_v12  ;;  %v6296_v7 = vpack.c.bf16 %v5175_v6, %v5174_v5 }
 0xd8d   :  { %v5785_v35 = vpop.f32.mrb[20].mxu1 }
 0xd8e   :  { %v2257_v36 = vadd.f32 %v5785_v35, %v5118_v34  ;;  %v2251_v37 = vpop.f32.mrb[21].mxu1 }
 0xd8f   :  { %v2252_v38 = vadd.f32 %v5118_v34, %v2251_v37  ;;  %v5150_v37 = vld [vmem:[%s7565_s6 + $0xb0] sm:$0xff] }
 0xd90   :  { %v2261_v40 = vmax.f32 %v2257_v36, 0.0  ;;  %v6276_v36 = vpack.c.bf16 %v5149_v33, %v5148_v32 }
 0xd91   :  { %v2260_v39 = vmax.f32 %v2252_v38, 0.0  ;;  %v5151_v38 = vld [vmem:[%s7565_s6 + $0xb8] sm:$0xff] }
 0xd93   :  { %5802 = vmatprep.mubr.msk.f32.mxu0 %vm2277_vm4, %v2260_v39  ;;  %v6280_v39 = vpack.c.bf16 %v5151_v38, %v5150_v37  ;;  %v5185_v37 = vld [vmem:[%s7565_s6 + $0xc8] sm:$0xff] }
 0xd94   :  { %5803 = vmatmul.mubr.msk.f32.vlgmr.msra.gmra.mrb[24].mxu0 %vm2277_vm4, %v2261_v40  ;;  %v5133_v40 = vld [vmem:[%s7563_s26 + $0x3] ss:$0 sm:$0xff] }
 0xd95   :  { %6263 = vmatpush3.bf16.msra.mxu0 %v6260_v61 }
 0xd96   :  { %6265 = vmatprep.subr.bf16.mxu0 %v6264_v3 }
 0xd99   :  { %6267 = vmatpush3.bf16.msra.mxu0 %v6264_v3 }
 0xd9a   :  { %6269 = vmatprep.subr.bf16.mxu0 %v6268_v9 }
 0xd9d   :  { %6271 = vmatpush3.bf16.msra.mxu0 %v6268_v9  ;;  %v5165_v9 = vld [vmem:[%s7560_s24 + $0xc8] sm:$0xff] }
 0xd9e   :  { %5850 = vmatprep.subr.mxu0 %v6498_v20  ;;  %v6284_v10 = vpack.c.bf16 %v5165_v9, %v5164_v8 }
 0xe67   :  { %v5804_v42 = vpop.f32.mrb[24].mxu0 }
 0xe68   :  { %v2356_v43 = vadd.f32 %v5804_v42, %v5121_v41  ;;  %v2350_v44 = vpop.f32.mrb[25].mxu0 }
 0xe69   :  { %v2351_v45 = vadd.f32 %v5121_v41, %v2350_v44  ;;  %v5143_v41 = vld [vmem:[%s7564_s9 + $0x3] ss:$0 sm:$0xff] }
 0xe6a   :  { %v2360_v28 = vadd.f32 %v2356_v43, %v2165_v30 }
 0xe6b   :  { %v2359_v46 = vadd.f32 %v2351_v45, %v2164_v29  ;;  %v5125_v29 = vld [vmem:[%s7534_s18] ss:$0 sm:$0xff] }
 0xe6c   :  { %v2366_v47 = vsel %vm91_vm0, %v2360_v28, 0.0 }
 0xe6d   :  { %2367 = vadd.xlane.f32.xlu1 %v2366_v47  ;;  %v2363_v26 = vsel %vm91_vm0, %v2359_v46, 0.0 }
 0xe6e   :  { %2364 = vadd.xlane.f32.xlu0 %v2363_v26 }
 0xefa   :  { %v2368_v48 = vpop.xlane.xlu1 %2367 }
 0xefb   :  { %v2370_v49 = vmul.f32 0.020833334, %v2368_v48  ;;  %v2365_v50 = vpop.xlane.xlu0 %2364 }
 0xefc   :  { %v2369_v51 = vmul.f32 0.020833334, %v2365_v50  ;;  %v5153_v50 = vld [vmem:[%s7566_s30 + $0x3] ss:$0 sm:$0xff] }
 0xefd   :  { %v2372_v52 = vsub.f32 %v2360_v28, %v2370_v49 }
 0xefe   :  { %v2371_v53 = vsub.f32 %v2359_v46, %v2369_v51 }
 0xeff   :  { %v2374_v54 = vmul.f32 %v2372_v52, %v2372_v52 }
 0xf00   :  { %v2373_v55 = vmul.f32 %v2371_v53, %v2371_v53 }
 0xf01   :  { %v2378_v56 = vsel %vm91_vm0, %v2374_v54, 0.0 }
 0xf02   :  { %2379 = vadd.xlane.f32.xlu1 %v2378_v56  ;;  %v2375_v19 = vsel %vm91_vm0, %v2373_v55, 0.0 }
 0xf03   :  { %2376 = vadd.xlane.f32.xlu0 %v2375_v19 }
 0xf8f   :  { %v2380_v13 = vpop.xlane.xlu1 %2379 }
 0xf90   :  { %v2382_v14 = vmul.f32 0.020833334, %v2380_v13  ;;  %v2377_v15 = vpop.xlane.xlu0 %2376  ;;  %v5176_v13 = vld [vmem:[%s7561_s0 + $0xd0] sm:$0xff] }
 0xf91   :  { %v2381_v17 = vmul.f32 0.020833334, %v2377_v15 }
 0xf92   :  { %v2384_v18 = vadd.f32 1e-05, %v2382_v14  ;;  %v5177_v14 = vld [vmem:[%s7561_s0 + $0xd8] sm:$0xff] }
 0xf93   :  { %v2383_v21 = vadd.f32 1e-05, %v2381_v17  ;;  %v5166_v17 = vld [vmem:[%s7560_s24 + $0xd0] sm:$0xff] }
 0xf94   :  { %6462 = vrsqrt.f32 %v2384_v18  ;;  %v5167_v18 = vld [vmem:[%s7560_s24 + $0xd8] sm:$0xff] }
 0xf95   :  { %6464 = vrsqrt.f32 %v2383_v21 }
 0xf9e   :  { %v6463_v22 = vpop.eup %6462 }
 0xf9f   :  { %v6465_v24 = vpop.eup %6464  ;;  %v2388_v25 = vmul.f32 %v6463_v22, %v2372_v52 }
 0xfa0   :  { %v2387_v27 = vmul.f32 %v6465_v24, %v2371_v53  ;;  %v6300_v24 = vpack.c.bf16 %v5177_v14, %v5176_v13  ;;  %v5206_v14 = vld [vmem:[%s7560_s24 + $0xf0] sm:$0xff] }
 0xfa1   :  { %v2396_v30 = vmul.f32 %v5124_v23, %v2388_v25  ;;  %v5178_v25 = vld [vmem:[%s7561_s0 + $0xe0] sm:$0xff] }
 0xfa2   :  { %v2395_v31 = vmul.f32 %v5124_v23, %v2387_v27  ;;  %v5179_v27 = vld [vmem:[%s7561_s0 + $0xe8] sm:$0xff] }
 0xfa3   :  { %v7080_v35 = vadd.f32 %v5125_v29, %v2396_v30  ;;  %v5168_v30 = vld [vmem:[%s7560_s24 + $0xe0] sm:$0xff]  ;;  %v6304_v32 = vpack.c.bf16 %v5179_v27, %v5178_v25  ;;  %v5209_v25 = vld [vmem:[%s7560_s24 + $0x108] sm:$0xff] }
 0xfa4   :  { %v7078_v34 = vadd.f32 %v5125_v29, %v2395_v31  ;;  %v6288_v29 = vpack.c.bf16 %v5167_v18, %v5166_v17  ;;  %v5169_v31 = vld [vmem:[%s7560_s24 + $0xe8] sm:$0xff] }
 0xfa5   :  { %v6292_v33 = vpack.c.bf16 %v5169_v31, %v5168_v30  ;;  %v5210_v31 = vld [vmem:[%s7560_s24 + $0x110] sm:$0xff] }
 0xfa6   :  { %5817 = vmatprep.mubr.msk.f32.mxu1 %vm91_vm0, %v7078_v34  ;;  %5832 = vmatprep.mubr.msk.f32.mxu0 %vm91_vm0, %v7078_v34 }
 0xfa7   :  { %5818 = vmatmul.mubr.msk.f32.vlgmr.msra.gmra.mrb[22].mxu1 %vm91_vm0, %v7080_v35  ;;  %5833 = vmatmul.mubr.msk.f32.vlgmr.msra.gmra.mrb[26].mxu0 %vm91_vm0, %v7080_v35 }
 0xfa8   :  { %6275 = vmatpush3.bf16.msra.mxu1 %v6272_v12  ;;  %5847 = vmatprep.mubr.msk.f32.mxu1 %vm91_vm0, %v7078_v34 }
 0xfa9   :  { %6277 = vmatprep.subr.bf16.mxu1 %v6276_v36  ;;  %5852 = vmatprep.mubr.msk.f32.mxu0 %vm6499_vm1, %v6498_v20 }
 0xfac   :  { %6279 = vmatpush3.bf16.msra.mxu1 %v6276_v36  ;;  %v5184_v36 = vld [vmem:[%s7565_s6 + $0xc0] sm:$0xff] }
 0xfad   :  { %6281 = vmatprep.subr.bf16.mxu1 %v6280_v39  ;;  %v6308_v38 = vpack.c.bf16 %v5185_v37, %v5184_v36  ;;  %v5226_v36 = vld [vmem:[%s7565_s6 + $0xf0] sm:$0xff]  ;;  %v5227_v37 = vld [vmem:[%s7565_s6 + $0xf8] sm:$0xff] }
 0xfb0   :  { %6283 = vmatpush3.bf16.msra.mxu1 %v6280_v39  ;;  %v5186_v39 = vld [vmem:[%s7565_s6 + $0xd0] sm:$0xff] }
 0xfb1   :  { %5855 = vmatprep.subr.mxu1 %v6498_v20 }
 0xfb3   :  { %5848 = vmatmul.mubr.msk.f32.vlgmr.msra.gmra.mrb[24].mxu1 %vm91_vm0, %v7080_v35 }
 0xfb4   :  { %5857 = vmatprep.mubr.msk.f32.mxu1 %vm6499_vm1, %v6498_v20 }
0x107a   :  { %v5819_v42 = vpop.f32.mrb[22].mxu1  ;;  %v5834_v43 = vpop.f32.mrb[26].mxu0 }
0x107b   :  { %v2498_v44 = vadd.f32 %v5819_v42, %v5133_v40  ;;  %v2588_v45 = vadd.f32 %v5834_v43, %v5143_v41  ;;  %v2492_v28 = vpop.f32.mrb[23].mxu1  ;;  %v2582_v46 = vpop.f32.mrb[27].mxu0  ;;  %v5188_v42 = vld [vmem:[%s7565_s6 + $0xe0] sm:$0xff]  ;;  %v5189_v43 = vld [vmem:[%s7565_s6 + $0xe8] sm:$0xff] }
0x107c   :  { %v2493_v47 = vadd.f32 %v5133_v40, %v2492_v28  ;;  %v2583_v26 = vadd.f32 %v5143_v41, %v2582_v46  ;;  %v5187_v40 = vld [vmem:[%s7565_s6 + $0xd8] sm:$0xff] }
0x107d   :  { %v2682_v48 = vmul.f32 0.25, %v2498_v44  ;;  %5856 = vmatpush3.xpose.msk.msra.mxu1 %vm351_vm2, %v2588_v45  ;;  %v6312_v41 = vpack.c.bf16 %v5187_v40, %v5186_v39  ;;  %v6316_v44 = vpack.c.bf16 %v5189_v43, %v5188_v42  ;;  %v5228_v39 = vld [vmem:[%s7565_s6 + $0x100] sm:$0xff]  ;;  %v5229_v40 = vld [vmem:[%s7565_s6 + $0x108] sm:$0xff]  ;;  %v5230_v42 = vld [vmem:[%s7565_s6 + $0x110] sm:$0xff] }
0x107e   :  { %v2681_v49 = vmul.f32 0.25, %v2493_v47  ;;  %5851 = vmatpush3.xpose.msk.msra.mxu0 %vm351_vm2, %v2583_v26  ;;  %5865 = vmatprep.subr.mxu1 %v6498_v20  ;;  %v5181_v26 = vld [vmem:[%s7564_s9 + $0x4] ss:$0 sm:$0xff]  ;;  %v5231_v43 = vld [vmem:[%s7565_s6 + $0x118] sm:$0xff] }
0x107f   :  { %5860 = vmatprep.subr.mxu0 %v6498_v20 }
0x1080   :  { %5858 = vmatmul.mubr.msk.f32.vlgmr.msra.gmra.mrb[26].mxu1 %vm351_vm2, %v2682_v48 }
0x1081   :  { %5853 = vmatmul.mubr.msk.f32.vlgmr.msra.gmra.mrb[28].mxu0 %vm351_vm2, %v2681_v49  ;;  %5867 = vmatprep.mubr.msk.f32.mxu1 %vm6499_vm1, %v6498_v20  ;;  %v5171_v49 = vld [vmem:[%s7563_s26 + $0x4] ss:$0 sm:$0xff] }
0x1082   :  { %5862 = vmatprep.mubr.msk.f32.mxu0 %vm6499_vm1, %v6498_v20 }
0x1086   :  { %v5849_v51 = vpop.f32.mrb[24].mxu1 }
0x1087   :  { %v2678_v52 = vadd.f32 %v5849_v51, %v5153_v50  ;;  %v2672_v53 = vpop.f32.mrb[25].mxu1 }
0x1088   :  { %v2673_v54 = vadd.f32 %v5153_v50, %v2672_v53 }
0x1089   :  { %5866 = vmatpush3.msra.mxu1 %v2678_v52 }
0x108a   :  { %5861 = vmatpush3.msra.mxu0 %v2673_v54  ;;  %6297 = vmatprep.subr.bf16.mxu1 %v6296_v7 }
0x108b   :  { %6285 = vmatprep.subr.bf16.mxu0 %v6284_v10 }
0x1153   :  { %v2831_v55 = vpop.f32.mrb[26].mxu1 }
0x1154   :  { %v2755_v56 = vpop.f32.mrb[28].mxu0  ;;  %v5859_v19 = vpop.f32.mrb[27].mxu1  ;;  %v2838_v16 = vsel %vm504_vm3, %v2831_v55, -inf }
0x1155   :  { %2839 = vmax.xlane.f32.xlu0 %v2838_v16  ;;  %v5854_v57 = vpop.f32.mrb[29].mxu0  ;;  %v2835_v58 = vsel %vm504_vm3, %v2755_v56, -inf }
0x1156   :  { %2836 = vmax.xlane.f32.xlu1 %v2835_v58  ;;  %v5191_v57 = vld [vmem:[%s7566_s30 + $0x4] ss:$0 sm:$0xff] }
0x11e2   :  { %v2840_v59 = vpop.xlane.xlu0 %2839 }
0x11e3   :  { %v2842_v60 = vsub.f32 %v2831_v55, %v2840_v59  ;;  %v2837_v61 = vpop.xlane.xlu1 %2836 }
0x11e4   :  { %v2841_v62 = vsub.f32 %v2755_v56, %v2837_v61 }
0x11e5   :  { %v2845_v63 = vmul.f32 1.442695, %v2842_v60 }
0x11e6   :  { %v2843_v0 = vmul.f32 1.442695, %v2841_v62 }
0x11e7   :  { %6466 = vpow2.f32 %v2845_v63 }
0x11e8   :  { %6468 = vpow2.f32 %v2843_v0 }
0x11f1   :  { %v6467_v1 = vpop.eup %6466 }
0x11f2   :  { %v6469_v2 = vpop.eup %6468  ;;  %v2850_v3 = vsel %vm504_vm3, %v6467_v1, 0.0 }
0x11f3   :  { %2851 = vadd.xlane.f32.xlu0 %v2850_v3  ;;  %v2847_v4 = vsel %vm504_vm3, %v6469_v2, 0.0 }
0x11f4   :  { %2848 = vadd.xlane.f32.xlu1 %v2847_v4 }
0x1280   :  { %v2852_v11 = vpop.xlane.xlu0 %2851 }
0x1281   :  { %6470 = vrcp.f32 %v2852_v11  ;;  %v2849_v12 = vpop.xlane.xlu1 %2848 }
0x1282   :  { %6472 = vrcp.f32 %v2849_v12 }
0x128b   :  { %v6471_v15 = vpop.eup %6470 }
0x128c   :  { %v6473_v21 = vpop.eup %6472  ;;  %v2856_v22 = vmul.f32 %v6471_v15, %v6467_v1  ;;  %v5207_v15 = vld [vmem:[%s7560_s24 + $0xf8] sm:$0xff] }
0x128d   :  { %v2855_v23 = vmul.f32 %v6473_v21, %v6469_v2  ;;  %v6328_v17 = vpack.c.bf16 %v5207_v15, %v5206_v14 }
0x128e   :  { %5868 = vmatmul.mubr.msk.f32.vlgmr.msra.gmra.mrb[28].mxu1 %vm504_vm3, %v2856_v22 }
0x128f   :  { %6299 = vmatpush3.bf16.msra.mxu1 %v6296_v7  ;;  %5863 = vmatmul.mubr.msk.f32.vlgmr.msra.gmra.mrb[30].mxu0 %vm504_vm3, %v2855_v23 }
0x1290   :  { %6287 = vmatpush3.bf16.msra.mxu0 %v6284_v10  ;;  %5897 = vmatprep.mubr.msk.f32.mxu1 %vm91_vm0, %v7078_v34 }
0x1291   :  { %5882 = vmatprep.mubr.msk.f32.mxu0 %vm91_vm0, %v7078_v34  ;;  %6301 = vmatprep.subr.bf16.mxu1 %v6300_v24 }
0x1292   :  { %6289 = vmatprep.subr.bf16.mxu0 %v6288_v29 }
0x1293   :  { %6303 = vmatpush3.bf16.msra.mxu1 %v6300_v24  ;;  %v5208_v24 = vld [vmem:[%s7560_s24 + $0x100] sm:$0xff] }
0x1294   :  { %6291 = vmatpush3.bf16.msra.mxu0 %v6288_v29  ;;  %6305 = vmatprep.subr.bf16.mxu1 %v6304_v32  ;;  %v6332_v30 = vpack.c.bf16 %v5209_v25, %v5208_v24 }
0x1295   :  { %6293 = vmatprep.subr.bf16.mxu0 %v6292_v33 }
0x1297   :  { %6307 = vmatpush3.bf16.msra.mxu1 %v6304_v32  ;;  %v5211_v32 = vld [vmem:[%s7560_s24 + $0x118] sm:$0xff] }
0x1298   :  { %6295 = vmatpush3.bf16.msra.mxu0 %v6292_v33  ;;  %5915 = vmatprep.subr.mxu1 %v6498_v20  ;;  %v6336_v33 = vpack.c.bf16 %v5211_v32, %v5210_v31 }
0x1299   :  { %6309 = vmatprep.subr.bf16.mxu0 %v6308_v38 }
0x129a   :  { %5898 = vmatmul.mubr.msk.f32.vlgmr.msra.gmra.mrb[30].mxu1 %vm91_vm0, %v7080_v35 }
0x129b   :  { %5883 = vmatmul.mubr.msk.f32.vlgmr.msra.gmra.mrb[32].mxu0 %vm91_vm0, %v7080_v35  ;;  %5917 = vmatprep.mubr.msk.f32.mxu1 %vm6499_vm1, %v6498_v20 }
0x129c   :  { %6311 = vmatpush3.bf16.msra.mxu0 %v6308_v38  ;;  %5912 = vmatprep.mubr.msk.f32.mxu0 %vm91_vm0, %v7078_v34  ;;  %v6352_v38 = vpack.c.bf16 %v5227_v37, %v5226_v36 }
0x129d   :  { %6313 = vmatprep.subr.bf16.mxu0 %v6312_v41 }
0x12a0   :  { %6315 = vmatpush3.bf16.msra.mxu0 %v6312_v41  ;;  %v6356_v41 = vpack.c.bf16 %v5229_v40, %v5228_v39 }
0x12a1   :  { %6317 = vmatprep.subr.bf16.mxu0 %v6316_v44 }
0x12a4   :  { %6319 = vmatpush3.bf16.msra.mxu0 %v6316_v44  ;;  %v6360_v44 = vpack.c.bf16 %v5231_v43, %v5230_v42  ;;  %v5242_v42 = vld [vmem:[%s7567_s27 + $0x50] sm:$0xff]  ;;  %v5243_v43 = vld [vmem:[%s7567_s27 + $0x58] sm:$0xff] }
0x12a5   :  { %5930 = vmatprep.subr.mxu0 %v6498_v20 }
0x12a7   :  { %5913 = vmatmul.mubr.msk.f32.vlgmr.msra.gmra.mrb[34].mxu0 %vm91_vm0, %v7080_v35 }
0x12a8   :  { %5932 = vmatprep.mubr.msk.f32.mxu0 %vm6499_vm1, %v6498_v20 }
0x1361   :  { %v7202_v45 = vpop.f32.mrb[28].mxu1 }
0x1362   :  { %v7204_v28 = vpop.f32.mrb[30].mxu0  ;;  %v5869_v46 = vpop.f32.mrb[29].mxu1 }
0x1363   :  { %v5864_v47 = vpop.f32.mrb[31].mxu0  ;;  %v5200_v46 = vld [vmem:[%s7567_s27 + $0x40] sm:$0xff] }
0x1364   :  { %v5201_v47 = vld [vmem:[%s7567_s27 + $0x48] sm:$0xff] }
0x136d   :  { %v5899_v48 = vpop.f32.mrb[30].mxu1 }
0x136e   :  { %v5884_v50 = vpop.f32.mrb[32].mxu0  ;;  %v3177_v51 = vpop.f32.mrb[31].mxu1  ;;  %v3183_v19 = vadd.f32 %v5899_v48, %v5181_v26  ;;  %v5162_v48 = vld [vmem:[%s7567_s27 + $0x30] sm:$0xff] }
0x136f   :  { %v3178_v52 = vadd.f32 %v5181_v26, %v3177_v51  ;;  %v3087_v53 = vpop.f32.mrb[33].mxu0  ;;  %v3093_v55 = vadd.f32 %v5884_v50, %v5171_v49  ;;  %v6320_v26 = vpack.c.bf16 %v5201_v47, %v5200_v46 }
0x1370   :  { %v3088_v54 = vadd.f32 %v5171_v49, %v3087_v53  ;;  %v5163_v49 = vld [vmem:[%s7567_s27 + $0x38] sm:$0xff] }
0x1371   :  { %5916 = vmatpush3.xpose.msk.msra.mxu1 %vm351_vm2, %v3178_v52  ;;  %v3277_v16 = vmul.f32 0.25, %v3093_v55  ;;  %v6324_v50 = vpack.c.bf16 %v5163_v49, %v5162_v48  ;;  %v5216_v52 = vld [vmem:[%s7561_s0 + $0xf0] sm:$0xff]  ;;  %v5217_v53 = vld [vmem:[%s7561_s0 + $0xf8] sm:$0xff]  ;;  %v5247_v49 = vld [vmem:[%s7526_s10 + $0x1] ss:$0 sm:$0xff] }
0x1372   :  { %v3276_v56 = vmul.f32 0.25, %v3088_v54  ;;  %5920 = vmatprep.subr.mxu1 %v6498_v20  ;;  %v6340_v55 = vpack.c.bf16 %v5217_v53, %v5216_v52 }
0x1374   :  { %5918 = vmatmul.mubr.msk.f32.vlgmr.msra.gmra.mrb[32].mxu1 %vm351_vm2, %v3276_v56 }
0x1375   :  { %5921 = vmatpush3.xpose.msk.msra.mxu1 %vm351_vm2, %v3183_v19  ;;  %5922 = vmatprep.mubr.msk.f32.mxu1 %vm6499_vm1, %v6498_v20 }
0x1376   :  { %5925 = vmatprep.subr.mxu1 %v6498_v20 }
0x1378   :  { %5923 = vmatmul.mubr.msk.f32.vlgmr.msra.gmra.mrb[34].mxu1 %vm351_vm2, %v3277_v16  ;;  %v5218_v16 = vld [vmem:[%s7561_s0 + $0x100] sm:$0xff] }
0x1379   :  { %5927 = vmatprep.mubr.msk.f32.mxu1 %vm6499_vm1, %v6498_v20 }
0x137a   :  { %v5914_v58 = vpop.f32.mrb[34].mxu0 }
0x137b   :  { %v3273_v59 = vadd.f32 %v5914_v58, %v5191_v57  ;;  %v3267_v60 = vpop.f32.mrb[35].mxu0 }
0x137c   :  { %v3268_v61 = vadd.f32 %v5191_v57, %v3267_v60  ;;  %v5219_v57 = vld [vmem:[%s7561_s0 + $0x108] sm:$0xff]  ;;  %v5221_v60 = vld [vmem:[%s7561_s0 + $0x118] sm:$0xff] }
0x137d   :  { %5931 = vmatpush3.msra.mxu0 %v3273_v59  ;;  %v6344_v58 = vpack.c.bf16 %v5219_v57, %v5218_v16  ;;  %v5220_v59 = vld [vmem:[%s7561_s0 + $0x110] sm:$0xff] }
0x137e   :  { %5926 = vmatpush3.msra.mxu1 %v3268_v61  ;;  %6329 = vmatprep.subr.bf16.mxu0 %v6328_v17 }
0x137f   :  { %6321 = vmatprep.subr.bf16.mxu1 %v6320_v26 }
0x1447   :  { %v3350_v62 = vpop.f32.mrb[32].mxu1 }
0x1448   :  { %v5919_v63 = vpop.f32.mrb[33].mxu1  ;;  %v3430_v0 = vsel %vm504_vm3, %v3350_v62, -inf }
0x1449   :  { %3431 = vmax.xlane.f32.xlu0 %v3430_v0 }
0x144b   :  { %v3426_v1 = vpop.f32.mrb[34].mxu1 }
0x144c   :  { %v5924_v2 = vpop.f32.mrb[35].mxu1  ;;  %v3433_v3 = vsel %vm504_vm3, %v3426_v1, -inf }
0x144d   :  { %3434 = vmax.xlane.f32.xlu1 %v3433_v3  ;;  %v5213_v3 = vld [vmem:[%s7563_s26 + $0x5] ss:$0 sm:$0xff] }
0x14d6   :  { %v3432_v4 = vpop.xlane.xlu0 %3431 }
0x14d7   :  { %v3436_v5 = vsub.f32 %v3350_v62, %v3432_v4  ;;  %v5223_v4 = vld [vmem:[%s7564_s9 + $0x5] ss:$0 sm:$0xff] }
0x14d9   :  { %v3438_v6 = vmul.f32 1.442695, %v3436_v5 }
0x14da   :  { %v3435_v7 = vpop.xlane.xlu1 %3434 }
0x14db   :  { %6474 = vpow2.f32 %v3438_v6  ;;  %v3437_v8 = vsub.f32 %v3426_v1, %v3435_v7 }
0x14dd   :  { %v3440_v9 = vmul.f32 1.442695, %v3437_v8 }
0x14df   :  { %6476 = vpow2.f32 %v3440_v9 }
0x14e5   :  { %v6475_v10 = vpop.eup %6474 }
0x14e6   :  { %v3442_v11 = vsel %vm504_vm3, %v6475_v10, 0.0 }
0x14e7   :  { %3443 = vadd.xlane.f32.xlu0 %v3442_v11 }
0x14e9   :  { %v6477_v12 = vpop.eup %6476 }
0x14ea   :  { %v3445_v13 = vsel %vm504_vm3, %v6477_v12, 0.0 }
0x14eb   :  { %3446 = vadd.xlane.f32.xlu1 %v3445_v13 }
0x1574   :  { %v3444_v18 = vpop.xlane.xlu0 %3443 }
0x1575   :  { %6478 = vrcp.f32 %v3444_v18 }
0x1578   :  { %v3447_v21 = vpop.xlane.xlu1 %3446 }
0x1579   :  { %6480 = vrcp.f32 %v3447_v21 }
0x157f   :  { %v6479_v22 = vpop.eup %6478 }
0x1580   :  { %v3450_v23 = vmul.f32 %v6479_v22, %v6475_v10 }
0x1582   :  { %5928 = vmatmul.mubr.msk.f32.vlgmr.msra.gmra.mrb[36].mxu1 %vm504_vm3, %v3450_v23 }
0x1583   :  { %v6481_v27 = vpop.eup %6480  ;;  %6323 = vmatpush3.bf16.msra.mxu1 %v6320_v26 }
0x1584   :  { %v3451_v29 = vmul.f32 %v6481_v27, %v6477_v12  ;;  %6325 = vmatprep.subr.bf16.mxu1 %v6324_v50 }
0x1586   :  { %5933 = vmatmul.mubr.msk.f32.vlgmr.msra.gmra.mrb[36].mxu0 %vm504_vm3, %v3451_v29 }
0x1587   :  { %6331 = vmatpush3.bf16.msra.mxu0 %v6328_v17  ;;  %5961 = vmatprep.mubr.msk.f32.mxu0 %vm91_vm0, %v7078_v34 }
0x1588   :  { %6333 = vmatprep.subr.bf16.mxu0 %v6332_v30 }
0x158b   :  { %6335 = vmatpush3.bf16.msra.mxu0 %v6332_v30 }
0x158c   :  { %6337 = vmatprep.subr.bf16.mxu0 %v6336_v33 }
0x158f   :  { %6339 = vmatpush3.bf16.msra.mxu0 %v6336_v33 }
0x1590   :  { %6353 = vmatprep.subr.bf16.mxu0 %v6352_v38 }
0x1592   :  { %5962 = vmatmul.mubr.msk.f32.vlgmr.msra.gmra.mrb[38].mxu0 %vm91_vm0, %v7080_v35 }
0x1593   :  { %6355 = vmatpush3.bf16.msra.mxu0 %v6352_v38  ;;  %5991 = vmatprep.mubr.msk.f32.mxu0 %vm91_vm0, %v7078_v34 }
0x1594   :  { %6357 = vmatprep.subr.bf16.mxu0 %v6356_v41 }
0x1597   :  { %6359 = vmatpush3.bf16.msra.mxu0 %v6356_v41 }
0x1598   :  { %6361 = vmatprep.subr.bf16.mxu0 %v6360_v44 }
0x159b   :  { %6363 = vmatpush3.bf16.msra.mxu0 %v6360_v44  ;;  %v6364_v44 = vpack.c.bf16 %v5243_v43, %v5242_v42  ;;  %v5259_v42 = vld [vmem:[%s7531_s12 + $0x1] ss:$0 sm:$0xff] }
0x159c   :  { %6004 = vmatprep.subr.mxu0 %v6498_v20 }
0x159e   :  { %5992 = vmatmul.mubr.msk.f32.vlgmr.msra.gmra.mrb[40].mxu0 %vm91_vm0, %v7080_v35 }
0x159f   :  { %6006 = vmatprep.mubr.msk.f32.mxu0 %vm6499_vm1, %v6498_v20 }
0x1655   :  { %v3521_v51 = vpop.f32.mrb[36].mxu1 }
0x1656   :  { %v5929_v54 = vpop.f32.mrb[37].mxu1  ;;  %5939 = vmatprep.mubr.msk.f32.mxu1 %vm351_vm2, %v3521_v51 }
0x1659   :  { %v3594_v56 = vpop.f32.mrb[36].mxu0 }
0x165a   :  { %v5934_v19 = vpop.f32.mrb[37].mxu0  ;;  %5940 = vmatmul.mubr.msk.f32.vlgmr.msra.gmra.mrb[38].mxu1 %vm351_vm2, %v3594_v56 }
0x165b   :  { %6327 = vmatpush3.bf16.msra.mxu1 %v6324_v50  ;;  %5946 = vmatprep.mubr.msk.f32.mxu1 %vm351_vm2, %v7204_v28  ;;  %v6348_v28 = vpack.c.bf16 %v5221_v60, %v5220_v59 }
0x165c   :  { %6341 = vmatprep.subr.bf16.mxu1 %v6340_v55 }
0x1662   :  { %5947 = vmatmul.mubr.msk.f32.vlgmr.msra.gmra.mrb[38].mxu1 %vm351_vm2, %v7202_v45  ;;  %v5233_v45 = vld [vmem:[%s7566_s30 + $0x5] ss:$0 sm:$0xff] }
0x1663   :  { %6343 = vmatpush3.bf16.msra.mxu1 %v6340_v55  ;;  %5976 = vmatprep.mubr.msk.f32.mxu1 %vm91_vm0, %v7078_v34 }
0x1664   :  { %6345 = vmatprep.subr.bf16.mxu1 %v6344_v58 }
0x1665   :  { %v5963_v61 = vpop.f32.mrb[38].mxu0 }
0x1666   :  { %v3844_v62 = vpop.f32.mrb[39].mxu0  ;;  %v3850_v9 = vadd.f32 %v5963_v61, %v5213_v3 }
0x1667   :  { %6347 = vmatpush3.bf16.msra.mxu1 %v6344_v58  ;;  %v3845_v6 = vadd.f32 %v5213_v3, %v3844_v62 }
0x1668   :  { %6349 = vmatprep.subr.bf16.mxu1 %v6348_v28  ;;  %v4034_v12 = vmul.f32 0.25, %v3850_v9  ;;  %v5264_v9 = vld [vmem:[%s7528_s13 + $0x50] sm:$0xff] }
0x1669   :  { %v4033_v10 = vmul.f32 0.25, %v3845_v6 }
0x166b   :  { %6351 = vmatpush3.bf16.msra.mxu1 %v6348_v28 }
0x166c   :  { %5994 = vmatprep.subr.mxu1 %v6498_v20 }
0x166e   :  { %5977 = vmatmul.mubr.msk.f32.vlgmr.msra.gmra.mrb[40].mxu1 %vm91_vm0, %v7080_v35 }
0x166f   :  { %5996 = vmatprep.mubr.msk.f32.mxu1 %vm6499_vm1, %v6498_v20 }
0x1671   :  { %v5993_v63 = vpop.f32.mrb[40].mxu0 }
0x1672   :  { %v4030_v0 = vadd.f32 %v5993_v63, %v5233_v45  ;;  %v4024_v1 = vpop.f32.mrb[41].mxu0  ;;  %v5253_v63 = vld [vmem:[%s7527_s11 + $0x38] sm:$0xff] }
0x1673   :  { %v4025_v2 = vadd.f32 %v5233_v45, %v4024_v1  ;;  %v5254_v1 = vld [vmem:[%s7527_s11 + $0x40] sm:$0xff] }
0x1675   :  { %6005 = vmatpush3.msra.mxu0 %v4025_v2  ;;  %v5255_v2 = vld [vmem:[%s7527_s11 + $0x48] sm:$0xff] }
0x1676   :  { %v6372_v3 = vpack.c.bf16 %v5255_v2, %v5254_v1  ;;  %v6500_v1 = vmov 0.0|0.0   ;;  %v4770_v2 = vld [vmem:[%s7535_s20 + $0x10] sm:$0xff] }
0x1741   :  { %v5978_v5 = vpop.f32.mrb[40].mxu1 }
0x1742   :  { %v3934_v7 = vpop.f32.mrb[41].mxu1  ;;  %v3940_v11 = vadd.f32 %v5978_v5, %v5223_v4  ;;  %v5257_v5 = vld [vmem:[%s7527_s11 + $0x58] sm:$0xff] }
0x1743   :  { %v3935_v8 = vadd.f32 %v5223_v4, %v3934_v7  ;;  %v5256_v4 = vld [vmem:[%s7527_s11 + $0x50] sm:$0xff]  ;;  %v5262_v7 = vld [vmem:[%s7528_s13 + $0x40] sm:$0xff] }
0x1744   :  { %v6376_v6 = vpack.c.bf16 %v5257_v5, %v5256_v4  ;;  %v4772_v5 = vld [vmem:[%s7535_s20 + $0x20] sm:$0xff] }
0x1745   :  { %5995 = vmatpush3.xpose.msk.msra.mxu1 %vm351_vm2, %v3935_v8  ;;  %v5263_v8 = vld [vmem:[%s7528_s13 + $0x48] sm:$0xff] }
0x1746   :  { %5999 = vmatprep.subr.mxu1 %v6498_v20 }
0x1748   :  { %5997 = vmatmul.mubr.msk.f32.vlgmr.msra.gmra.mrb[42].mxu1 %vm351_vm2, %v4033_v10  ;;  %v6380_v10 = vpack.c.bf16 %v5263_v8, %v5262_v7  ;;  %v4762_v8 = vld [vmem:[%s7536_s19] sm:$0xff] }
0x1749   :  { %6000 = vmatpush3.xpose.msk.msra.mxu1 %vm351_vm2, %v3940_v11  ;;  %6001 = vmatprep.mubr.msk.f32.mxu1 %vm6499_vm1, %v6498_v20  ;;  %v5265_v11 = vld [vmem:[%s7528_s13 + $0x58] sm:$0xff] }
0x174a   :  { %6009 = vmatprep.subr.mxu1 %v6498_v20 }
0x174c   :  { %6002 = vmatmul.mubr.msk.f32.vlgmr.msra.gmra.mrb[44].mxu1 %vm351_vm2, %v4034_v12  ;;  %v6384_v12 = vpack.c.bf16 %v5265_v11, %v5264_v9  ;;  %v4763_v9 = vld [vmem:[%s7536_s19 + $0x8] sm:$0xff]  ;;  %v4923_v11 = vld [vmem:[%s7537_s21] sm:$0xff] }
0x174d   :  { %6010 = vmatpush3.msra.mxu1 %v4030_v0  ;;  %6011 = vmatprep.mubr.msk.f32.mxu1 %vm6499_vm1, %v6498_v20 }
0x174e   :  { %6365 = vmatprep.subr.bf16.mxu1 %v6364_v44 }
0x181b   :  { %v4107_v13 = vpop.f32.mrb[42].mxu1 }
0x181c   :  { %v5998_v14 = vpop.f32.mrb[43].mxu1  ;;  %v4187_v15 = vsel %vm504_vm3, %v4107_v13, -inf }
0x181d   :  { %4188 = vmax.xlane.f32.xlu0 %v4187_v15  ;;  %v5267_v14 = vld [vmem:[%s7528_s13 + $0x68] sm:$0xff] }
0x181f   :  { %v4183_v17 = vpop.f32.mrb[44].mxu1 }
0x1820   :  { %v6003_v18 = vpop.f32.mrb[45].mxu1  ;;  %v4190_v21 = vsel %vm504_vm3, %v4183_v17, -inf }
0x1821   :  { %4191 = vmax.xlane.f32.xlu1 %v4190_v21 }
0x18aa   :  { %v4189_v22 = vpop.xlane.xlu0 %4188 }
0x18ab   :  { %v4193_v23 = vsub.f32 %v4107_v13, %v4189_v22  ;;  %v5266_v13 = vld [vmem:[%s7528_s13 + $0x60] sm:$0xff] }
0x18ac   :  { %v6388_v15 = vpack.c.bf16 %v5267_v14, %v5266_v13  ;;  %v4764_v13 = vld [vmem:[%s7536_s19 + $0x10] sm:$0xff]  ;;  %v4765_v14 = vld [vmem:[%s7536_s19 + $0x18] sm:$0xff] }
0x18ad   :  { %v4195_v24 = vmul.f32 1.442695, %v4193_v23 }
0x18ae   :  { %v4192_v25 = vpop.xlane.xlu1 %4191 }
0x18af   :  { %6482 = vpow2.f32 %v4195_v24  ;;  %v4194_v27 = vsub.f32 %v4183_v17, %v4192_v25 }
0x18b1   :  { %v4197_v29 = vmul.f32 1.442695, %v4194_v27  ;;  %v5250_v27 = vld [vmem:[%s7529_s15 + $0x1] ss:$0 sm:$0xff] }
0x18b3   :  { %6484 = vpow2.f32 %v4197_v29 }
0x18b9   :  { %v6483_v30 = vpop.eup %6482 }
0x18ba   :  { %v4199_v31 = vsel %vm504_vm3, %v6483_v30, 0.0 }
0x18bb   :  { %4200 = vadd.xlane.f32.xlu0 %v4199_v31 }
0x18bd   :  { %v6485_v32 = vpop.eup %6484 }
0x18be   :  { %v4202_v33 = vsel %vm504_vm3, %v6485_v32, 0.0 }
0x18bf   :  { %4203 = vadd.xlane.f32.xlu1 %v4202_v33 }
0x1948   :  { %v4201_v36 = vpop.xlane.xlu0 %4200 }
0x1949   :  { %6486 = vrcp.f32 %v4201_v36 }
0x194c   :  { %v4204_v37 = vpop.xlane.xlu1 %4203 }
0x194d   :  { %6488 = vrcp.f32 %v4204_v37 }
0x1953   :  { %v6487_v38 = vpop.eup %6486 }
0x1954   :  { %v4207_v39 = vmul.f32 %v6487_v38, %v6483_v30 }
0x1956   :  { %6007 = vmatmul.mubr.msk.f32.vlgmr.msra.gmra.mrb[42].mxu0 %vm504_vm3, %v4207_v39  ;;  %v5268_v39 = vld [vmem:[%s7528_s13 + $0x70] sm:$0xff] }
0x1957   :  { %v6489_v40 = vpop.eup %6488 }
0x1958   :  { %v4208_v41 = vmul.f32 %v6489_v40, %v6485_v32  ;;  %v5251_v32 = vld [vmem:[%s7530_s16 + $0x1] ss:$0 sm:$0xff]  ;;  %v5269_v40 = vld [vmem:[%s7528_s13 + $0x78] sm:$0xff] }
0x195a   :  { %6012 = vmatmul.mubr.msk.f32.vlgmr.msra.gmra.mrb[46].mxu1 %vm504_vm3, %v4208_v41  ;;  %v6392_v41 = vpack.c.bf16 %v5269_v40, %v5268_v39 }
0x195b   :  { %6367 = vmatpush3.bf16.msra.mxu1 %v6364_v44 }
0x195c   :  { %6381 = vmatprep.subr.bf16.mxu1 %v6380_v10 }
0x1a29   :  { %v4278_v46 = vpop.f32.mrb[42].mxu0 }
0x1a2a   :  { %v6008_v47 = vpop.f32.mrb[43].mxu0  ;;  %6018 = vmatprep.mubr.msk.f32.mxu1 %vm351_vm2, %v4278_v46 }
0x1a2d   :  { %v4351_v26 = vpop.f32.mrb[46].mxu1 }
0x1a2e   :  { %v6013_v48 = vpop.f32.mrb[47].mxu1  ;;  %6019 = vmatmul.mubr.msk.f32.vlgmr.msra.gmra.mrb[38].mxu1 %vm351_vm2, %v4351_v26 }
0x1a2f   :  { %6383 = vmatpush3.bf16.msra.mxu1 %v6380_v10  ;;  %v6406_v10 = vpack.c.bf16 %v4763_v9, %v4762_v8 }
0x1a30   :  { %6385 = vmatprep.subr.bf16.mxu1 %v6384_v12 }
0x1a33   :  { %6387 = vmatpush3.bf16.msra.mxu1 %v6384_v12  ;;  %v4924_v12 = vld [vmem:[%s7537_s21 + $0x8] sm:$0xff] }
0x1a34   :  { %6389 = vmatprep.subr.bf16.mxu1 %v6388_v15 }
0x1a37   :  { %6391 = vmatpush3.bf16.msra.mxu1 %v6388_v15  ;;  %v4760_v15 = vld [vmem:[%s7538_s1] sm:$0x3] }
0x1a38   :  { %6393 = vmatprep.subr.bf16.mxu1 %v6392_v41 }
0x1a3b   :  { %6395 = vmatpush3.bf16.msra.mxu1 %v6392_v41  ;;  %v5276_v41 = vld [vmem:[%s7533_s17 + $0x1] ss:$0 sm:$0xff] }
0x1a3c   :  { %6405 = vmatprep.subr.bf16.mxu1 %v6500_v1 }
0x1b01   :  { %v6020_v50 = vpop.f32.mrb[38].mxu1 }
0x1b02   :  { %v4450_v51 = vadd.f32 %v6020_v50, %v5247_v49  ;;  %v4430_v52 = vpop.f32.mrb[39].mxu1 }
0x1b03   :  { %v4449_v53 = vadd.f32 %v5247_v49, %v4430_v52  ;;  %v5271_v49 = vld [vmem:[%s7532_s14 + $0x1] ss:$0 sm:$0xff] }
0x1b04   :  { %v4452_v54 = vadd.f32 %v4450_v51, %v7080_v35 }
0x1b05   :  { %v4451_v55 = vadd.f32 %v4449_v53, %v7078_v34  ;;  %v5252_v34 = vld [vmem:[%s7527_s11 + $0x30] sm:$0xff] }
0x1b06   :  { %v4460_v56 = vsel %vm91_vm0, %v4452_v54, 0.0  ;;  %v6368_v0 = vpack.c.bf16 %v5253_v63, %v5252_v34  ;;  %v4768_v34 = vld [vmem:[%s7535_s20] sm:$0xff]  ;;  %v4769_v63 = vld [vmem:[%s7535_s20 + $0x8] sm:$0xff] }
0x1b07   :  { %4461 = vadd.xlane.f32.xlu1 %v4460_v56  ;;  %v4457_v19 = vsel %vm91_vm0, %v4451_v55, 0.0 }
0x1b08   :  { %4458 = vadd.xlane.f32.xlu0 %v4457_v19  ;;  %6369 = vmatprep.subr.bf16.mxu0 %v6368_v0 }
0x1b09   :  { %6371 = vmatpush3.bf16.msra.mxu0 %v6368_v0  ;;  %v6397_v0 = vpack.c.bf16 %v4769_v63, %v4768_v34  ;;  %v28_v63 = vstv %s7568_s23 }
0x1b0a   :  { %6373 = vmatprep.subr.bf16.mxu0 %v6372_v3  ;;  %29 = vst [vmem:[#allocation2] sm:$0x1] %v28_v63 }
0x1b0d   :  { %6375 = vmatpush3.bf16.msra.mxu0 %v6372_v3  ;;  %v4771_v3 = vld [vmem:[%s7535_s20 + $0x18] sm:$0xff] }
0x1b0e   :  { %6377 = vmatprep.subr.bf16.mxu0 %v6376_v6  ;;  %v6400_v4 = vpack.c.bf16 %v4771_v3, %v4770_v2 }
0x1b11   :  { %6379 = vmatpush3.bf16.msra.mxu0 %v6376_v6  ;;  %v4773_v6 = vld [vmem:[%s7535_s20 + $0x28] sm:$0xff] }
0x1b12   :  { %6396 = vmatprep.subr.bf16.mxu0 %v6500_v1  ;;  %v6403_v7 = vpack.c.bf16 %v4773_v6, %v4772_v5  ;;  %v5281_v5 = vld [vmem:[#allocation2] ss:$0 sm:$0xff] }
0x1b94   :  { %v4462_v16 = vpop.xlane.xlu1 %4461 }
0x1b95   :  { %v4464_v57 = vmul.f32 0.020833334, %v4462_v16  ;;  %v4459_v58 = vpop.xlane.xlu0 %4458 }
0x1b96   :  { %v4463_v59 = vmul.f32 0.020833334, %v4459_v58 }
0x1b97   :  { %v4466_v60 = vsub.f32 %v4452_v54, %v4464_v57 }
0x1b98   :  { %v4465_v28 = vsub.f32 %v4451_v55, %v4463_v59 }
0x1b99   :  { %v4468_v61 = vmul.f32 %v4466_v60, %v4466_v60 }
0x1b9a   :  { %v4467_v62 = vmul.f32 %v4465_v28, %v4465_v28 }
0x1b9b   :  { %v4472_v45 = vsel %vm91_vm0, %v4468_v61, 0.0 }
0x1b9c   :  { %4473 = vadd.xlane.f32.xlu1 %v4472_v45  ;;  %v4469_v35 = vsel %vm91_vm0, %v4467_v62, 0.0 }
0x1b9d   :  { %4470 = vadd.xlane.f32.xlu0 %v4469_v35 }
0x1c29   :  { %v4474_v17 = vpop.xlane.xlu1 %4473 }
0x1c2a   :  { %v4476_v18 = vmul.f32 0.020833334, %v4474_v17  ;;  %v4471_v21 = vpop.xlane.xlu0 %4470  ;;  %v6415_v17 = vpack.c.bf16 %v4924_v12, %v4923_v11 }
0x1c2b   :  { %v4475_v22 = vmul.f32 0.020833334, %v4471_v21  ;;  %v4925_v21 = vld [vmem:[%s7537_s21 + $0x10] sm:$0xff] }
0x1c2c   :  { %v4478_v23 = vadd.f32 1e-05, %v4476_v18  ;;  %v6409_v18 = vpack.c.bf16 %v4765_v14, %v4764_v13 }
0x1c2d   :  { %v4477_v24 = vadd.f32 1e-05, %v4475_v22  ;;  %v4926_v22 = vld [vmem:[%s7537_s21 + $0x18] sm:$0xff] }
0x1c2e   :  { %6490 = vrsqrt.f32 %v4478_v23  ;;  %v4766_v23 = vld [vmem:[%s7536_s19 + $0x20] sm:$0xff] }
0x1c2f   :  { %6492 = vrsqrt.f32 %v4477_v24  ;;  %v4767_v24 = vld [vmem:[%s7536_s19 + $0x28] sm:$0xff] }
0x1c38   :  { %v6491_v25 = vpop.eup %6490 }
0x1c39   :  { %v6493_v29 = vpop.eup %6492  ;;  %v4482_v30 = vmul.f32 %v6491_v25, %v4466_v60  ;;  %v6418_v25 = vpack.c.bf16 %v4926_v22, %v4925_v21 }
0x1c3a   :  { %v4481_v31 = vmul.f32 %v6493_v29, %v4465_v28  ;;  %v4927_v29 = vld [vmem:[%s7537_s21 + $0x20] sm:$0xff] }
0x1c3b   :  { %v4490_v33 = vmul.f32 %v5250_v27, %v4482_v30  ;;  %v4928_v30 = vld [vmem:[%s7537_s21 + $0x28] sm:$0xff] }
0x1c3c   :  { %v4489_v36 = vmul.f32 %v5250_v27, %v4481_v31  ;;  %v6412_v27 = vpack.c.bf16 %v4767_v24, %v4766_v23  ;;  %v6421_v31 = vpack.c.bf16 %v4928_v30, %v4927_v29 }
0x1c3d   :  { %v4498_v38 = vadd.f32 %v5251_v32, %v4490_v33 }
0x1c3e   :  { %v4497_v37 = vadd.f32 %v5251_v32, %v4489_v36  ;;  %v4761_v32 = vld [vmem:[%s7539_s2] sm:$0x3] }
0x1c40   :  { %6033 = vmatprep.mubr.msk.f32.mxu0 %vm91_vm0, %v4497_v37 }
0x1c41   :  { %6034 = vmatmul.mubr.msk.f32.vlgmr.msra.gmra.mrb[44].mxu0 %vm91_vm0, %v4498_v38 }
0x1c42   :  { %6067 = vmatprep.mubr.msk.f32.mxu0 %vm6499_vm1, %v6498_v20  ;;  %6398 = vmatpush3.bf16.msra.mxu0 %v6397_v0 }
0x1c43   :  { %6399 = vmatprep.subr.bf16.mxu0 %v6500_v1 }
0x1c46   :  { %6401 = vmatpush3.bf16.msra.mxu0 %v6400_v4 }
0x1c47   :  { %6402 = vmatprep.subr.bf16.mxu0 %v6500_v1 }
0x1c4a   :  { %6404 = vmatpush3.bf16.msra.mxu0 %v6403_v7 }
0x1c4b   :  { %6414 = vmatprep.subr.bf16.mxu0 %v6500_v1 }
0x1c4d   :  { %6068 = vmatmul.mubr.msk.f32.vlgmr.msra.gmra.mrb[46].mxu0 %vm91_vm0, %v4760_v15 }
0x1c4e   :  { %6416 = vmatpush3.bf16.msra.mxu0 %v6415_v17  ;;  %6097 = vmatprep.mubr.msk.f32.mxu0 %vm6499_vm1, %v6498_v20 }
0x1c4f   :  { %6417 = vmatprep.subr.bf16.mxu0 %v6500_v1 }
0x1c52   :  { %6419 = vmatpush3.bf16.msra.mxu0 %v6418_v25 }
0x1c53   :  { %6420 = vmatprep.subr.bf16.mxu0 %v6500_v1 }
0x1c56   :  { %6422 = vmatpush3.bf16.msra.mxu0 %v6421_v31 }
0x1c59   :  { %6098 = vmatmul.mubr.msk.f32.vlgmr.msra.gmra.mrb[48].mxu0 %vm91_vm0, %v4761_v32 }
0x1d14   :  { %v6035_v43 = vpop.f32.mrb[44].mxu0 }
0x1d15   :  { %v4592_v44 = vadd.f32 %v6035_v43, %v5259_v42  ;;  %v4586_v46 = vpop.f32.mrb[45].mxu0 }
0x1d16   :  { %v4587_v47 = vadd.f32 %v5259_v42, %v4586_v46 }
0x1d17   :  { %v4596_v48 = vmax.f32 %v4592_v44, 0.0  ;;  %v5277_v44 = vld [vmem:[%s7534_s18 + $0x1] ss:$0 sm:$0xff] }
0x1d18   :  { %v4595_v26 = vmax.f32 %v4587_v47, 0.0 }
0x1d1a   :  { %6052 = vmatprep.mubr.msk.f32.mxu1 %vm2277_vm4, %v4595_v26 }
0x1d1b   :  { %6053 = vmatmul.mubr.msk.f32.vlgmr.msra.gmra.mrb[48].mxu1 %vm2277_vm4, %v4596_v48 }
0x1d1c   :  { %6082 = vmatprep.mubr.msk.f32.mxu1 %vm6499_vm1, %v6498_v20  ;;  %6407 = vmatpush3.bf16.msra.mxu1 %v6406_v10 }
0x1d1d   :  { %6408 = vmatprep.subr.bf16.mxu1 %v6500_v1 }
0x1d20   :  { %6410 = vmatpush3.bf16.msra.mxu1 %v6409_v18 }
0x1d21   :  { %6411 = vmatprep.subr.bf16.mxu1 %v6500_v1 }
0x1d24   :  { %6413 = vmatpush3.bf16.msra.mxu1 %v6412_v27 }
0x1dee   :  { %v6054_v50 = vpop.f32.mrb[48].mxu1 }
0x1def   :  { %v4692_v51 = vadd.f32 %v6054_v50, %v5271_v49  ;;  %v4686_v52 = vpop.f32.mrb[49].mxu1 }
0x1df0   :  { %v4687_v53 = vadd.f32 %v5271_v49, %v4686_v52 }
0x1df1   :  { %v4696_v54 = vadd.f32 %v4692_v51, %v4498_v38 }
0x1df2   :  { %v4695_v55 = vadd.f32 %v4687_v53, %v4497_v37 }
0x1df3   :  { %v4704_v56 = vsel %vm91_vm0, %v4696_v54, 0.0 }
0x1df4   :  { %4705 = vadd.xlane.f32.xlu1 %v4704_v56  ;;  %v4701_v19 = vsel %vm91_vm0, %v4695_v55, 0.0 }
0x1df5   :  { %4702 = vadd.xlane.f32.xlu0 %v4701_v19 }
0x1e81   :  { %v4706_v16 = vpop.xlane.xlu1 %4705 }
0x1e82   :  { %v4708_v57 = vmul.f32 0.020833334, %v4706_v16  ;;  %v4703_v58 = vpop.xlane.xlu0 %4702 }
0x1e83   :  { %v4707_v59 = vmul.f32 0.020833334, %v4703_v58 }
0x1e84   :  { %v7427_v60 = vsub.f32 %v4696_v54, %v4708_v57 }
0x1e85   :  { %v7429_v28 = vsub.f32 %v4695_v55, %v4707_v59 }
0x1e86   :  { %v4712_v61 = vmul.f32 %v7427_v60, %v7427_v60 }
0x1e87   :  { %v4711_v62 = vmul.f32 %v7429_v28, %v7429_v28 }
0x1e88   :  { %v4716_v45 = vsel %vm91_vm0, %v4712_v61, 0.0 }
0x1e89   :  { %4717 = vadd.xlane.f32.xlu1 %v4716_v45  ;;  %v4713_v35 = vsel %vm91_vm0, %v4711_v62, 0.0 }
0x1e8a   :  { %4714 = vadd.xlane.f32.xlu0 %v4713_v35  ;;  %v4843_v35 = vpop.f32.mrb[46].mxu0 }
0x1e8b   :  { %v6069_v34 = vpop.f32.mrb[47].mxu0 }
0x1e8c   :  { %v4998_v0 = vpop.f32.mrb[48].mxu0 }
0x1e8d   :  { %v6099_v1 = vpop.f32.mrb[49].mxu0 }
0x1f16   :  { %v4718_v33 = vpop.xlane.xlu1 %4717 }
0x1f17   :  { %v4720_v36 = vmul.f32 0.020833334, %v4718_v33  ;;  %v4715_v37 = vpop.xlane.xlu0 %4714 }
0x1f18   :  { %v4719_v38 = vmul.f32 0.020833334, %v4715_v37 }
0x1f19   :  { %v4722_v39 = vadd.f32 1e-05, %v4720_v36 }
0x1f1a   :  { %v4721_v40 = vadd.f32 1e-05, %v4719_v38 }
0x1f1b   :  { %6494 = vrsqrt.f32 %v4722_v39 }
0x1f1c   :  { %6496 = vrsqrt.f32 %v4721_v40 }
0x1f25   :  { %v6495_v20 = vpop.eup %6494 }
0x1f26   :  { %v6497_v42 = vpop.eup %6496  ;;  %v4726_v43 = vmul.f32 %v6495_v20, %v7427_v60 }
0x1f27   :  { %v4725_v46 = vmul.f32 %v6497_v42, %v7429_v28 }
0x1f28   :  { %v4734_v47 = vmul.f32 %v5276_v41, %v4726_v43 }
0x1f29   :  { %v4733_v26 = vmul.f32 %v5276_v41, %v4725_v46 }
0x1f2a   :  { %v4742_v48 = vadd.f32 %v5277_v44, %v4734_v47 }
0x1f2b   :  { %v4741_v49 = vadd.f32 %v5277_v44, %v4733_v26 }
0x1f2c   :  { %v4750_v50 = vsel %vm91_vm0, %v4742_v48, 0.0 }
0x1f2d   :  { %v4743_v51 = vsel %vm91_vm0, %v4741_v49, 0.0  ;;  %v4751_v52 = vrot.slane %v4750_v50, 4 }
0x1f2e   :  { %v4744_v53 = vrot.slane %v4743_v51, 4 }
0x1f2f   :  { %v4752_v54 = vadd.f32 %v4751_v52, %v4750_v50 }
0x1f30   :  { %v4745_v55 = vadd.f32 %v4744_v53, %v4743_v51 }
0x1f31   :  { %v4753_v56 = vrot.slane %v4752_v54, 2 }
0x1f32   :  { %v4746_v19 = vrot.slane %v4745_v55, 2 }
0x1f33   :  { %v4754_v16 = vadd.f32 %v4753_v56, %v4752_v54 }
0x1f34   :  { %v4747_v57 = vadd.f32 %v4746_v19, %v4745_v55 }
0x1f35   :  { %v4755_v58 = vrot.slane %v4754_v16, 1 }
0x1f36   :  { %v4748_v59 = vrot.slane %v4747_v57, 1 }
0x1f37   :  { %v4756_v60 = vadd.f32 %v4755_v58, %v4754_v16 }
0x1f38   :  { %v4749_v28 = vadd.f32 %v4748_v59, %v4747_v57 }
0x1f39   :  { %v4759_v61 = vmul.f32 0.125, %v4756_v60 }
0x1f3a   :  { %v4758_v62 = vmul.f32 0.125, %v4749_v28 }
0x1f3c   :  { %v4850_v45 = vsel %vm4849_vm5, %v4759_v61, %v4758_v62 }
0x1f3d   :  { %6083 = vmatmul.mubr.msk.f32.vlgmr.msra.gmra.mrb[50].mxu1 %vm91_vm0, %v4850_v45 }
0x2010   :  { %v4919_v2 = vpop.f32.mrb[50].mxu1 }
0x2011   :  { %v4920_v3 = vadd.f32 %v4919_v2, %v4843_v35  ;;  %v6084_v4 = vpop.f32.mrb[51].mxu1 }
0x2013   :  { %v5002_v6 = vadd.f32 %v4998_v0, %v4920_v3 }
0x2015   :  { %v5010_v7 = vadd.f32 %v5281_v5, %v5002_v6 }
0x2017   :  { %v5011_v8 = vmax.f32 %v5010_v7, 0.0 }
0x2019   :  { %5013 = vst.msk [vmem:[%s7569_s28] sm:$0x3] %vm5012_vm6, %v5011_v8 }

</bundles_post_ra>
